<compile_context>
chip_gen: v5e
topology: v5e:2x2
jax: 0.10.0
libtpu: 0.0.40
codegen_flags: <defaults>
</compile_context>

<pallas_src>
import functools

import numpy as np
import jax
import jax.numpy as jnp
from jax import lax
from jax.experimental import pallas as pl
from jax.experimental.pallas import tpu as pltpu

LANE = 128      # vreg lane width
SUBLANE = 8     # vreg sublane count


def _round_up(n, m):
    return ((n + m - 1) // m) * m


# ------------------------------ Fused kernel ---------------------------------
def _fused_lstm_fc_kernel(x_ref, *refs, S, Bp, Hp, num_layers):
    """Whole model in one kernel (no grid; everything resident in VMEM).

    refs layout:
      [w_ih_t, w_hh_t, bias] * num_layers, fc_w_t, fc_b,    (inputs)
      out_ref,                                              (output)
      xproj_sc (S*Bp, 4Hp), hseq_sc (S*Bp, Hp)              (VMEM scratch)
    Gate order along the 4Hp axis is [i, f, g, o] (torch.nn.LSTM), each gate
    padded to Hp=128 lanes so the slices below are lane-aligned.
    """
    nl = num_layers
    layer_refs = [(refs[3 * l], refs[3 * l + 1], refs[3 * l + 2]) for l in range(nl)]
    fcw_ref = refs[3 * nl]
    fcb_ref = refs[3 * nl + 1]
    out_ref = refs[3 * nl + 2]
    xproj_sc = refs[3 * nl + 3]
    hseq_sc = refs[3 * nl + 4]

    def sigmoid(v):
        # exp on EUP, exact reciprocal (approx=True possible at relaxed tolerance)
        return pl.reciprocal(1.0 + jnp.exp(-v))

    seq_in = x_ref[...]                              # (S*Bp, in) whole sequence in VMEM
    h = jnp.zeros((Bp, Hp), jnp.float32)
    for l, (wih_ref, whh_ref, b_ref) in enumerate(layer_refs):
        # Hoisted, time-parallel input projection: one big MXU pass for all timesteps.
        xproj_sc[...] = (jnp.dot(seq_in, wih_ref[...],
                                 preferred_element_type=jnp.float32) + b_ref[...])

        whh = whh_ref[...]                           # recurrent weights loaded once
        h = jnp.zeros((Bp, Hp), jnp.float32)
        c = jnp.zeros((Bp, Hp), jnp.float32)

        # Time recurrence fully inside the kernel. S is small & static -> unrolled;
        # for long sequences switch to @pl.loop / lax.fori_loop over the same body.
        for t in range(S):
            row = t * Bp
            gates = (xproj_sc[pl.ds(row, Bp), :] +
                     jnp.dot(h, whh, preferred_element_type=jnp.float32))  # (Bp, 4Hp)
            i_g = sigmoid(gates[:, 0 * Hp:1 * Hp])   # 128-lane aligned slices
            f_g = sigmoid(gates[:, 1 * Hp:2 * Hp])
            g_g = jnp.tanh(gates[:, 2 * Hp:3 * Hp])
            o_g = sigmoid(gates[:, 3 * Hp:4 * Hp])
            c = f_g * c + i_g * g_g
            h = o_g * jnp.tanh(c)
            if l < nl - 1:                           # only needed as next layer's input
                hseq_sc[pl.ds(row, Bp), :] = h       # (8,128) lane-dense unmasked store

        if l < nl - 1:
            seq_in = hseq_sc[...]                    # (S*Bp, Hp) input to next layer

    # Final Linear on the last timestep's hidden state of the last layer.
    out_ref[...] = (jnp.dot(h, fcw_ref[...], preferred_element_type=jnp.float32)
                    + fcb_ref[...])


# --------------------------- Parameter preparation ----------------------------
def _pad_gate_rows(w, H, Hp):
    """w: (4H, in) torch layout, gates [i,f,g,o] -> (4Hp, in) with zero-padded gates."""
    in_dim = w.shape[1]
    w4 = w.reshape(4, H, in_dim)
    w4 = jnp.pad(w4, ((0, 0), (0, Hp - H), (0, 0)))
    return w4.reshape(4 * Hp, in_dim)


def prepare_padded_params(params):
    """Pad hidden dim to 128 lanes / FC output to 128 lanes; transpose for x @ W^T."""
    H = params["hidden_size"]
    O = params["output_size"]
    Hp = _round_up(H, LANE)
    Op = _round_up(O, LANE)
    out = {"layers": [], "Hp": Hp, "Op": Op}
    for li, lp in enumerate(params["lstm"]):
        w_ih = _pad_gate_rows(lp["w_ih"], H, Hp)                 # (4Hp, in)
        if li > 0:
            w_ih = jnp.pad(w_ih, ((0, 0), (0, Hp - H)))          # in dim H -> Hp
        w_hh = _pad_gate_rows(lp["w_hh"], H, Hp)                 # (4Hp, H)
        w_hh = jnp.pad(w_hh, ((0, 0), (0, Hp - H)))              # (4Hp, Hp)
        bias = (lp["b_ih"] + lp["b_hh"]).reshape(4, H)
        bias = jnp.pad(bias, ((0, 0), (0, Hp - H))).reshape(1, 4 * Hp)
        out["layers"].append({"w_ih_t": w_ih.T,                  # (in_p, 4Hp)
                              "w_hh_t": w_hh.T,                  # (Hp, 4Hp)
                              "bias": bias})                     # (1, 4Hp)
    fc_w = jnp.pad(params["fc_w"], ((0, Op - O), (0, Hp - H)))   # (Op, Hp)
    out["fc_w_t"] = fc_w.T                                       # (Hp, Op)
    out["fc_b"] = jnp.pad(params["fc_b"], (0, Op - O)).reshape(1, Op)
    return out


# ------------------------------- Full forward ---------------------------------
def lstm_model_forward(x_bsi, params):
    """Equivalent of LSTMModel.forward. x_bsi: (batch, seq, input_size) float32."""
    B, S, _ = x_bsi.shape
    O = params["output_size"]
    nl = len(params["lstm"])
    Bp = _round_up(B, SUBLANE)

    pp = prepare_padded_params(params)
    Hp, Op = pp["Hp"], pp["Op"]

    # (B,S,I) -> (S,B,I), pad batch to 8 sublanes, flatten time*batch for the
    # hoisted projection; all timesteps live in VMEM inside the kernel.
    x = jnp.transpose(x_bsi, (1, 0, 2))
    x = jnp.pad(x, ((0, 0), (0, Bp - B), (0, 0)))
    x2d = x.reshape(S * Bp, x.shape[-1])

    args = [x2d]
    for lp in pp["layers"]:
        args += [lp["w_ih_t"], lp["w_hh_t"], lp["bias"]]
    args += [pp["fc_w_t"], pp["fc_b"]]

    kernel = functools.partial(_fused_lstm_fc_kernel,
                               S=S, Bp=Bp, Hp=Hp, num_layers=nl)
    out_p = pl.pallas_call(
        kernel,
        out_shape=jax.ShapeDtypeStruct((Bp, Op), jnp.float32),
        scratch_shapes=[
            pltpu.VMEM((S * Bp, 4 * Hp), jnp.float32),   # hoisted input projection
            pltpu.VMEM((S * Bp, Hp), jnp.float32),       # per-layer hidden sequence
        ],
    )(*args)
    # TODO(synk): for production H, shard the 4Hp gate axis across the 2nd TensorCore
    # on v7x and use bf16 weights to fit the 64 MiB VMEM budget.
    return out_p[:B, :O]


# ------------------------- Deterministic parameters ----------------------------
def init_params(key, input_size, hidden_size, num_layers, output_size):
    k = 1.0 / np.sqrt(hidden_size)
    params = {"lstm": [], "input_size": input_size,
              "hidden_size": hidden_size, "output_size": output_size}
    for layer in range(num_layers):
        in_sz = input_size if layer == 0 else hidden_size
        key, k1, k2, k3, k4 = jax.random.split(key, 5)
        params["lstm"].append({
            "w_ih": jax.random.uniform(k1, (4 * hidden_size, in_sz), jnp.float32, -k, k),
            "w_hh": jax.random.uniform(k2, (4 * hidden_size, hidden_size), jnp.float32, -k, k),
            "b_ih": jax.random.uniform(k3, (4 * hidden_size,), jnp.float32, -k, k),
            "b_hh": jax.random.uniform(k4, (4 * hidden_size,), jnp.float32, -k, k),
        })
    key, k5, k6 = jax.random.split(key, 3)
    params["fc_w"] = jax.random.uniform(k5, (output_size, hidden_size), jnp.float32, -k, k)
    params["fc_b"] = jax.random.uniform(k6, (output_size,), jnp.float32, -k, k)
    return params


# ----------------------------- Pure-JAX reference ------------------------------
def lstm_model_reference(x_bsi, params):
    B = x_bsi.shape[0]
    H = params["hidden_size"]
    h_seq = jnp.transpose(x_bsi, (1, 0, 2))
    for lp in params["lstm"]:
        w_ih_t, w_hh_t = lp["w_ih"].T, lp["w_hh"].T
        bias = (lp["b_ih"] + lp["b_hh"]).reshape(1, -1)

        def step(carry, x_t, w_ih_t=w_ih_t, w_hh_t=w_hh_t, bias=bias):
            hp, cp = carry
            gates = x_t @ w_ih_t + hp @ w_hh_t + bias
            i = jax.nn.sigmoid(gates[:, :H])
            f = jax.nn.sigmoid(gates[:, H:2 * H])
            g = jnp.tanh(gates[:, 2 * H:3 * H])
            o = jax.nn.sigmoid(gates[:, 3 * H:])
            c = f * cp + i * g
            hn = o * jnp.tanh(c)
            return (hn, c), hn

        init = (jnp.zeros((B, H), jnp.float32), jnp.zeros((B, H), jnp.float32))
        _, h_seq = lax.scan(step, init, h_seq)
    return h_seq[-1] @ params["fc_w"].T + params["fc_b"]


# ------------------------------------ main -------------------------------------
if __name__ == "__main__":
    batch, seq, input_size = 2, 8, 16
    hidden_size, num_layers, output_size = 32, 2, 4

    key = jax.random.PRNGKey(0)
    key, xkey, pkey = jax.random.split(key, 3)
    x = jax.random.normal(xkey, (batch, seq, input_size), jnp.float32)
    params = init_params(pkey, input_size, hidden_size, num_layers, output_size)

    out = jax.block_until_ready(lstm_model_forward(x, params))
    ref = jax.block_until_ready(lstm_model_reference(x, params))

    assert out.shape == (batch, output_size)
    np.testing.assert_allclose(np.asarray(out), np.asarray(ref), rtol=1e-5, atol=1e-5)

    print("KERNEL_OK")
</pallas_src>

<mosaic_0001>
module attributes {stable_mosaic.version = 11 : i64} {
  func.func @_fused_lstm_fc_kernel(%arg0: memref<64x16xf32, #tpu.memory_space<vmem>>, %arg1: memref<16x512xf32, #tpu.memory_space<vmem>>, %arg2: memref<128x512xf32, #tpu.memory_space<vmem>>, %arg3: memref<1x512xf32, #tpu.memory_space<vmem>>, %arg4: memref<128x512xf32, #tpu.memory_space<vmem>>, %arg5: memref<128x512xf32, #tpu.memory_space<vmem>>, %arg6: memref<1x512xf32, #tpu.memory_space<vmem>>, %arg7: memref<128x128xf32, #tpu.memory_space<vmem>>, %arg8: memref<1x128xf32, #tpu.memory_space<vmem>>, %arg9: memref<8x128xf32, #tpu.memory_space<vmem>>, %arg10: memref<64x512xf32, #tpu.memory_space<vmem>>, %arg11: memref<64x128xf32, #tpu.memory_space<vmem>>) attributes {dimension_semantics = [], scalar_prefetch = 0 : i64, scratch_operands = 2 : i64, tpu.core_type = #tpu.core_type<tc>} {
    %c0 = arith.constant 0 : index
    %c0_0 = arith.constant 0 : index
    %0 = vector.load %arg0[%c0, %c0_0] : memref<64x16xf32, #tpu.memory_space<vmem>>, vector<64x16xf32>
    %c0_1 = arith.constant 0 : index
    %c0_2 = arith.constant 0 : index
    %1 = vector.load %arg1[%c0_1, %c0_2] : memref<16x512xf32, #tpu.memory_space<vmem>>, vector<16x512xf32>
    %cst = arith.constant dense<0.000000e+00> : vector<64x512xf32>
    %2 = tpu.matmul %0, %1, %cst {dimension_numbers = #tpu.dot_dimension_numbers<[1], [0], [0], [1], [0, 0, 1, 1], [], []>} : vector<64x16xf32>, vector<16x512xf32>, vector<64x512xf32> -> vector<64x512xf32>
    %c0_3 = arith.constant 0 : index
    %c0_4 = arith.constant 0 : index
    %3 = vector.load %arg3[%c0_3, %c0_4] : memref<1x512xf32, #tpu.memory_space<vmem>>, vector<1x512xf32>
    %4 = vector.broadcast %3 : vector<1x512xf32> to vector<64x512xf32>
    %5 = arith.addf %2, %4 : vector<64x512xf32>
    %c0_5 = arith.constant 0 : index
    %c0_6 = arith.constant 0 : index
    %6 = vector.load %arg10[%c0_5, %c0_6] : memref<64x512xf32, #tpu.memory_space<vmem>>, vector<64x512xf32>
    tpu.vector_store %arg10[%c0_5, %c0_6], %5 {strides = array<i32>} : memref<64x512xf32, #tpu.memory_space<vmem>>, vector<64x512xf32>,
    %c0_7 = arith.constant 0 : index
    %c0_8 = arith.constant 0 : index
    %7 = vector.load %arg2[%c0_7, %c0_8] : memref<128x512xf32, #tpu.memory_space<vmem>>, vector<128x512xf32>
    %cst_9 = arith.constant 0.000000e+00 : f32
    %8 = vector.broadcast %cst_9 : f32 to vector<8x128xf32>
    %cst_10 = arith.constant 0.000000e+00 : f32
    %9 = vector.broadcast %cst_10 : f32 to vector<8x128xf32>
    %c0_11 = arith.constant 0 : index
    %c0_12 = arith.constant 0 : index
    %10 = vector.load %arg10[%c0_11, %c0_12] : memref<64x512xf32, #tpu.memory_space<vmem>>, vector<8x512xf32>
    %cst_13 = arith.constant dense<0.000000e+00> : vector<8x512xf32>
    %11 = tpu.matmul %8, %7, %cst_13 {dimension_numbers = #tpu.dot_dimension_numbers<[1], [0], [0], [1], [0, 0, 1, 1], [], []>} : vector<8x128xf32>, vector<128x512xf32>, vector<8x512xf32> -> vector<8x512xf32>
    %12 = arith.addf %10, %11 : vector<8x512xf32>
    %13 = vector.extract_strided_slice %12 {offsets = [0, 0], sizes = [8, 128], strides = [1, 1]} : vector<8x512xf32> to vector<8x128xf32>
    %cst_14 = arith.constant 0.000000e+00 : f32
    %14 = vector.broadcast %cst_14 : f32 to vector<8x128xf32>
    %15 = arith.subf %14, %13 : vector<8x128xf32>
    %16 = math.exp %15 : vector<8x128xf32>
    %cst_15 = arith.constant 1.000000e+00 : f32
    %17 = vector.broadcast %cst_15 : f32 to vector<8x128xf32>
    %18 = arith.addf %17, %16 : vector<8x128xf32>
    %19 = tpu.reciprocal %18 : vector<8x128xf32> -> vector<8x128xf32>
    %20 = vector.extract_strided_slice %12 {offsets = [0, 128], sizes = [8, 128], strides = [1, 1]} : vector<8x512xf32> to vector<8x128xf32>
    %cst_16 = arith.constant 0.000000e+00 : f32
    %21 = vector.broadcast %cst_16 : f32 to vector<8x128xf32>
    %22 = arith.subf %21, %20 : vector<8x128xf32>
    %23 = math.exp %22 : vector<8x128xf32>
    %cst_17 = arith.constant 1.000000e+00 : f32
    %24 = vector.broadcast %cst_17 : f32 to vector<8x128xf32>
    %25 = arith.addf %24, %23 : vector<8x128xf32>
    %26 = tpu.reciprocal %25 : vector<8x128xf32> -> vector<8x128xf32>
    %27 = vector.extract_strided_slice %12 {offsets = [0, 256], sizes = [8, 128], strides = [1, 1]} : vector<8x512xf32> to vector<8x128xf32>
    %28 = math.tanh %27 : vector<8x128xf32>
    %29 = vector.extract_strided_slice %12 {offsets = [0, 384], sizes = [8, 128], strides = [1, 1]} : vector<8x512xf32> to vector<8x128xf32>
    %cst_18 = arith.constant 0.000000e+00 : f32
    %30 = vector.broadcast %cst_18 : f32 to vector<8x128xf32>
    %31 = arith.subf %30, %29 : vector<8x128xf32>
    %32 = math.exp %31 : vector<8x128xf32>
    %cst_19 = arith.constant 1.000000e+00 : f32
    %33 = vector.broadcast %cst_19 : f32 to vector<8x128xf32>
    %34 = arith.addf %33, %32 : vector<8x128xf32>
    %35 = tpu.reciprocal %34 : vector<8x128xf32> -> vector<8x128xf32>
    %36 = arith.mulf %26, %9 : vector<8x128xf32>
    %37 = arith.mulf %19, %28 : vector<8x128xf32>
    %38 = arith.addf %36, %37 : vector<8x128xf32>
    %39 = math.tanh %38 : vector<8x128xf32>
    %40 = arith.mulf %35, %39 : vector<8x128xf32>
    %c0_20 = arith.constant 0 : index
    %c0_21 = arith.constant 0 : index
    %41 = vector.load %arg11[%c0_20, %c0_21] : memref<64x128xf32, #tpu.memory_space<vmem>>, vector<8x128xf32>
    tpu.vector_store %arg11[%c0_20, %c0_21], %40 {strides = array<i32>} : memref<64x128xf32, #tpu.memory_space<vmem>>, vector<8x128xf32>,
    %c8 = arith.constant 8 : index
    %c0_22 = arith.constant 0 : index
    %42 = vector.load %arg10[%c8, %c0_22] : memref<64x512xf32, #tpu.memory_space<vmem>>, vector<8x512xf32>
    %cst_23 = arith.constant dense<0.000000e+00> : vector<8x512xf32>
    %43 = tpu.matmul %40, %7, %cst_23 {dimension_numbers = #tpu.dot_dimension_numbers<[1], [0], [0], [1], [0, 0, 1, 1], [], []>} : vector<8x128xf32>, vector<128x512xf32>, vector<8x512xf32> -> vector<8x512xf32>
    %44 = arith.addf %42, %43 : vector<8x512xf32>
    %45 = vector.extract_strided_slice %44 {offsets = [0, 0], sizes = [8, 128], strides = [1, 1]} : vector<8x512xf32> to vector<8x128xf32>
    %cst_24 = arith.constant 0.000000e+00 : f32
    %46 = vector.broadcast %cst_24 : f32 to vector<8x128xf32>
    %47 = arith.subf %46, %45 : vector<8x128xf32>
    %48 = math.exp %47 : vector<8x128xf32>
    %cst_25 = arith.constant 1.000000e+00 : f32
    %49 = vector.broadcast %cst_25 : f32 to vector<8x128xf32>
    %50 = arith.addf %49, %48 : vector<8x128xf32>
    %51 = tpu.reciprocal %50 : vector<8x128xf32> -> vector<8x128xf32>
    %52 = vector.extract_strided_slice %44 {offsets = [0, 128], sizes = [8, 128], strides = [1, 1]} : vector<8x512xf32> to vector<8x128xf32>
    %cst_26 = arith.constant 0.000000e+00 : f32
    %53 = vector.broadcast %cst_26 : f32 to vector<8x128xf32>
    %54 = arith.subf %53, %52 : vector<8x128xf32>
    %55 = math.exp %54 : vector<8x128xf32>
    %cst_27 = arith.constant 1.000000e+00 : f32
    %56 = vector.broadcast %cst_27 : f32 to vector<8x128xf32>
    %57 = arith.addf %56, %55 : vector<8x128xf32>
    %58 = tpu.reciprocal %57 : vector<8x128xf32> -> vector<8x128xf32>
    %59 = vector.extract_strided_slice %44 {offsets = [0, 256], sizes = [8, 128], strides = [1, 1]} : vector<8x512xf32> to vector<8x128xf32>
    %60 = math.tanh %59 : vector<8x128xf32>
    %61 = vector.extract_strided_slice %44 {offsets = [0, 384], sizes = [8, 128], strides = [1, 1]} : vector<8x512xf32> to vector<8x128xf32>
    %cst_28 = arith.constant 0.000000e+00 : f32
    %62 = vector.broadcast %cst_28 : f32 to vector<8x128xf32>
    %63 = arith.subf %62, %61 : vector<8x128xf32>
    %64 = math.exp %63 : vector<8x128xf32>
    %cst_29 = arith.constant 1.000000e+00 : f32
    %65 = vector.broadcast %cst_29 : f32 to vector<8x128xf32>
    %66 = arith.addf %65, %64 : vector<8x128xf32>
    %67 = tpu.reciprocal %66 : vector<8x128xf32> -> vector<8x128xf32>
    %68 = arith.mulf %58, %38 : vector<8x128xf32>
    %69 = arith.mulf %51, %60 : vector<8x128xf32>
    %70 = arith.addf %68, %69 : vector<8x128xf32>
    %71 = math.tanh %70 : vector<8x128xf32>
    %72 = arith.mulf %67, %71 : vector<8x128xf32>
    %c8_30 = arith.constant 8 : index
    %c0_31 = arith.constant 0 : index
    %73 = vector.load %arg11[%c8_30, %c0_31] : memref<64x128xf32, #tpu.memory_space<vmem>>, vector<8x128xf32>
    tpu.vector_store %arg11[%c8_30, %c0_31], %72 {strides = array<i32>} : memref<64x128xf32, #tpu.memory_space<vmem>>, vector<8x128xf32>,
    %c16 = arith.constant 16 : index
    %c0_32 = arith.constant 0 : index
    %74 = vector.load %arg10[%c16, %c0_32] : memref<64x512xf32, #tpu.memory_space<vmem>>, vector<8x512xf32>
    %cst_33 = arith.constant dense<0.000000e+00> : vector<8x512xf32>
    %75 = tpu.matmul %72, %7, %cst_33 {dimension_numbers = #tpu.dot_dimension_numbers<[1], [0], [0], [1], [0, 0, 1, 1], [], []>} : vector<8x128xf32>, vector<128x512xf32>, vector<8x512xf32> -> vector<8x512xf32>
    %76 = arith.addf %74, %75 : vector<8x512xf32>
    %77 = vector.extract_strided_slice %76 {offsets = [0, 0], sizes = [8, 128], strides = [1, 1]} : vector<8x512xf32> to vector<8x128xf32>
    %cst_34 = arith.constant 0.000000e+00 : f32
    %78 = vector.broadcast %cst_34 : f32 to vector<8x128xf32>
    %79 = arith.subf %78, %77 : vector<8x128xf32>
    %80 = math.exp %79 : vector<8x128xf32>
    %cst_35 = arith.constant 1.000000e+00 : f32
    %81 = vector.broadcast %cst_35 : f32 to vector<8x128xf32>
    %82 = arith.addf %81, %80 : vector<8x128xf32>
    %83 = tpu.reciprocal %82 : vector<8x128xf32> -> vector<8x128xf32>
    %84 = vector.extract_strided_slice %76 {offsets = [0, 128], sizes = [8, 128], strides = [1, 1]} : vector<8x512xf32> to vector<8x128xf32>
    %cst_36 = arith.constant 0.000000e+00 : f32
    %85 = vector.broadcast %cst_36 : f32 to vector<8x128xf32>
    %86 = arith.subf %85, %84 : vector<8x128xf32>
    %87 = math.exp %86 : vector<8x128xf32>
    %cst_37 = arith.constant 1.000000e+00 : f32
    %88 = vector.broadcast %cst_37 : f32 to vector<8x128xf32>
    %89 = arith.addf %88, %87 : vector<8x128xf32>
    %90 = tpu.reciprocal %89 : vector<8x128xf32> -> vector<8x128xf32>
    %91 = vector.extract_strided_slice %76 {offsets = [0, 256], sizes = [8, 128], strides = [1, 1]} : vector<8x512xf32> to vector<8x128xf32>
    %92 = math.tanh %91 : vector<8x128xf32>
    %93 = vector.extract_strided_slice %76 {offsets = [0, 384], sizes = [8, 128], strides = [1, 1]} : vector<8x512xf32> to vector<8x128xf32>
    %cst_38 = arith.constant 0.000000e+00 : f32
    %94 = vector.broadcast %cst_38 : f32 to vector<8x128xf32>
    %95 = arith.subf %94, %93 : vector<8x128xf32>
    %96 = math.exp %95 : vector<8x128xf32>
    %cst_39 = arith.constant 1.000000e+00 : f32
    %97 = vector.broadcast %cst_39 : f32 to vector<8x128xf32>
    %98 = arith.addf %97, %96 : vector<8x128xf32>
    %99 = tpu.reciprocal %98 : vector<8x128xf32> -> vector<8x128xf32>
    %100 = arith.mulf %90, %70 : vector<8x128xf32>
    %101 = arith.mulf %83, %92 : vector<8x128xf32>
    %102 = arith.addf %100, %101 : vector<8x128xf32>
    %103 = math.tanh %102 : vector<8x128xf32>
    %104 = arith.mulf %99, %103 : vector<8x128xf32>
    %c16_40 = arith.constant 16 : index
    %c0_41 = arith.constant 0 : index
    %105 = vector.load %arg11[%c16_40, %c0_41] : memref<64x128xf32, #tpu.memory_space<vmem>>, vector<8x128xf32>
    tpu.vector_store %arg11[%c16_40, %c0_41], %104 {strides = array<i32>} : memref<64x128xf32, #tpu.memory_space<vmem>>, vector<8x128xf32>,
    %c24 = arith.constant 24 : index
    %c0_42 = arith.constant 0 : index
    %106 = vector.load %arg10[%c24, %c0_42] : memref<64x512xf32, #tpu.memory_space<vmem>>, vector<8x512xf32>
    %cst_43 = arith.constant dense<0.000000e+00> : vector<8x512xf32>
    %107 = tpu.matmul %104, %7, %cst_43 {dimension_numbers = #tpu.dot_dimension_numbers<[1], [0], [0], [1], [0, 0, 1, 1], [], []>} : vector<8x128xf32>, vector<128x512xf32>, vector<8x512xf32> -> vector<8x512xf32>
    %108 = arith.addf %106, %107 : vector<8x512xf32>
    %109 = vector.extract_strided_slice %108 {offsets = [0, 0], sizes = [8, 128], strides = [1, 1]} : vector<8x512xf32> to vector<8x128xf32>
    %cst_44 = arith.constant 0.000000e+00 : f32
    %110 = vector.broadcast %cst_44 : f32 to vector<8x128xf32>
    %111 = arith.subf %110, %109 : vector<8x128xf32>
    %112 = math.exp %111 : vector<8x128xf32>
    %cst_45 = arith.constant 1.000000e+00 : f32
    %113 = vector.broadcast %cst_45 : f32 to vector<8x128xf32>
    %114 = arith.addf %113, %112 : vector<8x128xf32>
    %115 = tpu.reciprocal %114 : vector<8x128xf32> -> vector<8x128xf32>
    %116 = vector.extract_strided_slice %108 {offsets = [0, 128], sizes = [8, 128], strides = [1, 1]} : vector<8x512xf32> to vector<8x128xf32>
    %cst_46 = arith.constant 0.000000e+00 : f32
    %117 = vector.broadcast %cst_46 : f32 to vector<8x128xf32>
    %118 = arith.subf %117, %116 : vector<8x128xf32>
    %119 = math.exp %118 : vector<8x128xf32>
    %cst_47 = arith.constant 1.000000e+00 : f32
    %120 = vector.broadcast %cst_47 : f32 to vector<8x128xf32>
    %121 = arith.addf %120, %119 : vector<8x128xf32>
    %122 = tpu.reciprocal %121 : vector<8x128xf32> -> vector<8x128xf32>
    %123 = vector.extract_strided_slice %108 {offsets = [0, 256], sizes = [8, 128], strides = [1, 1]} : vector<8x512xf32> to vector<8x128xf32>
    %124 = math.tanh %123 : vector<8x128xf32>
    %125 = vector.extract_strided_slice %108 {offsets = [0, 384], sizes = [8, 128], strides = [1, 1]} : vector<8x512xf32> to vector<8x128xf32>
    %cst_48 = arith.constant 0.000000e+00 : f32
    %126 = vector.broadcast %cst_48 : f32 to vector<8x128xf32>
    %127 = arith.subf %126, %125 : vector<8x128xf32>
    %128 = math.exp %127 : vector<8x128xf32>
    %cst_49 = arith.constant 1.000000e+00 : f32
    %129 = vector.broadcast %cst_49 : f32 to vector<8x128xf32>
    %130 = arith.addf %129, %128 : vector<8x128xf32>
    %131 = tpu.reciprocal %130 : vector<8x128xf32> -> vector<8x128xf32>
    %132 = arith.mulf %122, %102 : vector<8x128xf32>
    %133 = arith.mulf %115, %124 : vector<8x128xf32>
    %134 = arith.addf %132, %133 : vector<8x128xf32>
    %135 = math.tanh %134 : vector<8x128xf32>
    %136 = arith.mulf %131, %135 : vector<8x128xf32>
    %c24_50 = arith.constant 24 : index
    %c0_51 = arith.constant 0 : index
    %137 = vector.load %arg11[%c24_50, %c0_51] : memref<64x128xf32, #tpu.memory_space<vmem>>, vector<8x128xf32>
    tpu.vector_store %arg11[%c24_50, %c0_51], %136 {strides = array<i32>} : memref<64x128xf32, #tpu.memory_space<vmem>>, vector<8x128xf32>,
    %c32 = arith.constant 32 : index
    %c0_52 = arith.constant 0 : index
    %138 = vector.load %arg10[%c32, %c0_52] : memref<64x512xf32, #tpu.memory_space<vmem>>, vector<8x512xf32>
    %cst_53 = arith.constant dense<0.000000e+00> : vector<8x512xf32>
    %139 = tpu.matmul %136, %7, %cst_53 {dimension_numbers = #tpu.dot_dimension_numbers<[1], [0], [0], [1], [0, 0, 1, 1], [], []>} : vector<8x128xf32>, vector<128x512xf32>, vector<8x512xf32> -> vector<8x512xf32>
    %140 = arith.addf %138, %139 : vector<8x512xf32>
    %141 = vector.extract_strided_slice %140 {offsets = [0, 0], sizes = [8, 128], strides = [1, 1]} : vector<8x512xf32> to vector<8x128xf32>
    %cst_54 = arith.constant 0.000000e+00 : f32
    %142 = vector.broadcast %cst_54 : f32 to vector<8x128xf32>
    %143 = arith.subf %142, %141 : vector<8x128xf32>
    %144 = math.exp %143 : vector<8x128xf32>
    %cst_55 = arith.constant 1.000000e+00 : f32
    %145 = vector.broadcast %cst_55 : f32 to vector<8x128xf32>
    %146 = arith.addf %145, %144 : vector<8x128xf32>
    %147 = tpu.reciprocal %146 : vector<8x128xf32> -> vector<8x128xf32>
    %148 = vector.extract_strided_slice %140 {offsets = [0, 128], sizes = [8, 128], strides = [1, 1]} : vector<8x512xf32> to vector<8x128xf32>
    %cst_56 = arith.constant 0.000000e+00 : f32
    %149 = vector.broadcast %cst_56 : f32 to vector<8x128xf32>
    %150 = arith.subf %149, %148 : vector<8x128xf32>
    %151 = math.exp %150 : vector<8x128xf32>
    %cst_57 = arith.constant 1.000000e+00 : f32
    %152 = vector.broadcast %cst_57 : f32 to vector<8x128xf32>
    %153 = arith.addf %152, %151 : vector<8x128xf32>
    %154 = tpu.reciprocal %153 : vector<8x128xf32> -> vector<8x128xf32>
    %155 = vector.extract_strided_slice %140 {offsets = [0, 256], sizes = [8, 128], strides = [1, 1]} : vector<8x512xf32> to vector<8x128xf32>
    %156 = math.tanh %155 : vector<8x128xf32>
    %157 = vector.extract_strided_slice %140 {offsets = [0, 384], sizes = [8, 128], strides = [1, 1]} : vector<8x512xf32> to vector<8x128xf32>
    %cst_58 = arith.constant 0.000000e+00 : f32
    %158 = vector.broadcast %cst_58 : f32 to vector<8x128xf32>
    %159 = arith.subf %158, %157 : vector<8x128xf32>
    %160 = math.exp %159 : vector<8x128xf32>
    %cst_59 = arith.constant 1.000000e+00 : f32
    %161 = vector.broadcast %cst_59 : f32 to vector<8x128xf32>
    %162 = arith.addf %161, %160 : vector<8x128xf32>
    %163 = tpu.reciprocal %162 : vector<8x128xf32> -> vector<8x128xf32>
    %164 = arith.mulf %154, %134 : vector<8x128xf32>
    %165 = arith.mulf %147, %156 : vector<8x128xf32>
    %166 = arith.addf %164, %165 : vector<8x128xf32>
    %167 = math.tanh %166 : vector<8x128xf32>
    %168 = arith.mulf %163, %167 : vector<8x128xf32>
    %c32_60 = arith.constant 32 : index
    %c0_61 = arith.constant 0 : index
    %169 = vector.load %arg11[%c32_60, %c0_61] : memref<64x128xf32, #tpu.memory_space<vmem>>, vector<8x128xf32>
    tpu.vector_store %arg11[%c32_60, %c0_61], %168 {strides = array<i32>} : memref<64x128xf32, #tpu.memory_space<vmem>>, vector<8x128xf32>,
    %c40 = arith.constant 40 : index
    %c0_62 = arith.constant 0 : index
    %170 = vector.load %arg10[%c40, %c0_62] : memref<64x512xf32, #tpu.memory_space<vmem>>, vector<8x512xf32>
    %cst_63 = arith.constant dense<0.000000e+00> : vector<8x512xf32>
    %171 = tpu.matmul %168, %7, %cst_63 {dimension_numbers = #tpu.dot_dimension_numbers<[1], [0], [0], [1], [0, 0, 1, 1], [], []>} : vector<8x128xf32>, vector<128x512xf32>, vector<8x512xf32> -> vector<8x512xf32>
    %172 = arith.addf %170, %171 : vector<8x512xf32>
    %173 = vector.extract_strided_slice %172 {offsets = [0, 0], sizes = [8, 128], strides = [1, 1]} : vector<8x512xf32> to vector<8x128xf32>
    %cst_64 = arith.constant 0.000000e+00 : f32
    %174 = vector.broadcast %cst_64 : f32 to vector<8x128xf32>
    %175 = arith.subf %174, %173 : vector<8x128xf32>
    %176 = math.exp %175 : vector<8x128xf32>
    %cst_65 = arith.constant 1.000000e+00 : f32
    %177 = vector.broadcast %cst_65 : f32 to vector<8x128xf32>
    %178 = arith.addf %177, %176 : vector<8x128xf32>
    %179 = tpu.reciprocal %178 : vector<8x128xf32> -> vector<8x128xf32>
    %180 = vector.extract_strided_slice %172 {offsets = [0, 128], sizes = [8, 128], strides = [1, 1]} : vector<8x512xf32> to vector<8x128xf32>
    %cst_66 = arith.constant 0.000000e+00 : f32
    %181 = vector.broadcast %cst_66 : f32 to vector<8x128xf32>
    %182 = arith.subf %181, %180 : vector<8x128xf32>
    %183 = math.exp %182 : vector<8x128xf32>
    %cst_67 = arith.constant 1.000000e+00 : f32
    %184 = vector.broadcast %cst_67 : f32 to vector<8x128xf32>
    %185 = arith.addf %184, %183 : vector<8x128xf32>
    %186 = tpu.reciprocal %185 : vector<8x128xf32> -> vector<8x128xf32>
    %187 = vector.extract_strided_slice %172 {offsets = [0, 256], sizes = [8, 128], strides = [1, 1]} : vector<8x512xf32> to vector<8x128xf32>
    %188 = math.tanh %187 : vector<8x128xf32>
    %189 = vector.extract_strided_slice %172 {offsets = [0, 384], sizes = [8, 128], strides = [1, 1]} : vector<8x512xf32> to vector<8x128xf32>
    %cst_68 = arith.constant 0.000000e+00 : f32
    %190 = vector.broadcast %cst_68 : f32 to vector<8x128xf32>
    %191 = arith.subf %190, %189 : vector<8x128xf32>
    %192 = math.exp %191 : vector<8x128xf32>
    %cst_69 = arith.constant 1.000000e+00 : f32
    %193 = vector.broadcast %cst_69 : f32 to vector<8x128xf32>
    %194 = arith.addf %193, %192 : vector<8x128xf32>
    %195 = tpu.reciprocal %194 : vector<8x128xf32> -> vector<8x128xf32>
    %196 = arith.mulf %186, %166 : vector<8x128xf32>
    %197 = arith.mulf %179, %188 : vector<8x128xf32>
    %198 = arith.addf %196, %197 : vector<8x128xf32>
    %199 = math.tanh %198 : vector<8x128xf32>
    %200 = arith.mulf %195, %199 : vector<8x128xf32>
    %c40_70 = arith.constant 40 : index
    %c0_71 = arith.constant 0 : index
    %201 = vector.load %arg11[%c40_70, %c0_71] : memref<64x128xf32, #tpu.memory_space<vmem>>, vector<8x128xf32>
    tpu.vector_store %arg11[%c40_70, %c0_71], %200 {strides = array<i32>} : memref<64x128xf32, #tpu.memory_space<vmem>>, vector<8x128xf32>,
    %c48 = arith.constant 48 : index
    %c0_72 = arith.constant 0 : index
    %202 = vector.load %arg10[%c48, %c0_72] : memref<64x512xf32, #tpu.memory_space<vmem>>, vector<8x512xf32>
    %cst_73 = arith.constant dense<0.000000e+00> : vector<8x512xf32>
    %203 = tpu.matmul %200, %7, %cst_73 {dimension_numbers = #tpu.dot_dimension_numbers<[1], [0], [0], [1], [0, 0, 1, 1], [], []>} : vector<8x128xf32>, vector<128x512xf32>, vector<8x512xf32> -> vector<8x512xf32>
    %204 = arith.addf %202, %203 : vector<8x512xf32>
    %205 = vector.extract_strided_slice %204 {offsets = [0, 0], sizes = [8, 128], strides = [1, 1]} : vector<8x512xf32> to vector<8x128xf32>
    %cst_74 = arith.constant 0.000000e+00 : f32
    %206 = vector.broadcast %cst_74 : f32 to vector<8x128xf32>
    %207 = arith.subf %206, %205 : vector<8x128xf32>
    %208 = math.exp %207 : vector<8x128xf32>
    %cst_75 = arith.constant 1.000000e+00 : f32
    %209 = vector.broadcast %cst_75 : f32 to vector<8x128xf32>
    %210 = arith.addf %209, %208 : vector<8x128xf32>
    %211 = tpu.reciprocal %210 : vector<8x128xf32> -> vector<8x128xf32>
    %212 = vector.extract_strided_slice %204 {offsets = [0, 128], sizes = [8, 128], strides = [1, 1]} : vector<8x512xf32> to vector<8x128xf32>
    %cst_76 = arith.constant 0.000000e+00 : f32
    %213 = vector.broadcast %cst_76 : f32 to vector<8x128xf32>
    %214 = arith.subf %213, %212 : vector<8x128xf32>
    %215 = math.exp %214 : vector<8x128xf32>
    %cst_77 = arith.constant 1.000000e+00 : f32
    %216 = vector.broadcast %cst_77 : f32 to vector<8x128xf32>
    %217 = arith.addf %216, %215 : vector<8x128xf32>
    %218 = tpu.reciprocal %217 : vector<8x128xf32> -> vector<8x128xf32>
    %219 = vector.extract_strided_slice %204 {offsets = [0, 256], sizes = [8, 128], strides = [1, 1]} : vector<8x512xf32> to vector<8x128xf32>
    %220 = math.tanh %219 : vector<8x128xf32>
    %221 = vector.extract_strided_slice %204 {offsets = [0, 384], sizes = [8, 128], strides = [1, 1]} : vector<8x512xf32> to vector<8x128xf32>
    %cst_78 = arith.constant 0.000000e+00 : f32
    %222 = vector.broadcast %cst_78 : f32 to vector<8x128xf32>
    %223 = arith.subf %222, %221 : vector<8x128xf32>
    %224 = math.exp %223 : vector<8x128xf32>
    %cst_79 = arith.constant 1.000000e+00 : f32
    %225 = vector.broadcast %cst_79 : f32 to vector<8x128xf32>
    %226 = arith.addf %225, %224 : vector<8x128xf32>
    %227 = tpu.reciprocal %226 : vector<8x128xf32> -> vector<8x128xf32>
    %228 = arith.mulf %218, %198 : vector<8x128xf32>
    %229 = arith.mulf %211, %220 : vector<8x128xf32>
    %230 = arith.addf %228, %229 : vector<8x128xf32>
    %231 = math.tanh %230 : vector<8x128xf32>
    %232 = arith.mulf %227, %231 : vector<8x128xf32>
    %c48_80 = arith.constant 48 : index
    %c0_81 = arith.constant 0 : index
    %233 = vector.load %arg11[%c48_80, %c0_81] : memref<64x128xf32, #tpu.memory_space<vmem>>, vector<8x128xf32>
    tpu.vector_store %arg11[%c48_80, %c0_81], %232 {strides = array<i32>} : memref<64x128xf32, #tpu.memory_space<vmem>>, vector<8x128xf32>,
    %c56 = arith.constant 56 : index
    %c0_82 = arith.constant 0 : index
    %234 = vector.load %arg10[%c56, %c0_82] : memref<64x512xf32, #tpu.memory_space<vmem>>, vector<8x512xf32>
    %cst_83 = arith.constant dense<0.000000e+00> : vector<8x512xf32>
    %235 = tpu.matmul %232, %7, %cst_83 {dimension_numbers = #tpu.dot_dimension_numbers<[1], [0], [0], [1], [0, 0, 1, 1], [], []>} : vector<8x128xf32>, vector<128x512xf32>, vector<8x512xf32> -> vector<8x512xf32>
    %236 = arith.addf %234, %235 : vector<8x512xf32>
    %237 = vector.extract_strided_slice %236 {offsets = [0, 0], sizes = [8, 128], strides = [1, 1]} : vector<8x512xf32> to vector<8x128xf32>
    %cst_84 = arith.constant 0.000000e+00 : f32
    %238 = vector.broadcast %cst_84 : f32 to vector<8x128xf32>
    %239 = arith.subf %238, %237 : vector<8x128xf32>
    %240 = math.exp %239 : vector<8x128xf32>
    %cst_85 = arith.constant 1.000000e+00 : f32
    %241 = vector.broadcast %cst_85 : f32 to vector<8x128xf32>
    %242 = arith.addf %241, %240 : vector<8x128xf32>
    %243 = tpu.reciprocal %242 : vector<8x128xf32> -> vector<8x128xf32>
    %244 = vector.extract_strided_slice %236 {offsets = [0, 128], sizes = [8, 128], strides = [1, 1]} : vector<8x512xf32> to vector<8x128xf32>
    %cst_86 = arith.constant 0.000000e+00 : f32
    %245 = vector.broadcast %cst_86 : f32 to vector<8x128xf32>
    %246 = arith.subf %245, %244 : vector<8x128xf32>
    %247 = math.exp %246 : vector<8x128xf32>
    %cst_87 = arith.constant 1.000000e+00 : f32
    %248 = vector.broadcast %cst_87 : f32 to vector<8x128xf32>
    %249 = arith.addf %248, %247 : vector<8x128xf32>
    %250 = tpu.reciprocal %249 : vector<8x128xf32> -> vector<8x128xf32>
    %251 = vector.extract_strided_slice %236 {offsets = [0, 256], sizes = [8, 128], strides = [1, 1]} : vector<8x512xf32> to vector<8x128xf32>
    %252 = math.tanh %251 : vector<8x128xf32>
    %253 = vector.extract_strided_slice %236 {offsets = [0, 384], sizes = [8, 128], strides = [1, 1]} : vector<8x512xf32> to vector<8x128xf32>
    %cst_88 = arith.constant 0.000000e+00 : f32
    %254 = vector.broadcast %cst_88 : f32 to vector<8x128xf32>
    %255 = arith.subf %254, %253 : vector<8x128xf32>
    %256 = math.exp %255 : vector<8x128xf32>
    %cst_89 = arith.constant 1.000000e+00 : f32
    %257 = vector.broadcast %cst_89 : f32 to vector<8x128xf32>
    %258 = arith.addf %257, %256 : vector<8x128xf32>
    %259 = tpu.reciprocal %258 : vector<8x128xf32> -> vector<8x128xf32>
    %260 = arith.mulf %250, %230 : vector<8x128xf32>
    %261 = arith.mulf %243, %252 : vector<8x128xf32>
    %262 = arith.addf %260, %261 : vector<8x128xf32>
    %263 = math.tanh %262 : vector<8x128xf32>
    %264 = arith.mulf %259, %263 : vector<8x128xf32>
    %c56_90 = arith.constant 56 : index
    %c0_91 = arith.constant 0 : index
    %265 = vector.load %arg11[%c56_90, %c0_91] : memref<64x128xf32, #tpu.memory_space<vmem>>, vector<8x128xf32>
    tpu.vector_store %arg11[%c56_90, %c0_91], %264 {strides = array<i32>} : memref<64x128xf32, #tpu.memory_space<vmem>>, vector<8x128xf32>,
    %c0_92 = arith.constant 0 : index
    %c0_93 = arith.constant 0 : index
    %266 = vector.load %arg11[%c0_92, %c0_93] : memref<64x128xf32, #tpu.memory_space<vmem>>, vector<64x128xf32>
    %c0_94 = arith.constant 0 : index
    %c0_95 = arith.constant 0 : index
    %267 = vector.load %arg4[%c0_94, %c0_95] : memref<128x512xf32, #tpu.memory_space<vmem>>, vector<128x512xf32>
    %cst_96 = arith.constant dense<0.000000e+00> : vector<64x512xf32>
    %268 = tpu.matmul %266, %267, %cst_96 {dimension_numbers = #tpu.dot_dimension_numbers<[1], [0], [0], [1], [0, 0, 1, 1], [], []>} : vector<64x128xf32>, vector<128x512xf32>, vector<64x512xf32> -> vector<64x512xf32>
    %c0_97 = arith.constant 0 : index
    %c0_98 = arith.constant 0 : index
    %269 = vector.load %arg6[%c0_97, %c0_98] : memref<1x512xf32, #tpu.memory_space<vmem>>, vector<1x512xf32>
    %270 = vector.broadcast %269 : vector<1x512xf32> to vector<64x512xf32>
    %271 = arith.addf %268, %270 : vector<64x512xf32>
    %c0_99 = arith.constant 0 : index
    %c0_100 = arith.constant 0 : index
    %272 = vector.load %arg10[%c0_99, %c0_100] : memref<64x512xf32, #tpu.memory_space<vmem>>, vector<64x512xf32>
    tpu.vector_store %arg10[%c0_99, %c0_100], %271 {strides = array<i32>} : memref<64x512xf32, #tpu.memory_space<vmem>>, vector<64x512xf32>,
    %c0_101 = arith.constant 0 : index
    %c0_102 = arith.constant 0 : index
    %273 = vector.load %arg5[%c0_101, %c0_102] : memref<128x512xf32, #tpu.memory_space<vmem>>, vector<128x512xf32>
    %cst_103 = arith.constant 0.000000e+00 : f32
    %274 = vector.broadcast %cst_103 : f32 to vector<8x128xf32>
    %cst_104 = arith.constant 0.000000e+00 : f32
    %275 = vector.broadcast %cst_104 : f32 to vector<8x128xf32>
    %c0_105 = arith.constant 0 : index
    %c0_106 = arith.constant 0 : index
    %276 = vector.load %arg10[%c0_105, %c0_106] : memref<64x512xf32, #tpu.memory_space<vmem>>, vector<8x512xf32>
    %cst_107 = arith.constant dense<0.000000e+00> : vector<8x512xf32>
    %277 = tpu.matmul %274, %273, %cst_107 {dimension_numbers = #tpu.dot_dimension_numbers<[1], [0], [0], [1], [0, 0, 1, 1], [], []>} : vector<8x128xf32>, vector<128x512xf32>, vector<8x512xf32> -> vector<8x512xf32>
    %278 = arith.addf %276, %277 : vector<8x512xf32>
    %279 = vector.extract_strided_slice %278 {offsets = [0, 0], sizes = [8, 128], strides = [1, 1]} : vector<8x512xf32> to vector<8x128xf32>
    %cst_108 = arith.constant 0.000000e+00 : f32
    %280 = vector.broadcast %cst_108 : f32 to vector<8x128xf32>
    %281 = arith.subf %280, %279 : vector<8x128xf32>
    %282 = math.exp %281 : vector<8x128xf32>
    %cst_109 = arith.constant 1.000000e+00 : f32
    %283 = vector.broadcast %cst_109 : f32 to vector<8x128xf32>
    %284 = arith.addf %283, %282 : vector<8x128xf32>
    %285 = tpu.reciprocal %284 : vector<8x128xf32> -> vector<8x128xf32>
    %286 = vector.extract_strided_slice %278 {offsets = [0, 128], sizes = [8, 128], strides = [1, 1]} : vector<8x512xf32> to vector<8x128xf32>
    %cst_110 = arith.constant 0.000000e+00 : f32
    %287 = vector.broadcast %cst_110 : f32 to vector<8x128xf32>
    %288 = arith.subf %287, %286 : vector<8x128xf32>
    %289 = math.exp %288 : vector<8x128xf32>
    %cst_111 = arith.constant 1.000000e+00 : f32
    %290 = vector.broadcast %cst_111 : f32 to vector<8x128xf32>
    %291 = arith.addf %290, %289 : vector<8x128xf32>
    %292 = tpu.reciprocal %291 : vector<8x128xf32> -> vector<8x128xf32>
    %293 = vector.extract_strided_slice %278 {offsets = [0, 256], sizes = [8, 128], strides = [1, 1]} : vector<8x512xf32> to vector<8x128xf32>
    %294 = math.tanh %293 : vector<8x128xf32>
    %295 = vector.extract_strided_slice %278 {offsets = [0, 384], sizes = [8, 128], strides = [1, 1]} : vector<8x512xf32> to vector<8x128xf32>
    %cst_112 = arith.constant 0.000000e+00 : f32
    %296 = vector.broadcast %cst_112 : f32 to vector<8x128xf32>
    %297 = arith.subf %296, %295 : vector<8x128xf32>
    %298 = math.exp %297 : vector<8x128xf32>
    %cst_113 = arith.constant 1.000000e+00 : f32
    %299 = vector.broadcast %cst_113 : f32 to vector<8x128xf32>
    %300 = arith.addf %299, %298 : vector<8x128xf32>
    %301 = tpu.reciprocal %300 : vector<8x128xf32> -> vector<8x128xf32>
    %302 = arith.mulf %292, %275 : vector<8x128xf32>
    %303 = arith.mulf %285, %294 : vector<8x128xf32>
    %304 = arith.addf %302, %303 : vector<8x128xf32>
    %305 = math.tanh %304 : vector<8x128xf32>
    %306 = arith.mulf %301, %305 : vector<8x128xf32>
    %c8_114 = arith.constant 8 : index
    %c0_115 = arith.constant 0 : index
    %307 = vector.load %arg10[%c8_114, %c0_115] : memref<64x512xf32, #tpu.memory_space<vmem>>, vector<8x512xf32>
    %cst_116 = arith.constant dense<0.000000e+00> : vector<8x512xf32>
    %308 = tpu.matmul %306, %273, %cst_116 {dimension_numbers = #tpu.dot_dimension_numbers<[1], [0], [0], [1], [0, 0, 1, 1], [], []>} : vector<8x128xf32>, vector<128x512xf32>, vector<8x512xf32> -> vector<8x512xf32>
    %309 = arith.addf %307, %308 : vector<8x512xf32>
    %310 = vector.extract_strided_slice %309 {offsets = [0, 0], sizes = [8, 128], strides = [1, 1]} : vector<8x512xf32> to vector<8x128xf32>
    %cst_117 = arith.constant 0.000000e+00 : f32
    %311 = vector.broadcast %cst_117 : f32 to vector<8x128xf32>
    %312 = arith.subf %311, %310 : vector<8x128xf32>
    %313 = math.exp %312 : vector<8x128xf32>
    %cst_118 = arith.constant 1.000000e+00 : f32
    %314 = vector.broadcast %cst_118 : f32 to vector<8x128xf32>
    %315 = arith.addf %314, %313 : vector<8x128xf32>
    %316 = tpu.reciprocal %315 : vector<8x128xf32> -> vector<8x128xf32>
    %317 = vector.extract_strided_slice %309 {offsets = [0, 128], sizes = [8, 128], strides = [1, 1]} : vector<8x512xf32> to vector<8x128xf32>
    %cst_119 = arith.constant 0.000000e+00 : f32
    %318 = vector.broadcast %cst_119 : f32 to vector<8x128xf32>
    %319 = arith.subf %318, %317 : vector<8x128xf32>
    %320 = math.exp %319 : vector<8x128xf32>
    %cst_120 = arith.constant 1.000000e+00 : f32
    %321 = vector.broadcast %cst_120 : f32 to vector<8x128xf32>
    %322 = arith.addf %321, %320 : vector<8x128xf32>
    %323 = tpu.reciprocal %322 : vector<8x128xf32> -> vector<8x128xf32>
    %324 = vector.extract_strided_slice %309 {offsets = [0, 256], sizes = [8, 128], strides = [1, 1]} : vector<8x512xf32> to vector<8x128xf32>
    %325 = math.tanh %324 : vector<8x128xf32>
    %326 = vector.extract_strided_slice %309 {offsets = [0, 384], sizes = [8, 128], strides = [1, 1]} : vector<8x512xf32> to vector<8x128xf32>
    %cst_121 = arith.constant 0.000000e+00 : f32
    %327 = vector.broadcast %cst_121 : f32 to vector<8x128xf32>
    %328 = arith.subf %327, %326 : vector<8x128xf32>
    %329 = math.exp %328 : vector<8x128xf32>
    %cst_122 = arith.constant 1.000000e+00 : f32
    %330 = vector.broadcast %cst_122 : f32 to vector<8x128xf32>
    %331 = arith.addf %330, %329 : vector<8x128xf32>
    %332 = tpu.reciprocal %331 : vector<8x128xf32> -> vector<8x128xf32>
    %333 = arith.mulf %323, %304 : vector<8x128xf32>
    %334 = arith.mulf %316, %325 : vector<8x128xf32>
    %335 = arith.addf %333, %334 : vector<8x128xf32>
    %336 = math.tanh %335 : vector<8x128xf32>
    %337 = arith.mulf %332, %336 : vector<8x128xf32>
    %c16_123 = arith.constant 16 : index
    %c0_124 = arith.constant 0 : index
    %338 = vector.load %arg10[%c16_123, %c0_124] : memref<64x512xf32, #tpu.memory_space<vmem>>, vector<8x512xf32>
    %cst_125 = arith.constant dense<0.000000e+00> : vector<8x512xf32>
    %339 = tpu.matmul %337, %273, %cst_125 {dimension_numbers = #tpu.dot_dimension_numbers<[1], [0], [0], [1], [0, 0, 1, 1], [], []>} : vector<8x128xf32>, vector<128x512xf32>, vector<8x512xf32> -> vector<8x512xf32>
    %340 = arith.addf %338, %339 : vector<8x512xf32>
    %341 = vector.extract_strided_slice %340 {offsets = [0, 0], sizes = [8, 128], strides = [1, 1]} : vector<8x512xf32> to vector<8x128xf32>
    %cst_126 = arith.constant 0.000000e+00 : f32
    %342 = vector.broadcast %cst_126 : f32 to vector<8x128xf32>
    %343 = arith.subf %342, %341 : vector<8x128xf32>
    %344 = math.exp %343 : vector<8x128xf32>
    %cst_127 = arith.constant 1.000000e+00 : f32
    %345 = vector.broadcast %cst_127 : f32 to vector<8x128xf32>
    %346 = arith.addf %345, %344 : vector<8x128xf32>
    %347 = tpu.reciprocal %346 : vector<8x128xf32> -> vector<8x128xf32>
    %348 = vector.extract_strided_slice %340 {offsets = [0, 128], sizes = [8, 128], strides = [1, 1]} : vector<8x512xf32> to vector<8x128xf32>
    %cst_128 = arith.constant 0.000000e+00 : f32
    %349 = vector.broadcast %cst_128 : f32 to vector<8x128xf32>
    %350 = arith.subf %349, %348 : vector<8x128xf32>
    %351 = math.exp %350 : vector<8x128xf32>
    %cst_129 = arith.constant 1.000000e+00 : f32
    %352 = vector.broadcast %cst_129 : f32 to vector<8x128xf32>
    %353 = arith.addf %352, %351 : vector<8x128xf32>
    %354 = tpu.reciprocal %353 : vector<8x128xf32> -> vector<8x128xf32>
    %355 = vector.extract_strided_slice %340 {offsets = [0, 256], sizes = [8, 128], strides = [1, 1]} : vector<8x512xf32> to vector<8x128xf32>
    %356 = math.tanh %355 : vector<8x128xf32>
    %357 = vector.extract_strided_slice %340 {offsets = [0, 384], sizes = [8, 128], strides = [1, 1]} : vector<8x512xf32> to vector<8x128xf32>
    %cst_130 = arith.constant 0.000000e+00 : f32
    %358 = vector.broadcast %cst_130 : f32 to vector<8x128xf32>
    %359 = arith.subf %358, %357 : vector<8x128xf32>
    %360 = math.exp %359 : vector<8x128xf32>
    %cst_131 = arith.constant 1.000000e+00 : f32
    %361 = vector.broadcast %cst_131 : f32 to vector<8x128xf32>
    %362 = arith.addf %361, %360 : vector<8x128xf32>
    %363 = tpu.reciprocal %362 : vector<8x128xf32> -> vector<8x128xf32>
    %364 = arith.mulf %354, %335 : vector<8x128xf32>
    %365 = arith.mulf %347, %356 : vector<8x128xf32>
    %366 = arith.addf %364, %365 : vector<8x128xf32>
    %367 = math.tanh %366 : vector<8x128xf32>
    %368 = arith.mulf %363, %367 : vector<8x128xf32>
    %c24_132 = arith.constant 24 : index
    %c0_133 = arith.constant 0 : index
    %369 = vector.load %arg10[%c24_132, %c0_133] : memref<64x512xf32, #tpu.memory_space<vmem>>, vector<8x512xf32>
    %cst_134 = arith.constant dense<0.000000e+00> : vector<8x512xf32>
    %370 = tpu.matmul %368, %273, %cst_134 {dimension_numbers = #tpu.dot_dimension_numbers<[1], [0], [0], [1], [0, 0, 1, 1], [], []>} : vector<8x128xf32>, vector<128x512xf32>, vector<8x512xf32> -> vector<8x512xf32>
    %371 = arith.addf %369, %370 : vector<8x512xf32>
    %372 = vector.extract_strided_slice %371 {offsets = [0, 0], sizes = [8, 128], strides = [1, 1]} : vector<8x512xf32> to vector<8x128xf32>
    %cst_135 = arith.constant 0.000000e+00 : f32
    %373 = vector.broadcast %cst_135 : f32 to vector<8x128xf32>
    %374 = arith.subf %373, %372 : vector<8x128xf32>
    %375 = math.exp %374 : vector<8x128xf32>
    %cst_136 = arith.constant 1.000000e+00 : f32
    %376 = vector.broadcast %cst_136 : f32 to vector<8x128xf32>
    %377 = arith.addf %376, %375 : vector<8x128xf32>
    %378 = tpu.reciprocal %377 : vector<8x128xf32> -> vector<8x128xf32>
    %379 = vector.extract_strided_slice %371 {offsets = [0, 128], sizes = [8, 128], strides = [1, 1]} : vector<8x512xf32> to vector<8x128xf32>
    %cst_137 = arith.constant 0.000000e+00 : f32
    %380 = vector.broadcast %cst_137 : f32 to vector<8x128xf32>
    %381 = arith.subf %380, %379 : vector<8x128xf32>
    %382 = math.exp %381 : vector<8x128xf32>
    %cst_138 = arith.constant 1.000000e+00 : f32
    %383 = vector.broadcast %cst_138 : f32 to vector<8x128xf32>
    %384 = arith.addf %383, %382 : vector<8x128xf32>
    %385 = tpu.reciprocal %384 : vector<8x128xf32> -> vector<8x128xf32>
    %386 = vector.extract_strided_slice %371 {offsets = [0, 256], sizes = [8, 128], strides = [1, 1]} : vector<8x512xf32> to vector<8x128xf32>
    %387 = math.tanh %386 : vector<8x128xf32>
    %388 = vector.extract_strided_slice %371 {offsets = [0, 384], sizes = [8, 128], strides = [1, 1]} : vector<8x512xf32> to vector<8x128xf32>
    %cst_139 = arith.constant 0.000000e+00 : f32
    %389 = vector.broadcast %cst_139 : f32 to vector<8x128xf32>
    %390 = arith.subf %389, %388 : vector<8x128xf32>
    %391 = math.exp %390 : vector<8x128xf32>
    %cst_140 = arith.constant 1.000000e+00 : f32
    %392 = vector.broadcast %cst_140 : f32 to vector<8x128xf32>
    %393 = arith.addf %392, %391 : vector<8x128xf32>
    %394 = tpu.reciprocal %393 : vector<8x128xf32> -> vector<8x128xf32>
    %395 = arith.mulf %385, %366 : vector<8x128xf32>
    %396 = arith.mulf %378, %387 : vector<8x128xf32>
    %397 = arith.addf %395, %396 : vector<8x128xf32>
    %398 = math.tanh %397 : vector<8x128xf32>
    %399 = arith.mulf %394, %398 : vector<8x128xf32>
    %c32_141 = arith.constant 32 : index
    %c0_142 = arith.constant 0 : index
    %400 = vector.load %arg10[%c32_141, %c0_142] : memref<64x512xf32, #tpu.memory_space<vmem>>, vector<8x512xf32>
    %cst_143 = arith.constant dense<0.000000e+00> : vector<8x512xf32>
    %401 = tpu.matmul %399, %273, %cst_143 {dimension_numbers = #tpu.dot_dimension_numbers<[1], [0], [0], [1], [0, 0, 1, 1], [], []>} : vector<8x128xf32>, vector<128x512xf32>, vector<8x512xf32> -> vector<8x512xf32>
    %402 = arith.addf %400, %401 : vector<8x512xf32>
    %403 = vector.extract_strided_slice %402 {offsets = [0, 0], sizes = [8, 128], strides = [1, 1]} : vector<8x512xf32> to vector<8x128xf32>
    %cst_144 = arith.constant 0.000000e+00 : f32
    %404 = vector.broadcast %cst_144 : f32 to vector<8x128xf32>
    %405 = arith.subf %404, %403 : vector<8x128xf32>
    %406 = math.exp %405 : vector<8x128xf32>
    %cst_145 = arith.constant 1.000000e+00 : f32
    %407 = vector.broadcast %cst_145 : f32 to vector<8x128xf32>
    %408 = arith.addf %407, %406 : vector<8x128xf32>
    %409 = tpu.reciprocal %408 : vector<8x128xf32> -> vector<8x128xf32>
    %410 = vector.extract_strided_slice %402 {offsets = [0, 128], sizes = [8, 128], strides = [1, 1]} : vector<8x512xf32> to vector<8x128xf32>
    %cst_146 = arith.constant 0.000000e+00 : f32
    %411 = vector.broadcast %cst_146 : f32 to vector<8x128xf32>
    %412 = arith.subf %411, %410 : vector<8x128xf32>
    %413 = math.exp %412 : vector<8x128xf32>
    %cst_147 = arith.constant 1.000000e+00 : f32
    %414 = vector.broadcast %cst_147 : f32 to vector<8x128xf32>
    %415 = arith.addf %414, %413 : vector<8x128xf32>
    %416 = tpu.reciprocal %415 : vector<8x128xf32> -> vector<8x128xf32>
    %417 = vector.extract_strided_slice %402 {offsets = [0, 256], sizes = [8, 128], strides = [1, 1]} : vector<8x512xf32> to vector<8x128xf32>
    %418 = math.tanh %417 : vector<8x128xf32>
    %419 = vector.extract_strided_slice %402 {offsets = [0, 384], sizes = [8, 128], strides = [1, 1]} : vector<8x512xf32> to vector<8x128xf32>
    %cst_148 = arith.constant 0.000000e+00 : f32
    %420 = vector.broadcast %cst_148 : f32 to vector<8x128xf32>
    %421 = arith.subf %420, %419 : vector<8x128xf32>
    %422 = math.exp %421 : vector<8x128xf32>
    %cst_149 = arith.constant 1.000000e+00 : f32
    %423 = vector.broadcast %cst_149 : f32 to vector<8x128xf32>
    %424 = arith.addf %423, %422 : vector<8x128xf32>
    %425 = tpu.reciprocal %424 : vector<8x128xf32> -> vector<8x128xf32>
    %426 = arith.mulf %416, %397 : vector<8x128xf32>
    %427 = arith.mulf %409, %418 : vector<8x128xf32>
    %428 = arith.addf %426, %427 : vector<8x128xf32>
    %429 = math.tanh %428 : vector<8x128xf32>
    %430 = arith.mulf %425, %429 : vector<8x128xf32>
    %c40_150 = arith.constant 40 : index
    %c0_151 = arith.constant 0 : index
    %431 = vector.load %arg10[%c40_150, %c0_151] : memref<64x512xf32, #tpu.memory_space<vmem>>, vector<8x512xf32>
    %cst_152 = arith.constant dense<0.000000e+00> : vector<8x512xf32>
    %432 = tpu.matmul %430, %273, %cst_152 {dimension_numbers = #tpu.dot_dimension_numbers<[1], [0], [0], [1], [0, 0, 1, 1], [], []>} : vector<8x128xf32>, vector<128x512xf32>, vector<8x512xf32> -> vector<8x512xf32>
    %433 = arith.addf %431, %432 : vector<8x512xf32>
    %434 = vector.extract_strided_slice %433 {offsets = [0, 0], sizes = [8, 128], strides = [1, 1]} : vector<8x512xf32> to vector<8x128xf32>
    %cst_153 = arith.constant 0.000000e+00 : f32
    %435 = vector.broadcast %cst_153 : f32 to vector<8x128xf32>
    %436 = arith.subf %435, %434 : vector<8x128xf32>
    %437 = math.exp %436 : vector<8x128xf32>
    %cst_154 = arith.constant 1.000000e+00 : f32
    %438 = vector.broadcast %cst_154 : f32 to vector<8x128xf32>
    %439 = arith.addf %438, %437 : vector<8x128xf32>
    %440 = tpu.reciprocal %439 : vector<8x128xf32> -> vector<8x128xf32>
    %441 = vector.extract_strided_slice %433 {offsets = [0, 128], sizes = [8, 128], strides = [1, 1]} : vector<8x512xf32> to vector<8x128xf32>
    %cst_155 = arith.constant 0.000000e+00 : f32
    %442 = vector.broadcast %cst_155 : f32 to vector<8x128xf32>
    %443 = arith.subf %442, %441 : vector<8x128xf32>
    %444 = math.exp %443 : vector<8x128xf32>
    %cst_156 = arith.constant 1.000000e+00 : f32
    %445 = vector.broadcast %cst_156 : f32 to vector<8x128xf32>
    %446 = arith.addf %445, %444 : vector<8x128xf32>
    %447 = tpu.reciprocal %446 : vector<8x128xf32> -> vector<8x128xf32>
    %448 = vector.extract_strided_slice %433 {offsets = [0, 256], sizes = [8, 128], strides = [1, 1]} : vector<8x512xf32> to vector<8x128xf32>
    %449 = math.tanh %448 : vector<8x128xf32>
    %450 = vector.extract_strided_slice %433 {offsets = [0, 384], sizes = [8, 128], strides = [1, 1]} : vector<8x512xf32> to vector<8x128xf32>
    %cst_157 = arith.constant 0.000000e+00 : f32
    %451 = vector.broadcast %cst_157 : f32 to vector<8x128xf32>
    %452 = arith.subf %451, %450 : vector<8x128xf32>
    %453 = math.exp %452 : vector<8x128xf32>
    %cst_158 = arith.constant 1.000000e+00 : f32
    %454 = vector.broadcast %cst_158 : f32 to vector<8x128xf32>
    %455 = arith.addf %454, %453 : vector<8x128xf32>
    %456 = tpu.reciprocal %455 : vector<8x128xf32> -> vector<8x128xf32>
    %457 = arith.mulf %447, %428 : vector<8x128xf32>
    %458 = arith.mulf %440, %449 : vector<8x128xf32>
    %459 = arith.addf %457, %458 : vector<8x128xf32>
    %460 = math.tanh %459 : vector<8x128xf32>
    %461 = arith.mulf %456, %460 : vector<8x128xf32>
    %c48_159 = arith.constant 48 : index
    %c0_160 = arith.constant 0 : index
    %462 = vector.load %arg10[%c48_159, %c0_160] : memref<64x512xf32, #tpu.memory_space<vmem>>, vector<8x512xf32>
    %cst_161 = arith.constant dense<0.000000e+00> : vector<8x512xf32>
    %463 = tpu.matmul %461, %273, %cst_161 {dimension_numbers = #tpu.dot_dimension_numbers<[1], [0], [0], [1], [0, 0, 1, 1], [], []>} : vector<8x128xf32>, vector<128x512xf32>, vector<8x512xf32> -> vector<8x512xf32>
    %464 = arith.addf %462, %463 : vector<8x512xf32>
    %465 = vector.extract_strided_slice %464 {offsets = [0, 0], sizes = [8, 128], strides = [1, 1]} : vector<8x512xf32> to vector<8x128xf32>
    %cst_162 = arith.constant 0.000000e+00 : f32
    %466 = vector.broadcast %cst_162 : f32 to vector<8x128xf32>
    %467 = arith.subf %466, %465 : vector<8x128xf32>
    %468 = math.exp %467 : vector<8x128xf32>
    %cst_163 = arith.constant 1.000000e+00 : f32
    %469 = vector.broadcast %cst_163 : f32 to vector<8x128xf32>
    %470 = arith.addf %469, %468 : vector<8x128xf32>
    %471 = tpu.reciprocal %470 : vector<8x128xf32> -> vector<8x128xf32>
    %472 = vector.extract_strided_slice %464 {offsets = [0, 128], sizes = [8, 128], strides = [1, 1]} : vector<8x512xf32> to vector<8x128xf32>
    %cst_164 = arith.constant 0.000000e+00 : f32
    %473 = vector.broadcast %cst_164 : f32 to vector<8x128xf32>
    %474 = arith.subf %473, %472 : vector<8x128xf32>
    %475 = math.exp %474 : vector<8x128xf32>
    %cst_165 = arith.constant 1.000000e+00 : f32
    %476 = vector.broadcast %cst_165 : f32 to vector<8x128xf32>
    %477 = arith.addf %476, %475 : vector<8x128xf32>
    %478 = tpu.reciprocal %477 : vector<8x128xf32> -> vector<8x128xf32>
    %479 = vector.extract_strided_slice %464 {offsets = [0, 256], sizes = [8, 128], strides = [1, 1]} : vector<8x512xf32> to vector<8x128xf32>
    %480 = math.tanh %479 : vector<8x128xf32>
    %481 = vector.extract_strided_slice %464 {offsets = [0, 384], sizes = [8, 128], strides = [1, 1]} : vector<8x512xf32> to vector<8x128xf32>
    %cst_166 = arith.constant 0.000000e+00 : f32
    %482 = vector.broadcast %cst_166 : f32 to vector<8x128xf32>
    %483 = arith.subf %482, %481 : vector<8x128xf32>
    %484 = math.exp %483 : vector<8x128xf32>
    %cst_167 = arith.constant 1.000000e+00 : f32
    %485 = vector.broadcast %cst_167 : f32 to vector<8x128xf32>
    %486 = arith.addf %485, %484 : vector<8x128xf32>
    %487 = tpu.reciprocal %486 : vector<8x128xf32> -> vector<8x128xf32>
    %488 = arith.mulf %478, %459 : vector<8x128xf32>
    %489 = arith.mulf %471, %480 : vector<8x128xf32>
    %490 = arith.addf %488, %489 : vector<8x128xf32>
    %491 = math.tanh %490 : vector<8x128xf32>
    %492 = arith.mulf %487, %491 : vector<8x128xf32>
    %c56_168 = arith.constant 56 : index
    %c0_169 = arith.constant 0 : index
    %493 = vector.load %arg10[%c56_168, %c0_169] : memref<64x512xf32, #tpu.memory_space<vmem>>, vector<8x512xf32>
    %cst_170 = arith.constant dense<0.000000e+00> : vector<8x512xf32>
    %494 = tpu.matmul %492, %273, %cst_170 {dimension_numbers = #tpu.dot_dimension_numbers<[1], [0], [0], [1], [0, 0, 1, 1], [], []>} : vector<8x128xf32>, vector<128x512xf32>, vector<8x512xf32> -> vector<8x512xf32>
    %495 = arith.addf %493, %494 : vector<8x512xf32>
    %496 = vector.extract_strided_slice %495 {offsets = [0, 0], sizes = [8, 128], strides = [1, 1]} : vector<8x512xf32> to vector<8x128xf32>
    %cst_171 = arith.constant 0.000000e+00 : f32
    %497 = vector.broadcast %cst_171 : f32 to vector<8x128xf32>
    %498 = arith.subf %497, %496 : vector<8x128xf32>
    %499 = math.exp %498 : vector<8x128xf32>
    %cst_172 = arith.constant 1.000000e+00 : f32
    %500 = vector.broadcast %cst_172 : f32 to vector<8x128xf32>
    %501 = arith.addf %500, %499 : vector<8x128xf32>
    %502 = tpu.reciprocal %501 : vector<8x128xf32> -> vector<8x128xf32>
    %503 = vector.extract_strided_slice %495 {offsets = [0, 128], sizes = [8, 128], strides = [1, 1]} : vector<8x512xf32> to vector<8x128xf32>
    %cst_173 = arith.constant 0.000000e+00 : f32
    %504 = vector.broadcast %cst_173 : f32 to vector<8x128xf32>
    %505 = arith.subf %504, %503 : vector<8x128xf32>
    %506 = math.exp %505 : vector<8x128xf32>
    %cst_174 = arith.constant 1.000000e+00 : f32
    %507 = vector.broadcast %cst_174 : f32 to vector<8x128xf32>
    %508 = arith.addf %507, %506 : vector<8x128xf32>
    %509 = tpu.reciprocal %508 : vector<8x128xf32> -> vector<8x128xf32>
    %510 = vector.extract_strided_slice %495 {offsets = [0, 256], sizes = [8, 128], strides = [1, 1]} : vector<8x512xf32> to vector<8x128xf32>
    %511 = math.tanh %510 : vector<8x128xf32>
    %512 = vector.extract_strided_slice %495 {offsets = [0, 384], sizes = [8, 128], strides = [1, 1]} : vector<8x512xf32> to vector<8x128xf32>
    %cst_175 = arith.constant 0.000000e+00 : f32
    %513 = vector.broadcast %cst_175 : f32 to vector<8x128xf32>
    %514 = arith.subf %513, %512 : vector<8x128xf32>
    %515 = math.exp %514 : vector<8x128xf32>
    %cst_176 = arith.constant 1.000000e+00 : f32
    %516 = vector.broadcast %cst_176 : f32 to vector<8x128xf32>
    %517 = arith.addf %516, %515 : vector<8x128xf32>
    %518 = tpu.reciprocal %517 : vector<8x128xf32> -> vector<8x128xf32>
    %519 = arith.mulf %509, %490 : vector<8x128xf32>
    %520 = arith.mulf %502, %511 : vector<8x128xf32>
    %521 = arith.addf %519, %520 : vector<8x128xf32>
    %522 = math.tanh %521 : vector<8x128xf32>
    %523 = arith.mulf %518, %522 : vector<8x128xf32>
    %c0_177 = arith.constant 0 : index
    %c0_178 = arith.constant 0 : index
    %524 = vector.load %arg7[%c0_177, %c0_178] : memref<128x128xf32, #tpu.memory_space<vmem>>, vector<128x128xf32>
    %cst_179 = arith.constant dense<0.000000e+00> : vector<8x128xf32>
    %525 = tpu.matmul %523, %524, %cst_179 {dimension_numbers = #tpu.dot_dimension_numbers<[1], [0], [0], [1], [0, 0, 1, 1], [], []>} : vector<8x128xf32>, vector<128x128xf32>, vector<8x128xf32> -> vector<8x128xf32>
    %c0_180 = arith.constant 0 : index
    %c0_181 = arith.constant 0 : index
    %526 = vector.load %arg8[%c0_180, %c0_181] : memref<1x128xf32, #tpu.memory_space<vmem>>, vector<1x128xf32>
    %527 = vector.broadcast %526 : vector<1x128xf32> to vector<8x128xf32>
    %528 = arith.addf %525, %527 : vector<8x128xf32>
    %c0_182 = arith.constant 0 : index
    %c0_183 = arith.constant 0 : index
    %529 = vector.load %arg9[%c0_182, %c0_183] : memref<8x128xf32, #tpu.memory_space<vmem>>, vector<8x128xf32>
    tpu.vector_store %arg9[%c0_182, %c0_183], %528 {strides = array<i32>} : memref<8x128xf32, #tpu.memory_space<vmem>>, vector<8x128xf32>,
    return
  }
}

</mosaic_0001>

<bundles_post_ra>
// kernel: tpu_custom_call.1
= control target key start
LH: loop header
LB: loop body
LE: loop exit
PB: predicated region body
PF: predicated region fallthrough
CT: control target
= control target key end

     0   :  { %14 = vsyncpa [#allocation5], 0  ;;  %s5880_s0 = inlined_call_operand.vmem [shape: f32[64,16], index: 0, kind: input, shape index: {}]   ;;  %s5881_s1 = inlined_call_operand.vmem [shape: f32[16,512], index: 1, kind: input, shape index: {}]   ;;  %s5882_s2 = inlined_call_operand.hbm [shape: f32[128,512], index: 2, kind: input, shape index: {}]   ;;  %s5883_s3 = inlined_call_operand.vmem [shape: f32[1,512], index: 3, kind: input, shape index: {}]   ;;  %s5884_s4 = inlined_call_operand.hbm [shape: f32[128,512], index: 4, kind: input, shape index: {}]   ;;  %s5885_s5 = inlined_call_operand.hbm [shape: f32[128,512], index: 5, kind: input, shape index: {}]   ;;  %s5886_s6 = inlined_call_operand.vmem [shape: f32[1,512], index: 6, kind: input, shape index: {}]   ;;  %s5887_s7 = inlined_call_operand.hbm [shape: f32[128,128], index: 7, kind: input, shape index: {}]   ;;  %s5888_s8 = inlined_call_operand.vmem [shape: f32[1,128], index: 8, kind: input, shape index: {}]   ;;  %s5889_s9 = inlined_call_operand.hbm [shape: f32[8,128], index: 9, kind: output, shape index: {}]  }
   0x1   :  { %15 = vsyncpa [#allocation8], 0 }
   0x2   :  { %16 = vsyncpa [#allocation11], 0 }
   0x3   :  { %17 = vsyncpa [#allocation6], 0  ;;  %s41_s11 = sshll.u32 %s5884_s4, 4  ;;  %s3746_s12 = smov [#allocation7]   ;;  %s42_s11 = int_to_ptr.hbm [resolvable:$true] %s41_s11 }
   0x4   :  { %s43_s13 = sshll.u32 %s3746_s12, 4  ;;  %s26_s16 = sshll.u32 %s5882_s2, 4  ;;  %s44_s13 = int_to_ptr.vmem [resolvable:$true] %s43_s13  ;;  %s27_s16 = int_to_ptr.hbm [resolvable:$true] %s26_s16 }
   0x5   :  { %s3747_s17 = smov 512   ;;  %s3748_s18 = smov 32  }
   0x6   :  { %49 = dma.hbm_to_vmem [thread:$0]  %s42_s11, 8192, %s44_s13, [#allocation8], %s3747_s17, %s3747_s17, %s3748_s18  }
   0x7   :  { %s3749_s19 = smov [#allocation4]   ;;  %s54_s23 = sshll.u32 %s5885_s5, 4  ;;  %s55_s23 = int_to_ptr.hbm [resolvable:$true] %s54_s23 }
   0x8   :  { %s28_s20 = sshll.u32 %s3749_s19, 4  ;;  %s69_s25 = sshll.u32 %s5887_s7, 4  ;;  %s29_s20 = int_to_ptr.vmem [resolvable:$true] %s28_s20  ;;  %s70_s25 = int_to_ptr.hbm [resolvable:$true] %s69_s25 }
   0x9   :  { %34 = dma.hbm_to_vmem [thread:$0]  %s27_s16, 8192, %s29_s20, [#allocation5], %s3747_s17, %s3747_s17, %s3748_s18  }
   0xa   :  { %s3750_s26 = smov [#allocation9]   ;;  %s3751_s2 = smov [#allocation10]  }
   0xb   :  { %s56_s27 = sshll.u32 %s3750_s26, 4  ;;  %s71_s28 = sshll.u32 %s3751_s2, 4  ;;  %s57_s27 = int_to_ptr.vmem [resolvable:$true] %s56_s27  ;;  %s72_s28 = int_to_ptr.vmem [resolvable:$true] %s71_s28 }
   0xc   :  { %62 = dma.hbm_to_vmem [thread:$0]  %s55_s23, 8192, %s57_s27, [#allocation8], %s3747_s17, %s3747_s17, %s3748_s18  }
   0xd   :  { %s3752_s29 = smov 128   ;;  %s3753_s30 = smov 8  }
   0xe   :  { %77 = dma.hbm_to_vmem [thread:$0]  %s70_s25, 2048, %s72_s28, [#allocation11], %s3752_s29, %s3752_s29, %s3753_s30  }
   0xf   :  { %3738 = dma.done.wait [#allocation5], 8192  }
  0x10   :  { %3739 = vsyncadd [#allocation5], 4294959104 }
  0x11   :  { %3740 = dma.done.wait [#allocation8], 16384  }
  0x12   :  { %3741 = vsyncadd [#allocation8], 4294950912 }
  0x13   :  { %3742 = dma.done.wait [#allocation11], 2048  }
  0x14   :  { %3743 = vsyncadd [#allocation11], 4294965248  ;;  %v108_v0 = vld [vmem:[%s5881_s1 + $0x20] sm:$0xff]  ;;  %vm122_vm0 = vcmask 130048   ;;  %v3830_v3 = vld [vmem:[%s5880_s0 + $0x28] sm:$0xff]  ;;  %s3755_s17 = smov [#allocation12]  }
  0x15   :  { %v104_v1 = vld [vmem:[%s5881_s1] sm:$0xff]  ;;  %161 = vmatpush.msra.mxu0 %v108_v0  ;;  %3217 = vmatpush.msra.mxu1 %v108_v0  ;;  %v3835_v4 = vld [vmem:[%s5880_s0 + $0x30] sm:$0xff]  ;;  %v3840_v5 = vld [vmem:[%s5880_s0 + $0x38] sm:$0xff]  ;;  %s3171_s18 = sshll.u32 %s3755_s17, 4  ;;  %s3173_s21 = sshll.u32 %s5889_s9, 4  ;;  %s3172_s18 = int_to_ptr.vmem [resolvable:$true] %s3171_s18  ;;  %s3174_s21 = int_to_ptr.hbm [resolvable:$true] %s3173_s21 }
  0x16   :  { %3218 = vmatpush.msra.mxu2 %v108_v0  ;;  %3219 = vmatpush.msra.mxu3 %v108_v0  ;;  %v96_v2 = vld [vmem:[%s5880_s0] sm:$0xff]  ;;  %v109_v6 = vld [vmem:[%s5881_s1 + $0x28] sm:$0xff]  ;;  %v110_v7 = vld [vmem:[%s5881_s1 + $0x30] sm:$0xff] }
  0x17   :  { %162 = vmatpush.msra.mxu0 %v104_v1  ;;  %3220 = vmatpush.msra.mxu1 %v104_v1  ;;  %v111_v8 = vld [vmem:[%s5881_s1 + $0x38] sm:$0xff]  ;;  %v3854_v9 = vld [vmem:[#allocation4 + $0x1e0] sm:$0xff]  ;;  %v105_v10 = vld [vmem:[%s5881_s1 + $0x8] sm:$0xff] }
  0x18   :  { %3221 = vmatpush.msra.mxu2 %v104_v1  ;;  %3222 = vmatpush.msra.mxu3 %v104_v1  ;;  %v106_v11 = vld [vmem:[%s5881_s1 + $0x10] sm:$0xff]  ;;  %v107_v12 = vld [vmem:[%s5881_s1 + $0x18] sm:$0xff]  ;;  %v3869_v13 = vld [vmem:[#allocation4 + $0x1e8] sm:$0xff] }
  0x19   :  { %3185 = vmatmul.msk.f32.vlgmr.msra.gmra.mxu0 %vm122_vm0, %v96_v2  ;;  %3190 = vmatmul.msk.f32.vlgmr.msra.gmra.mxu1 %vm122_vm0, %v3830_v3  ;;  %v3872_v14 = vld [vmem:[#allocation4 + $0x1c0] sm:$0xff]  ;;  %v3874_v15 = vld [vmem:[#allocation4 + $0x1f8] sm:$0xff]  ;;  %v3876_v16 = vld [vmem:[#allocation4 + $0x1c8] sm:$0xff] }
  0x1a   :  { %3191 = vmatmul.msk.f32.vlgmr.msra.gmra.mxu2 %vm122_vm0, %v3835_v4  ;;  %3192 = vmatmul.msk.f32.vlgmr.msra.gmra.mxu3 %vm122_vm0, %v3840_v5  ;;  %v97_v17 = vld [vmem:[%s5880_s0 + $0x8] sm:$0xff]  ;;  %v3882_v18 = vld [vmem:[#allocation4 + $0x1f0] sm:$0xff]  ;;  %v3887_v19 = vld [vmem:[#allocation4 + $0x1a0] sm:$0xff] }
  0x1b   :  { %202 = vmatpush.msrb.mxu1 %v109_v6  ;;  %243 = vmatpush.msrb.mxu2 %v110_v7  ;;  %v3889_v20 = vld [vmem:[#allocation4 + $0x1a8] sm:$0xff]  ;;  %v3894_v21 = vld [vmem:[#allocation4 + $0x1d8] sm:$0xff]  ;;  %v3896_v22 = vld [vmem:[#allocation4 + $0x1d0] sm:$0xff] }
  0x1c   :  { %284 = vmatpush.msrb.mxu3 %v111_v8  ;;  %411 = vmatpush.msrb.mxu0 %v3854_v9  ;;  %v3900_v23 = vld [vmem:[#allocation4 + $0x180] sm:$0xff]  ;;  %v3902_v24 = vld [vmem:[#allocation4 + $0x188] sm:$0xff]  ;;  %v3906_v25 = vld [vmem:[#allocation4 + $0x1b8] sm:$0xff] }
  0x1d   :  { %203 = vmatpush.msrb.mxu1 %v105_v10  ;;  %244 = vmatpush.msrb.mxu2 %v106_v11  ;;  %v3908_v26 = vld [vmem:[#allocation4 + $0x1b0] sm:$0xff]  ;;  %v3910_v27 = vld [vmem:[#allocation4 + $0x160] sm:$0xff]  ;;  %v3913_v28 = vld [vmem:[#allocation4 + $0x168] sm:$0xff] }
  0x1e   :  { %285 = vmatpush.msrb.mxu3 %v107_v12  ;;  %412 = vmatpush.msrb.mxu0 %v3872_v14  ;;  %v3918_v29 = vld [vmem:[#allocation4 + $0x198] sm:$0xff]  ;;  %v3920_v30 = vld [vmem:[#allocation4 + $0x190] sm:$0xff]  ;;  %v3929_v32 = vld [vmem:[#allocation4 + $0x140] sm:$0xff] }
  0x1f   :  { %431 = vmatpush.msra.mxu1 %v3869_v13  ;;  %451 = vmatpush.msra.mxu2 %v3882_v18  ;;  %v98_v31 = vld [vmem:[%s5880_s0 + $0x10] sm:$0xff]  ;;  %v3932_v33 = vld [vmem:[#allocation4 + $0x148] sm:$0xff]  ;;  %v3937_v34 = vld [vmem:[#allocation4 + $0x178] sm:$0xff] }
  0x20   :  { %471 = vmatpush.msra.mxu3 %v3874_v15  ;;  %413 = vmatpush.msrb.mxu0 %v3887_v19  ;;  %v3939_v35 = vld [vmem:[#allocation4 + $0x170] sm:$0xff]  ;;  %v3943_v36 = vld [vmem:[#allocation4 + $0x120] sm:$0xff]  ;;  %v3945_v37 = vld [vmem:[#allocation4 + $0x128] sm:$0xff] }
  0x21   :  { %432 = vmatpush.msra.mxu1 %v3876_v16  ;;  %3186 = vmatmul.msk.f32.gmra.mxu0 %vm122_vm0, %v97_v17  ;;  %v3949_v38 = vld [vmem:[#allocation4 + $0x158] sm:$0xff]  ;;  %v3951_v39 = vld [vmem:[#allocation4 + $0x150] sm:$0xff]  ;;  %v3953_v40 = vld [vmem:[#allocation4 + $0x100] sm:$0xff] }
  0x22   :  { %3193 = vmatmul.msk.f32.vlgmr.msrb.gmra.mxu1 %vm122_vm0, %v96_v2  ;;  %3201 = vmatmul.msk.f32.vlgmr.msrb.gmra.mxu2 %vm122_vm0, %v96_v2  ;;  %v3956_v41 = vld [vmem:[#allocation4 + $0x108] sm:$0xff]  ;;  %v3961_v42 = vld [vmem:[#allocation4 + $0x138] sm:$0xff]  ;;  %v3963_v43 = vld [vmem:[#allocation4 + $0x130] sm:$0xff] }
  0x23   :  { %3209 = vmatmul.msk.f32.vlgmr.msrb.gmra.mxu3 %vm122_vm0, %v96_v2  ;;  %433 = vmatpush.msra.mxu1 %v3889_v20  ;;  %v99_v44 = vld [vmem:[%s5880_s0 + $0x18] sm:$0xff]  ;;  %v3972_v45 = vld [vmem:[#allocation4 + $0xe0] sm:$0xff]  ;;  %v3975_v46 = vld [vmem:[#allocation4 + $0xe8] sm:$0xff] }
  0x24   :  { %472 = vmatpush.msra.mxu3 %v3894_v21  ;;  %452 = vmatpush.msra.mxu2 %v3896_v22  ;;  %v3980_v47 = vld [vmem:[#allocation4 + $0x118] sm:$0xff]  ;;  %v3982_v48 = vld [vmem:[#allocation4 + $0x110] sm:$0xff]  ;;  %v3986_v49 = vld [vmem:[#allocation4 + $0xc0] sm:$0xff] }
  0x25   :  { %414 = vmatpush.msrb.mxu0 %v3900_v23  ;;  %434 = vmatpush.msra.mxu1 %v3902_v24  ;;  %v3988_v50 = vld [vmem:[#allocation4 + $0xc8] sm:$0xff]  ;;  %v3992_v51 = vld [vmem:[#allocation4 + $0xf8] sm:$0xff]  ;;  %v3994_v52 = vld [vmem:[#allocation4 + $0xf0] sm:$0xff] }
  0x26   :  { %473 = vmatpush.msra.mxu3 %v3906_v25  ;;  %453 = vmatpush.msra.mxu2 %v3908_v26  ;;  %v3996_v53 = vld [vmem:[#allocation4 + $0xa0] sm:$0xff]  ;;  %v3999_v54 = vld [vmem:[#allocation4 + $0xa8] sm:$0xff]  ;;  %v4004_v55 = vld [vmem:[#allocation4 + $0xd8] sm:$0xff] }
  0x27   :  { %415 = vmatpush.msrb.mxu0 %v3910_v27  ;;  %435 = vmatpush.msra.mxu1 %v3913_v28  ;;  %6155 = vst [vmem:[#allocation17_spill] sm:$0xff] %v3996_v53  ;;  %v4006_v56 = vld [vmem:[#allocation4 + $0xd0] sm:$0xff]  ;;  %v4008_v57 = vld [vmem:[#allocation4 + $0x80] sm:$0xff]  ;;  %v4023_v60 = vld [vmem:[#allocation4 + $0x88] sm:$0xff] }
  0x28   :  { %474 = vmatpush.msra.mxu3 %v3918_v29  ;;  %454 = vmatpush.msra.mxu2 %v3920_v30  ;;  %6156 = vst [vmem:[#allocation18_spill] sm:$0xff] %v3999_v54  ;;  %v100_v58 = vld [vmem:[%s5880_s0 + $0x20] sm:$0xff]  ;;  %v4025_v61 = vld [vmem:[#allocation4 + $0xb8] sm:$0xff]  ;;  %v4031_v63 = vld [vmem:[#allocation4 + $0xb0] sm:$0xff] }
  0x29   :  { %3187 = vmatmul.msk.f32.gmra.mxu0 %vm122_vm0, %v98_v31  ;;  %436 = vmatpush.msra.mxu1 %v3932_v33  ;;  %6157 = vst [vmem:[#allocation19_spill] sm:$0xff] %v4004_v55  ;;  %v4017_v59 = vld [vmem:[#allocation4 + $0x60] sm:$0xff]  ;;  %v4035_v0 = vld [vmem:[#allocation4 + $0x68] sm:$0xff]  ;;  %v4037_v1 = vld [vmem:[#allocation4 + $0x98] sm:$0xff] }
  0x2a   :  { %3194 = vmatmul.msk.f32.gmra.mxu1 %vm122_vm0, %v97_v17  ;;  %3202 = vmatmul.msk.f32.gmra.mxu2 %vm122_vm0, %v97_v17  ;;  %6158 = vst [vmem:[#allocation20_spill] sm:$0xff] %v4008_v57  ;;  %v4029_v62 = vld [vmem:[#allocation4 + $0x40] sm:$0xff]  ;;  %v4043_v6 = vld [vmem:[#allocation4 + $0x90] sm:$0xff]  ;;  %v4046_v7 = vld [vmem:[#allocation4 + $0x48] sm:$0xff] }
  0x2b   :  { %3210 = vmatmul.msk.f32.gmra.mxu3 %vm122_vm0, %v97_v17  ;;  %416 = vmatpush.msrb.mxu0 %v3929_v32  ;;  %6159 = vst [vmem:[#allocation21_spill] sm:$0xff] %v4017_v59  ;;  %v4039_v2 = vld [vmem:[#allocation4 + $0x20] sm:$0xff]  ;;  %v4049_v8 = vld [vmem:[#allocation4 + $0x78] sm:$0xff]  ;;  %v4059_v11 = vld [vmem:[#allocation4 + $0x28] sm:$0xff] }
  0x2c   :  { %475 = vmatpush.msra.mxu3 %v3937_v34  ;;  %455 = vmatpush.msra.mxu2 %v3939_v35  ;;  %6160 = vst [vmem:[#allocation22_spill] sm:$0xff] %v4023_v60  ;;  %v4051_v10 = vld [vmem:[#allocation4] sm:$0xff]  ;;  %v4063_v12 = vld [vmem:[#allocation4 + $0x70] sm:$0xff]  ;;  %v4065_v17 = vld [vmem:[#allocation4 + $0x58] sm:$0xff] }
  0x2d   :  { %417 = vmatpush.msrb.mxu0 %v3943_v36  ;;  %437 = vmatpush.msra.mxu1 %v3945_v37  ;;  %6161 = vst [vmem:[#allocation23_spill] sm:$0xff] %v4025_v61 }
  0x2e   :  { %476 = vmatpush.msra.mxu3 %v3949_v38  ;;  %456 = vmatpush.msra.mxu2 %v3951_v39  ;;  %6162 = vst [vmem:[#allocation24_spill] sm:$0xff] %v4029_v62 }
  0x2f   :  { %418 = vmatpush.msrb.mxu0 %v3953_v40  ;;  %438 = vmatpush.msra.mxu1 %v3956_v41  ;;  %6163 = vst [vmem:[#allocation25_spill] sm:$0xff] %v4031_v63 }
  0x30   :  { %477 = vmatpush.msra.mxu3 %v3961_v42  ;;  %457 = vmatpush.msra.mxu2 %v3963_v43  ;;  %6164 = vst [vmem:[#allocation26_spill] sm:$0xff] %v4035_v0 }
  0x31   :  { %3188 = vmatmul.msk.f32.gmra.mxu0 %vm122_vm0, %v99_v44  ;;  %439 = vmatpush.msra.mxu1 %v3975_v46  ;;  %6165 = vst [vmem:[#allocation27_spill] sm:$0xff] %v4037_v1 }
  0x32   :  { %3195 = vmatmul.msk.f32.gmra.mxu1 %vm122_vm0, %v98_v31  ;;  %3203 = vmatmul.msk.f32.gmra.mxu2 %vm122_vm0, %v98_v31  ;;  %6166 = vst [vmem:[#allocation28_spill] sm:$0xff] %v4039_v2 }
  0x33   :  { %3211 = vmatmul.msk.f32.gmra.mxu3 %vm122_vm0, %v98_v31  ;;  %419 = vmatpush.msrb.mxu0 %v3972_v45  ;;  %6167 = vst [vmem:[#allocation29_spill] sm:$0xff] %v4043_v6  ;;  %v5898_v31 = vmov 0.0  }
  0x34   :  { %478 = vmatpush.msra.mxu3 %v3980_v47  ;;  %458 = vmatpush.msra.mxu2 %v3982_v48  ;;  %6168 = vst [vmem:[#allocation30_spill] sm:$0xff] %v4046_v7 }
  0x35   :  { %420 = vmatpush.msrb.mxu0 %v3986_v49  ;;  %440 = vmatpush.msra.mxu1 %v3988_v50  ;;  %6169 = vst [vmem:[#allocation31_spill] sm:$0xff] %v4049_v8 }
  0x36   :  { %479 = vmatpush.msra.mxu3 %v3992_v51  ;;  %459 = vmatpush.msra.mxu2 %v3994_v52  ;;  %6170 = vst [vmem:[#allocation32_spill] sm:$0xff] %v4051_v10 }
  0x37   :  { %421 = vmatpush.msrb.mxu0 %v3996_v53  ;;  %441 = vmatpush.msra.mxu1 %v3999_v54  ;;  %6171 = vst [vmem:[#allocation33_spill] sm:$0xff] %v4059_v11 }
  0x38   :  { %480 = vmatpush.msra.mxu3 %v4004_v55  ;;  %460 = vmatpush.msra.mxu2 %v4006_v56  ;;  %6172 = vst [vmem:[#allocation34_spill] sm:$0xff] %v4063_v12 }
  0x39   :  { %422 = vmatpush.msrb.mxu0 %v4008_v57  ;;  %442 = vmatpush.msra.mxu1 %v4023_v60  ;;  %6173 = vst [vmem:[#allocation35_spill] sm:$0xff] %v4065_v17 }
  0x3a   :  { %3196 = vmatmul.msk.f32.gmra.mxu1 %vm122_vm0, %v99_v44  ;;  %3189 = vmatmul.msk.f32.gmra.mxu0 %vm122_vm0, %v100_v58 }
  0x3b   :  { %3204 = vmatmul.msk.f32.gmra.mxu2 %vm122_vm0, %v99_v44  ;;  %3212 = vmatmul.msk.f32.gmra.mxu3 %vm122_vm0, %v99_v44  ;;  %v4069_v44 = vld [vmem:[#allocation4 + $0x8] sm:$0xff] }
  0x3c   :  { %423 = vmatpush.msrb.mxu0 %v4017_v59  ;;  %481 = vmatpush.msra.mxu3 %v4025_v61  ;;  %6174 = vst [vmem:[#allocation36_spill] sm:$0xff] %v4069_v44 }
  0x3d   :  { %461 = vmatpush.msra.mxu2 %v4031_v63  ;;  %443 = vmatpush.msra.mxu1 %v4035_v0 }
  0x3e   :  { %424 = vmatpush.msrb.mxu0 %v4029_v62  ;;  %482 = vmatpush.msra.mxu3 %v4037_v1 }
  0x3f   :  { %462 = vmatpush.msra.mxu2 %v4043_v6  ;;  %444 = vmatpush.msra.mxu1 %v4046_v7  ;;  %v4080_v7 = vld [vmem:[#allocation4 + $0x30] sm:$0xff] }
  0x40   :  { %425 = vmatpush.msrb.mxu0 %v4039_v2  ;;  %483 = vmatpush.msra.mxu3 %v4049_v8  ;;  %v4073_v2 = vld [vmem:[#allocation4 + $0x50] sm:$0xff]  ;;  %6177 = vst [vmem:[#allocation39_spill] sm:$0xff] %v4080_v7  ;;  %v4082_v8 = vld [vmem:[#allocation4 + $0x18] sm:$0xff] }
  0x41   :  { %445 = vmatpush.msra.mxu1 %v4059_v11  ;;  %6175 = vst [vmem:[#allocation37_spill] sm:$0xff] %v4073_v2  ;;  %463 = vmatpush.msra.mxu2 %v4063_v12 }
  0x42   :  { %426 = vmatpush.msrb.mxu0 %v4051_v10  ;;  %3197 = vmatmul.msk.f32.gmra.mxu1 %vm122_vm0, %v100_v58  ;;  %v4075_v10 = vld [vmem:[#allocation4 + $0x38] sm:$0xff]  ;;  %6178 = vst [vmem:[#allocation40_spill] sm:$0xff] %v4082_v8 }
  0x43   :  { %3205 = vmatmul.msk.f32.gmra.mxu2 %vm122_vm0, %v100_v58  ;;  %427 = vmatmul.f32.vlgmr.msrb.gmra.mxu0 %v5898_v31  ;;  %6176 = vst [vmem:[#allocation38_spill] sm:$0xff] %v4075_v10 }
  0x44   :  { %3213 = vmatmul.msk.f32.gmra.mxu3 %vm122_vm0, %v100_v58  ;;  %446 = vmatpush.msra.mxu1 %v4069_v44  ;;  %v4090_v58 = vld [vmem:[#allocation4 + $0x10] sm:$0xff] }
  0x45   :  { %484 = vmatpush.msra.mxu3 %v4065_v17  ;;  %560 = vmatpush.msra.mxu0 %v3854_v9  ;;  %6179 = vst [vmem:[#allocation41_spill] sm:$0xff] %v4090_v58 }
  0x46   :  { %464 = vmatpush.msra.mxu2 %v4073_v2  ;;  %580 = vmatpush.msrb.mxu1 %v3869_v13 }
  0x47   :  { %485 = vmatpush.msra.mxu3 %v4075_v10  ;;  %561 = vmatpush.msra.mxu0 %v3872_v14 }
  0x48   :  { %465 = vmatpush.msra.mxu2 %v4080_v7  ;;  %581 = vmatpush.msrb.mxu1 %v3876_v16 }
  0x49   :  { %486 = vmatpush.msra.mxu3 %v4082_v8  ;;  %562 = vmatpush.msra.mxu0 %v3887_v19 }
  0x4a   :  { %3198 = vmatmul.msk.f32.gmra.mxu1 %vm122_vm0, %v3830_v3  ;;  %466 = vmatpush.msra.mxu2 %v4090_v58 }
  0x4b   :  { %620 = vmatpush.msrb.mxu3 %v3874_v15  ;;  %3206 = vmatmul.msk.f32.gmra.mxu2 %vm122_vm0, %v3830_v3 }
  0x4c   :  { %3214 = vmatmul.msk.f32.gmra.mxu3 %vm122_vm0, %v3830_v3  ;;  %600 = vmatpush.msrb.mxu2 %v3882_v18  ;;  %v6180_v3 = vld [vmem:[#allocation31_spill] sm:$0xff] }
  0x4d   :  { %621 = vmatpush.msrb.mxu3 %v3894_v21  ;;  %582 = vmatpush.msrb.mxu1 %v3889_v20 }
  0x4e   :  { %601 = vmatpush.msrb.mxu2 %v3896_v22  ;;  %563 = vmatpush.msra.mxu0 %v3900_v23 }
  0x4f   :  { %622 = vmatpush.msrb.mxu3 %v3906_v25  ;;  %583 = vmatpush.msrb.mxu1 %v3902_v24 }
  0x50   :  { %602 = vmatpush.msrb.mxu2 %v3908_v26  ;;  %564 = vmatpush.msra.mxu0 %v3910_v27 }
  0x51   :  { %623 = vmatpush.msrb.mxu3 %v3918_v29  ;;  %584 = vmatpush.msrb.mxu1 %v3913_v28 }
  0x52   :  { %3199 = vmatmul.msk.f32.gmra.mxu1 %vm122_vm0, %v3835_v4  ;;  %603 = vmatpush.msrb.mxu2 %v3920_v30 }
  0x53   :  { %3207 = vmatmul.msk.f32.gmra.mxu2 %vm122_vm0, %v3835_v4  ;;  %624 = vmatpush.msrb.mxu3 %v3937_v34 }
  0x54   :  { %3215 = vmatmul.msk.f32.gmra.mxu3 %vm122_vm0, %v3835_v4  ;;  %565 = vmatpush.msra.mxu0 %v3929_v32  ;;  %v6181_v4 = vld [vmem:[#allocation30_spill] sm:$0xff] }
  0x55   :  { %604 = vmatpush.msrb.mxu2 %v3939_v35  ;;  %585 = vmatpush.msrb.mxu1 %v3932_v33 }
  0x56   :  { %625 = vmatpush.msrb.mxu3 %v3949_v38  ;;  %566 = vmatpush.msra.mxu0 %v3943_v36 }
  0x57   :  { %605 = vmatpush.msrb.mxu2 %v3951_v39  ;;  %586 = vmatpush.msrb.mxu1 %v3945_v37 }
  0x58   :  { %626 = vmatpush.msrb.mxu3 %v3961_v42  ;;  %567 = vmatpush.msra.mxu0 %v3953_v40 }
  0x59   :  { %606 = vmatpush.msrb.mxu2 %v3963_v43  ;;  %587 = vmatpush.msrb.mxu1 %v3956_v41 }
  0x5a   :  { %3200 = vmatmul.msk.f32.gmra.mxu1 %vm122_vm0, %v3840_v5  ;;  %627 = vmatpush.msrb.mxu3 %v3980_v47 }
  0x5b   :  { %3208 = vmatmul.msk.f32.gmra.mxu2 %vm122_vm0, %v3840_v5  ;;  %568 = vmatpush.msra.mxu0 %v3972_v45 }
  0x5c   :  { %3216 = vmatmul.msk.f32.gmra.mxu3 %vm122_vm0, %v3840_v5  ;;  %607 = vmatpush.msrb.mxu2 %v3982_v48  ;;  %v6182_v5 = vld [vmem:[#allocation28_spill] sm:$0xff] }
  0x5d   :  { %588 = vmatpush.msrb.mxu1 %v3975_v46  ;;  %628 = vmatpush.msrb.mxu3 %v3992_v51 }
  0x5e   :  { %608 = vmatpush.msrb.mxu2 %v3994_v52  ;;  %569 = vmatpush.msra.mxu0 %v3986_v49 }
  0x5f   :  { %589 = vmatpush.msrb.mxu1 %v3988_v50  ;;  %629 = vmatpush.msrb.mxu3 %v4004_v55 }
  0x60   :  { %609 = vmatpush.msrb.mxu2 %v4006_v56  ;;  %570 = vmatpush.msra.mxu0 %v3996_v53 }
  0x61   :  { %590 = vmatpush.msrb.mxu1 %v3999_v54  ;;  %630 = vmatpush.msrb.mxu3 %v4025_v61 }
  0x62   :  { %447 = vmatmul.f32.vlgmr.msra.gmra.mxu1 %v5898_v31  ;;  %610 = vmatpush.msrb.mxu2 %v4031_v63 }
  0x63   :  { %467 = vmatmul.f32.vlgmr.msra.gmra.mxu2 %v5898_v31  ;;  %571 = vmatpush.msra.mxu0 %v4008_v57 }
  0x64   :  { %487 = vmatmul.f32.vlgmr.msra.gmra.mxu3 %v5898_v31  ;;  %591 = vmatpush.msrb.mxu1 %v4023_v60  ;;  %v6183_v31 = vld [vmem:[#allocation32_spill] sm:$0xff] }
  0x65   :  { %611 = vmatpush.msrb.mxu2 %v4043_v6  ;;  %572 = vmatpush.msra.mxu0 %v4017_v59 }
  0x66   :  { %631 = vmatpush.msrb.mxu3 %v4037_v1  ;;  %592 = vmatpush.msrb.mxu1 %v4035_v0 }
  0x67   :  { %612 = vmatpush.msrb.mxu2 %v4063_v12  ;;  %573 = vmatpush.msra.mxu0 %v4029_v62 }
  0x68   :  { %632 = vmatpush.msrb.mxu3 %v6180_v3  ;;  %593 = vmatpush.msrb.mxu1 %v6181_v4 }
  0x69   :  { %613 = vmatpush.msrb.mxu2 %v4073_v2  ;;  %574 = vmatpush.msra.mxu0 %v6182_v5 }
  0x6a   :  { %633 = vmatpush.msrb.mxu3 %v4065_v17  ;;  %594 = vmatpush.msrb.mxu1 %v4059_v11 }
  0x6b   :  { %614 = vmatpush.msrb.mxu2 %v4080_v7  ;;  %575 = vmatpush.msra.mxu0 %v6183_v31 }
  0x6c   :  { %634 = vmatpush.msrb.mxu3 %v4075_v10  ;;  %595 = vmatpush.msrb.mxu1 %v4069_v44 }
  0x6d   :  { %615 = vmatpush.msrb.mxu2 %v4090_v58  ;;  %709 = vmatpush.msrb.mxu0 %v3854_v9 }
  0x6e   :  { %635 = vmatpush.msrb.mxu3 %v4082_v8  ;;  %729 = vmatpush.msra.mxu1 %v3869_v13 }
  0x6f   :  { %749 = vmatpush.msra.mxu2 %v3882_v18  ;;  %710 = vmatpush.msrb.mxu0 %v3872_v14 }
  0x70   :  { %769 = vmatpush.msra.mxu3 %v3874_v15  ;;  %730 = vmatpush.msra.mxu1 %v3876_v16 }
  0x71   :  { %750 = vmatpush.msra.mxu2 %v3896_v22  ;;  %711 = vmatpush.msrb.mxu0 %v3887_v19 }
  0x72   :  { %770 = vmatpush.msra.mxu3 %v3894_v21  ;;  %731 = vmatpush.msra.mxu1 %v3889_v20 }
  0x73   :  { %751 = vmatpush.msra.mxu2 %v3908_v26  ;;  %712 = vmatpush.msrb.mxu0 %v3900_v23 }
  0x74   :  { %771 = vmatpush.msra.mxu3 %v3906_v25  ;;  %732 = vmatpush.msra.mxu1 %v3902_v24 }
  0x75   :  { %752 = vmatpush.msra.mxu2 %v3920_v30  ;;  %713 = vmatpush.msrb.mxu0 %v3910_v27 }
  0x76   :  { %772 = vmatpush.msra.mxu3 %v3918_v29  ;;  %733 = vmatpush.msra.mxu1 %v3913_v28 }
  0x77   :  { %753 = vmatpush.msra.mxu2 %v3939_v35  ;;  %714 = vmatpush.msrb.mxu0 %v3929_v32 }
  0x78   :  { %773 = vmatpush.msra.mxu3 %v3937_v34  ;;  %734 = vmatpush.msra.mxu1 %v3932_v33 }
  0x79   :  { %754 = vmatpush.msra.mxu2 %v3951_v39  ;;  %715 = vmatpush.msrb.mxu0 %v3943_v36 }
  0x7a   :  { %774 = vmatpush.msra.mxu3 %v3949_v38  ;;  %735 = vmatpush.msra.mxu1 %v3945_v37 }
  0x7b   :  { %755 = vmatpush.msra.mxu2 %v3963_v43  ;;  %716 = vmatpush.msrb.mxu0 %v3953_v40 }
  0x7c   :  { %775 = vmatpush.msra.mxu3 %v3961_v42  ;;  %736 = vmatpush.msra.mxu1 %v3956_v41 }
  0x7d   :  { %756 = vmatpush.msra.mxu2 %v3982_v48  ;;  %717 = vmatpush.msrb.mxu0 %v3972_v45 }
  0x7e   :  { %776 = vmatpush.msra.mxu3 %v3980_v47  ;;  %737 = vmatpush.msra.mxu1 %v3975_v46 }
  0x7f   :  { %757 = vmatpush.msra.mxu2 %v3994_v52  ;;  %718 = vmatpush.msrb.mxu0 %v3986_v49 }
  0x80   :  { %777 = vmatpush.msra.mxu3 %v3992_v51  ;;  %738 = vmatpush.msra.mxu1 %v3988_v50 }
  0x81   :  { %758 = vmatpush.msra.mxu2 %v4006_v56  ;;  %719 = vmatpush.msrb.mxu0 %v3996_v53 }
  0x82   :  { %778 = vmatpush.msra.mxu3 %v4004_v55  ;;  %739 = vmatpush.msra.mxu1 %v3999_v54 }
  0x83   :  { %759 = vmatpush.msra.mxu2 %v4031_v63  ;;  %720 = vmatpush.msrb.mxu0 %v4008_v57 }
  0x84   :  { %779 = vmatpush.msra.mxu3 %v4025_v61  ;;  %740 = vmatpush.msra.mxu1 %v4023_v60 }
  0x85   :  { %760 = vmatpush.msra.mxu2 %v4043_v6  ;;  %721 = vmatpush.msrb.mxu0 %v4017_v59 }
  0x86   :  { %780 = vmatpush.msra.mxu3 %v4037_v1  ;;  %741 = vmatpush.msra.mxu1 %v4035_v0 }
  0x87   :  { %761 = vmatpush.msra.mxu2 %v4063_v12  ;;  %722 = vmatpush.msrb.mxu0 %v4029_v62 }
  0x88   :  { %781 = vmatpush.msra.mxu3 %v6180_v3  ;;  %742 = vmatpush.msra.mxu1 %v6181_v4 }
  0x89   :  { %762 = vmatpush.msra.mxu2 %v4073_v2  ;;  %723 = vmatpush.msrb.mxu0 %v6182_v5 }
  0x8a   :  { %782 = vmatpush.msra.mxu3 %v4065_v17  ;;  %743 = vmatpush.msra.mxu1 %v4059_v11 }
  0x8b   :  { %763 = vmatpush.msra.mxu2 %v4080_v7  ;;  %724 = vmatpush.msrb.mxu0 %v6183_v31 }
  0x8c   :  { %783 = vmatpush.msra.mxu3 %v4075_v10  ;;  %744 = vmatpush.msra.mxu1 %v4069_v44 }
  0x8d   :  { %764 = vmatpush.msra.mxu2 %v4090_v58 }
  0x8e   :  { %784 = vmatpush.msra.mxu3 %v4082_v8 }
  0x96   :  { %v164_v4 = vpop.f32.mrf.mxu0  ;;  %v4240_v2 = vpop.f32.mrf.mxu1 }
  0x97   :  { %6184 = vst [vmem:[#allocation42_spill] sm:$0xff] %v4240_v2 }
  0x9d   :  { %v4242_v17 = vpop.f32.mrf.mxu2  ;;  %v4244_v5 = vpop.f32.mrf.mxu3 }
  0x9e   :  { %6185 = vst [vmem:[#allocation43_spill] sm:$0xff] %v4242_v17  ;;  %v4246_v11 = vpop.f32.mrf.mxu0 }
  0x9f   :  { %6186 = vst [vmem:[#allocation44_spill] sm:$0xff] %v4244_v5  ;;  %v205_v7 = vpop.f32.mrf.mxu1 }
  0xa0   :  { %6187 = vst [vmem:[#allocation45_spill] sm:$0xff] %v4246_v11 }
  0xa5   :  { %v246_v62 = vpop.f32.mrf.mxu2 }
  0xa6   :  { %v287_v10 = vpop.f32.mrf.mxu3  ;;  %v4250_v31 = vpop.f32.mrf.mxu0 }
  0xa7   :  { %v4248_v3 = vpop.f32.mrf.mxu1  ;;  %6189 = vst [vmem:[#allocation47_spill] sm:$0xff] %v4250_v31 }
  0xa8   :  { %6188 = vst [vmem:[#allocation46_spill] sm:$0xff] %v4248_v3 }
  0xad   :  { %v4252_v44 = vpop.f32.mrf.mxu2 }
  0xae   :  { %6190 = vst [vmem:[#allocation48_spill] sm:$0xff] %v4252_v44  ;;  %v4254_v58 = vpop.f32.mrf.mxu3  ;;  %v4258_v2 = vpop.f32.mrf.mxu0 }
  0xaf   :  { %6191 = vst [vmem:[#allocation49_spill] sm:$0xff] %v4254_v58  ;;  %v4256_v8 = vpop.f32.mrf.mxu1 }
  0xb0   :  { %6192 = vst [vmem:[#allocation50_spill] sm:$0xff] %v4256_v8  ;;  %v112_v8 = vld [vmem:[%s5883_s3] sm:$0xf] }
  0xb1   :  { %6193 = vst [vmem:[#allocation51_spill] sm:$0xff] %v4258_v2  ;;  %v4277_v44 = vperm.slane %v112_v8, 0 }
  0xb3   :  { %6201 = vst [vmem:[#allocation59_spill] sm:$0xff] %v4277_v44 }
  0xb5   :  { %v4260_v17 = vpop.f32.mrf.mxu2 }
  0xb6   :  { %6194 = vst [vmem:[#allocation52_spill] sm:$0xff] %v4260_v17  ;;  %v4262_v5 = vpop.f32.mrf.mxu3 }
  0xb7   :  { %6195 = vst [vmem:[#allocation53_spill] sm:$0xff] %v4262_v5  ;;  %v4264_v11 = vpop.f32.mrf.mxu1  ;;  %v4266_v12 = vpop.f32.mrf.mxu0 }
  0xb8   :  { %6196 = vst [vmem:[#allocation54_spill] sm:$0xff] %v4264_v11 }
  0xb9   :  { %6197 = vst [vmem:[#allocation55_spill] sm:$0xff] %v4266_v12  ;;  %v165_v12 = vadd.f32 %v164_v4, %v4277_v44 }
  0xbe   :  { %v4268_v0 = vpop.f32.mrf.mxu2  ;;  %v4270_v3 = vpop.f32.mrf.mxu3 }
  0xbf   :  { %6198 = vst [vmem:[#allocation56_spill] sm:$0xff] %v4268_v0  ;;  %v4272_v31 = vpop.f32.mrf.mxu1 }
  0xc0   :  { %6199 = vst [vmem:[#allocation57_spill] sm:$0xff] %v4270_v3  ;;  %v428_v2 = vpop.f32.mrf.mxu0 }
  0xc1   :  { %6200 = vst [vmem:[#allocation58_spill] sm:$0xff] %v4272_v31  ;;  %v491_v0 = vadd.f32 %v428_v2, %v165_v12 }
  0xc3   :  { %v495_v58 = vsub.f32 0.0, %v491_v0 }
  0xc5   :  { %v496_v1 = vmul.f32 1.442695, %v495_v58 }
  0xc6   :  { %v4279_v17 = vpop.f32.mrf.mxu2 }
  0xc7   :  { %6202 = vst [vmem:[#allocation60_spill] sm:$0xff] %v4279_v17  ;;  %v4281_v5 = vpop.f32.mrf.mxu3  ;;  %v4283_v11 = vpop.f32.mrf.mxu1  ;;  %3234 = vpow2.f32 %v496_v1  ;;  %v4296_v17 = vperm.slane %v112_v8, 1 }
  0xc8   :  { %6203 = vst [vmem:[#allocation61_spill] sm:$0xff] %v4281_v5 }
  0xc9   :  { %6204 = vst [vmem:[#allocation62_spill] sm:$0xff] %v4283_v11  ;;  %v206_v2 = vadd.f32 %v205_v7, %v4296_v17 }
  0xca   :  { %6210 = vst [vmem:[#allocation68_spill] sm:$0xff] %v4296_v17 }
  0xcd   :  { %v3235_v11 = vpop.eup %3234 }
  0xce   :  { %v4290_v59 = vpop.f32.mrf.mxu2  ;;  %v498_v0 = vadd.f32 1.0, %v3235_v11  ;;  %v4308_v11 = vperm.slane %v112_v8, 2 }
  0xcf   :  { %v4286_v3 = vpop.f32.mrf.mxu3  ;;  %v4288_v31 = vpop.f32.mrf.mxu1  ;;  %6207 = vst [vmem:[#allocation65_spill] sm:$0xff] %v4290_v59 }
  0xd0   :  { %6205 = vst [vmem:[#allocation63_spill] sm:$0xff] %v4286_v3  ;;  %v4303_v3 = vperm.slane %v112_v8, 3  ;;  %3236 = vrcp.f32 %v498_v0  ;;  %vm504_vm2 = vweird.f32 %v498_v0 }
  0xd1   :  { %6206 = vst [vmem:[#allocation64_spill] sm:$0xff] %v4288_v31 }
  0xd2   :  { %6213 = vst [vmem:[#allocation71_spill] sm:$0xff] %v4303_v3 }
  0xd3   :  { %6215 = vst [vmem:[#allocation73_spill] sm:$0xff] %v4308_v11 }
  0xd6   :  { %v4298_v5 = vpop.f32.mrf.mxu2  ;;  %v3237_v44 = vpop.eup %3236 }
  0xd7   :  { %v4292_v6 = vpop.f32.mrf.mxu3  ;;  %v4294_v60 = vpop.f32.mrf.mxu1  ;;  %6211 = vst [vmem:[#allocation69_spill] sm:$0xff] %v4298_v5  ;;  %vm505_vm1 = vweird.f32 %v3237_v44 }
  0xd8   :  { %6208 = vst [vmem:[#allocation66_spill] sm:$0xff] %v4292_v6  ;;  %vm506_vm4 = vmor %vm504_vm2, %vm505_vm1 }
  0xd9   :  { %6209 = vst [vmem:[#allocation67_spill] sm:$0xff] %v4294_v60  ;;  %v288_v60 = vadd.f32 %v287_v10, %v4303_v3 }
  0xde   :  { %v4305_v6 = vpop.f32.mrf.mxu2 }
  0xdf   :  { %v4301_v12 = vpop.f32.mrf.mxu3  ;;  %v448_v4 = vpop.f32.mrf.mxu1  ;;  %6214 = vst [vmem:[#allocation72_spill] sm:$0xff] %v4305_v6 }
  0xe0   :  { %6212 = vst [vmem:[#allocation70_spill] sm:$0xff] %v4301_v12  ;;  %v492_v31 = vadd.f32 %v448_v4, %v206_v2  ;;  %v500_v12 = vmul.f32 %v3237_v44, %v498_v0  ;;  %v247_v4 = vadd.f32 %v246_v62, %v4308_v11 }
  0xe2   :  { %v513_v58 = vsub.f32 0.0, %v492_v31 }
  0xe4   :  { %v514_v1 = vmul.f32 1.442695, %v513_v58  ;;  %v501_v58 = vsub.f32 1.0, %v500_v12 }
  0xe6   :  { %3238 = vpow2.f32 %v514_v1  ;;  %v468_v31 = vpop.f32.mrf.mxu2  ;;  %v502_v10 = vmul.f32 %v3237_v44, %v501_v58 }
  0xe7   :  { %v488_v59 = vpop.f32.mrf.mxu3  ;;  %v493_v6 = vadd.f32 %v468_v31, %v247_v4 }
  0xe8   :  { %v494_v5 = vadd.f32 %v488_v59, %v288_v60  ;;  %v503_v8 = vadd.f32 %v3237_v44, %v502_v10 }
  0xea   :  { %v532_v57 = vsub.f32 0.0, %v494_v5  ;;  %v507_v12 = vsel %vm506_vm4, %v3237_v44, %v503_v8 }
  0xec   :  { %v3239_v7 = vpop.eup %3238  ;;  %v533_v17 = vmul.f32 1.442695, %v532_v57  ;;  %v510_v57 = vand.u32 2147483648, %v498_v0 }
  0xed   :  { %v516_v2 = vadd.f32 1.0, %v3239_v7  ;;  %v508_v7 = vand.u32 2147483647, %v498_v0 }
  0xee   :  { %3240 = vpow2.f32 %v533_v17 }
  0xef   :  { %3242 = vrcp.f32 %v516_v2  ;;  %v528_v5 = vand.u32 2147483648, %v516_v2  ;;  %v526_v63 = vand.u32 2147483647, %v516_v2  ;;  %vm522_vm5 = vweird.f32 %v516_v2 }
  0xf0   :  { %3244 = vtanh.f32 %v493_v6  ;;  %vm509_vm7 = vcmp.eq.f32.partialorder %v508_v7, 8.507059e+37 }
  0xf1   :  { %v529_v6 = vor.u32 1.1754944e-38, %v528_v5  ;;  %vm527_vm8 = vcmp.eq.f32.partialorder %v526_v63, 8.507059e+37 }
  0xf4   :  { %v3241_v61 = vpop.eup %3240 }
  0xf5   :  { %v3243_v1 = vpop.eup %3242  ;;  %v535_v3 = vadd.f32 1.0, %v3241_v61  ;;  %v511_v61 = vor.u32 1.1754944e-38, %v510_v57 }
  0xf6   :  { %v518_v59 = vmul.f32 %v3243_v1, %v516_v2  ;;  %vm523_vm3 = vweird.f32 %v3243_v1  ;;  %v3245_v62 = vpop.eup %3244 }
  0xf7   :  { %3246 = vrcp.f32 %v535_v3  ;;  %vm524_vm6 = vmor %vm522_vm5, %vm523_vm3  ;;  %v547_v2 = vand.u32 2147483648, %v535_v3  ;;  %vm541_vm10 = vweird.f32 %v535_v3  ;;  %v545_v8 = vand.u32 2147483647, %v535_v3 }
  0xf8   :  { %v519_v60 = vsub.f32 1.0, %v518_v59  ;;  %v512_v59 = vsel %vm509_vm7, %v511_v61, %v507_v12 }
  0xf9   :  { %vm546_vm12 = vcmp.eq.f32.partialorder %v545_v8, 8.507059e+37 }
  0xfa   :  { %v520_v17 = vmul.f32 %v3243_v1, %v519_v60  ;;  %v551_v60 = vmul.f32 %v3245_v62, %v512_v59 }
  0xfc   :  { %v521_v31 = vadd.f32 %v3243_v1, %v520_v17 }
  0xfd   :  { %v3247_v4 = vpop.eup %3246 }
  0xfe   :  { %v525_v58 = vsel %vm524_vm6, %v3243_v1, %v521_v31  ;;  %v537_v10 = vmul.f32 %v3247_v4, %v535_v3  ;;  %vm542_vm9 = vweird.f32 %v3247_v4  ;;  %v548_v1 = vor.u32 1.1754944e-38, %v547_v2  ;;  %v6247_v3 = vld [vmem:[#allocation49_spill] sm:$0xff] }
  0xff   :  { %v530_v11 = vsel %vm527_vm8, %v529_v6, %v525_v58  ;;  %vm543_vm11 = vmor %vm541_vm10, %vm542_vm9 }
 0x100   :  { %v550_v54 = vmul.f32 0.0, %v530_v11  ;;  %v538_v0 = vsub.f32 1.0, %v537_v10 }
 0x102   :  { %v4311_v53 = vadd.f32 %v551_v60, %v550_v54  ;;  %v539_v55 = vmul.f32 %v3247_v4, %v538_v0  ;;  %v6248_v60 = vld [vmem:[#allocation73_spill] sm:$0xff]  ;;  %v6249_v0 = vld [vmem:[#allocation48_spill] sm:$0xff] }
 0x104   :  { %3248 = vtanh.f32 %v4311_v53  ;;  %v540_v44 = vadd.f32 %v3247_v4, %v539_v55  ;;  %v6246_v55 = vld [vmem:[#allocation71_spill] sm:$0xff] }
 0x105   :  { %v291_v11 = vadd.f32 %v6247_v3, %v6246_v55 }
 0x106   :  { %v544_v5 = vsel %vm543_vm11, %v3247_v4, %v540_v44  ;;  %v250_v44 = vadd.f32 %v6249_v0, %v6248_v60 }
 0x107   :  { %v549_v57 = vsel %vm546_vm12, %v548_v1, %v544_v5 }
 0x10a   :  { %v3249_v63 = vpop.eup %3248 }
 0x10b   :  { %v4314_v17 = vmul.f32 %v3249_v63, %v549_v57 }
 0x10d   :  { %6216 = vst [vmem:[#allocation74_spill] sm:$0xff] %v4314_v17  ;;  %576 = vmatmul.f32.vlgmr.msra.gmra.mxu0 %v4314_v17  ;;  %596 = vmatmul.f32.vlgmr.msrb.gmra.mxu1 %v4314_v17 }
 0x10e   :  { %616 = vmatmul.f32.vlgmr.msrb.gmra.mxu2 %v4314_v17  ;;  %636 = vmatmul.f32.vlgmr.msrb.gmra.mxu3 %v4314_v17  ;;  %v4507_v17 = vld [vmem:[#allocation4 + $0xf8] sm:$0xff] }
 0x10f   :  { %858 = vmatpush.msra.mxu0 %v3854_v9  ;;  %878 = vmatpush.msrb.mxu1 %v3869_v13  ;;  %v6217_v9 = vld [vmem:[#allocation19_spill] sm:$0xff]  ;;  %v6218_v13 = vld [vmem:[#allocation17_spill] sm:$0xff] }
 0x110   :  { %898 = vmatpush.msrb.mxu2 %v3882_v18  ;;  %918 = vmatpush.msrb.mxu3 %v3874_v15  ;;  %v6220_v15 = vld [vmem:[#allocation25_spill] sm:$0xff]  ;;  %v6222_v18 = vld [vmem:[#allocation20_spill] sm:$0xff] }
 0x111   :  { %859 = vmatpush.msra.mxu0 %v3872_v14  ;;  %879 = vmatpush.msrb.mxu1 %v3876_v16  ;;  %v6219_v14 = vld [vmem:[#allocation18_spill] sm:$0xff]  ;;  %v6221_v16 = vld [vmem:[#allocation23_spill] sm:$0xff] }
 0x112   :  { %899 = vmatpush.msrb.mxu2 %v3896_v22  ;;  %919 = vmatpush.msrb.mxu3 %v3894_v21  ;;  %v6225_v21 = vld [vmem:[#allocation27_spill] sm:$0xff]  ;;  %v6226_v22 = vld [vmem:[#allocation21_spill] sm:$0xff] }
 0x113   :  { %860 = vmatpush.msra.mxu0 %v3887_v19  ;;  %880 = vmatpush.msrb.mxu1 %v3889_v20  ;;  %v6223_v19 = vld [vmem:[#allocation22_spill] sm:$0xff]  ;;  %v6224_v20 = vld [vmem:[#allocation29_spill] sm:$0xff] }
 0x114   :  { %900 = vmatpush.msrb.mxu2 %v3908_v26  ;;  %920 = vmatpush.msrb.mxu3 %v3906_v25  ;;  %v6229_v25 = vld [vmem:[#allocation31_spill] sm:$0xff]  ;;  %v6230_v26 = vld [vmem:[#allocation24_spill] sm:$0xff] }
 0x115   :  { %861 = vmatpush.msra.mxu0 %v3900_v23  ;;  %881 = vmatpush.msrb.mxu1 %v3902_v24  ;;  %v6227_v23 = vld [vmem:[#allocation26_spill] sm:$0xff] }
 0x116   :  { %901 = vmatpush.msrb.mxu2 %v3920_v30  ;;  %921 = vmatpush.msrb.mxu3 %v3918_v29  ;;  %v6228_v24 = vld [vmem:[#allocation34_spill] sm:$0xff]  ;;  %v6233_v29 = vld [vmem:[#allocation35_spill] sm:$0xff]  ;;  %v6234_v30 = vld [vmem:[#allocation28_spill] sm:$0xff] }
 0x117   :  { %862 = vmatpush.msra.mxu0 %v3910_v27  ;;  %882 = vmatpush.msrb.mxu1 %v3913_v28  ;;  %v6231_v27 = vld [vmem:[#allocation30_spill] sm:$0xff]  ;;  %v6232_v28 = vld [vmem:[#allocation37_spill] sm:$0xff] }
 0x118   :  { %902 = vmatpush.msrb.mxu2 %v3939_v35  ;;  %922 = vmatpush.msrb.mxu3 %v3937_v34  ;;  %v6237_v34 = vld [vmem:[#allocation38_spill] sm:$0xff]  ;;  %v6238_v35 = vld [vmem:[#allocation32_spill] sm:$0xff] }
 0x119   :  { %863 = vmatpush.msra.mxu0 %v3929_v32  ;;  %883 = vmatpush.msrb.mxu1 %v3932_v33  ;;  %v6235_v32 = vld [vmem:[#allocation33_spill] sm:$0xff]  ;;  %v6236_v33 = vld [vmem:[#allocation39_spill] sm:$0xff] }
 0x11a   :  { %903 = vmatpush.msrb.mxu2 %v3951_v39  ;;  %923 = vmatpush.msrb.mxu3 %v3949_v38  ;;  %v6241_v38 = vld [vmem:[#allocation40_spill] sm:$0xff]  ;;  %v6242_v39 = vld [vmem:[#allocation59_spill] sm:$0xff] }
 0x11b   :  { %864 = vmatpush.msra.mxu0 %v3943_v36  ;;  %884 = vmatpush.msrb.mxu1 %v3945_v37  ;;  %v6239_v36 = vld [vmem:[#allocation36_spill] sm:$0xff]  ;;  %v6240_v37 = vld [vmem:[#allocation41_spill] sm:$0xff] }
 0x11c   :  { %904 = vmatpush.msrb.mxu2 %v3963_v43  ;;  %924 = vmatpush.msrb.mxu3 %v3961_v42  ;;  %v6244_v42 = vld [vmem:[#allocation68_spill] sm:$0xff]  ;;  %v6245_v43 = vld [vmem:[#allocation46_spill] sm:$0xff] }
 0x11d   :  { %865 = vmatpush.msra.mxu0 %v3953_v40  ;;  %885 = vmatpush.msrb.mxu1 %v3956_v41  ;;  %v6243_v40 = vld [vmem:[#allocation45_spill] sm:$0xff] }
 0x11e   :  { %905 = vmatpush.msrb.mxu2 %v3982_v48  ;;  %925 = vmatpush.msrb.mxu3 %v3980_v47  ;;  %v168_v41 = vadd.f32 %v6243_v40, %v6242_v39 }
 0x11f   :  { %866 = vmatpush.msra.mxu0 %v3972_v45  ;;  %886 = vmatpush.msrb.mxu1 %v3975_v46  ;;  %v209_v45 = vadd.f32 %v6245_v43, %v6244_v42 }
 0x120   :  { %906 = vmatpush.msrb.mxu2 %v3994_v52  ;;  %926 = vmatpush.msrb.mxu3 %v3992_v51 }
 0x121   :  { %867 = vmatpush.msra.mxu0 %v3986_v49  ;;  %887 = vmatpush.msrb.mxu1 %v3988_v50 }
 0x122   :  { %907 = vmatpush.msrb.mxu2 %v4006_v56  ;;  %927 = vmatpush.msrb.mxu3 %v6217_v9 }
 0x123   :  { %868 = vmatpush.msra.mxu0 %v6218_v13  ;;  %888 = vmatpush.msrb.mxu1 %v6219_v14 }
 0x124   :  { %908 = vmatpush.msrb.mxu2 %v6220_v15  ;;  %928 = vmatpush.msrb.mxu3 %v6221_v16 }
 0x125   :  { %869 = vmatpush.msra.mxu0 %v6222_v18  ;;  %889 = vmatpush.msrb.mxu1 %v6223_v19 }
 0x126   :  { %909 = vmatpush.msrb.mxu2 %v6224_v20  ;;  %929 = vmatpush.msrb.mxu3 %v6225_v21 }
 0x127   :  { %870 = vmatpush.msra.mxu0 %v6226_v22  ;;  %890 = vmatpush.msrb.mxu1 %v6227_v23 }
 0x128   :  { %910 = vmatpush.msrb.mxu2 %v6228_v24  ;;  %930 = vmatpush.msrb.mxu3 %v6229_v25 }
 0x129   :  { %871 = vmatpush.msra.mxu0 %v6230_v26  ;;  %891 = vmatpush.msrb.mxu1 %v6231_v27 }
 0x12a   :  { %911 = vmatpush.msrb.mxu2 %v6232_v28  ;;  %931 = vmatpush.msrb.mxu3 %v6233_v29 }
 0x12b   :  { %872 = vmatpush.msra.mxu0 %v6234_v30  ;;  %892 = vmatpush.msrb.mxu1 %v6235_v32 }
 0x12c   :  { %912 = vmatpush.msrb.mxu2 %v6236_v33  ;;  %932 = vmatpush.msrb.mxu3 %v6237_v34 }
 0x12d   :  { %873 = vmatpush.msra.mxu0 %v6238_v35  ;;  %893 = vmatpush.msrb.mxu1 %v6239_v36 }
 0x12e   :  { %913 = vmatpush.msrb.mxu2 %v6240_v37  ;;  %933 = vmatpush.msrb.mxu3 %v6241_v38 }
 0x18a   :  { %v577_v46 = vpop.f32.mrf.mxu0  ;;  %v597_v47 = vpop.f32.mrf.mxu1 }
 0x18b   :  { %v640_v48 = vadd.f32 %v577_v46, %v168_v41  ;;  %v641_v49 = vadd.f32 %v597_v47, %v209_v45 }
 0x18d   :  { %v644_v50 = vsub.f32 0.0, %v640_v48  ;;  %v662_v51 = vsub.f32 0.0, %v641_v49 }
 0x18f   :  { %v645_v52 = vmul.f32 1.442695, %v644_v50  ;;  %v663_v54 = vmul.f32 1.442695, %v662_v51 }
 0x191   :  { %3250 = vpow2.f32 %v645_v52  ;;  %v637_v7 = vpop.f32.mrf.mxu3  ;;  %v617_v10 = vpop.f32.mrf.mxu2 }
 0x192   :  { %3252 = vpow2.f32 %v663_v54  ;;  %v643_v62 = vadd.f32 %v637_v7, %v291_v11  ;;  %v642_v5 = vadd.f32 %v617_v10, %v250_v44 }
 0x194   :  { %v681_v12 = vsub.f32 0.0, %v643_v62 }
 0x196   :  { %v682_v31 = vmul.f32 1.442695, %v681_v12 }
 0x197   :  { %v3251_v4 = vpop.eup %3250 }
 0x198   :  { %v3253_v61 = vpop.eup %3252  ;;  %v647_v6 = vadd.f32 1.0, %v3251_v4  ;;  %3254 = vpow2.f32 %v682_v31 }
 0x199   :  { %v665_v58 = vadd.f32 1.0, %v3253_v61 }
 0x19a   :  { %3256 = vrcp.f32 %v647_v6  ;;  %v659_v18 = vand.u32 2147483648, %v647_v6  ;;  %v657_v43 = vand.u32 2147483647, %v647_v6  ;;  %vm653_vm15 = vweird.f32 %v647_v6 }
 0x19b   :  { %3258 = vrcp.f32 %v665_v58  ;;  %v677_v40 = vand.u32 2147483648, %v665_v58  ;;  %v675_v46 = vand.u32 2147483647, %v665_v58  ;;  %vm671_vm0 = vweird.f32 %v665_v58 }
 0x19c   :  { %v660_v49 = vor.u32 1.1754944e-38, %v659_v18  ;;  %vm658_vm3 = vcmp.eq.f32.partialorder %v657_v43, 8.507059e+37  ;;  %v4420_v18 = vld [vmem:[#allocation4 + $0x1d0] sm:$0xff]  ;;  %v4429_v43 = vld [vmem:[#allocation4 + $0x1a8] sm:$0xff] }
 0x19d   :  { %v678_v52 = vor.u32 1.1754944e-38, %v677_v40  ;;  %vm676_vm4 = vcmp.eq.f32.partialorder %v675_v46, 8.507059e+37  ;;  %v4423_v40 = vld [vmem:[#allocation4 + $0x1d8] sm:$0xff] }
 0x19e   :  { %v3255_v59 = vpop.eup %3254  ;;  %v4435_v46 = vld [vmem:[#allocation4 + $0x1b8] sm:$0xff] }
 0x19f   :  { %v684_v2 = vadd.f32 1.0, %v3255_v59 }
 0x1a0   :  { %v3257_v8 = vpop.eup %3256 }
 0x1a1   :  { %v3259_v1 = vpop.eup %3258  ;;  %v649_v63 = vmul.f32 %v3257_v8, %v647_v6  ;;  %3260 = vrcp.f32 %v684_v2  ;;  %vm654_vm13 = vweird.f32 %v3257_v8  ;;  %v696_v10 = vand.u32 2147483648, %v684_v2 }
 0x1a2   :  { %v667_v57 = vmul.f32 %v3259_v1, %v665_v58  ;;  %3262 = vtanh.f32 %v642_v5  ;;  %vm672_vm14 = vweird.f32 %v3259_v1  ;;  %vm655_vm1 = vmor %vm653_vm15, %vm654_vm13  ;;  %vm690_vm6 = vweird.f32 %v684_v2 }
 0x1a3   :  { %v650_v13 = vsub.f32 1.0, %v649_v63  ;;  %vm673_vm2 = vmor %vm671_vm0, %vm672_vm14  ;;  %v694_v59 = vand.u32 2147483647, %v684_v2  ;;  %v697_v44 = vor.u32 1.1754944e-38, %v696_v10  ;;  %v4408_v63 = vld [vmem:[#allocation4 + $0x1f0] sm:$0xff]  ;;  %v4486_v10 = vld [vmem:[#allocation4 + $0x100] sm:$0xff] }
 0x1a4   :  { %v668_v14 = vsub.f32 1.0, %v667_v57  ;;  %v4411_v57 = vld [vmem:[#allocation4 + $0x1f8] sm:$0xff] }
 0x1a5   :  { %v651_v41 = vmul.f32 %v3257_v8, %v650_v13  ;;  %vm695_vm8 = vcmp.eq.f32.partialorder %v694_v59, 8.507059e+37  ;;  %v4414_v13 = vld [vmem:[#allocation4 + $0x1c0] sm:$0xff]  ;;  %v4489_v59 = vld [vmem:[#allocation4 + $0x108] sm:$0xff] }
 0x1a6   :  { %v669_v45 = vmul.f32 %v3259_v1, %v668_v14  ;;  %v4417_v14 = vld [vmem:[#allocation4 + $0x1c8] sm:$0xff] }
 0x1a7   :  { %v3261_v47 = vpop.eup %3260  ;;  %v652_v48 = vadd.f32 %v3257_v8, %v651_v41  ;;  %v4426_v41 = vld [vmem:[#allocation4 + $0x1a0] sm:$0xff] }
 0x1a8   :  { %v670_v50 = vadd.f32 %v3259_v1, %v669_v45  ;;  %v686_v51 = vmul.f32 %v3261_v47, %v684_v2  ;;  %v3263_v3 = vpop.eup %3262  ;;  %vm691_vm5 = vweird.f32 %v3261_v47  ;;  %v4405_v2 = vld [vmem:[#allocation4 + $0x1e8] sm:$0xff]  ;;  %v4432_v45 = vld [vmem:[#allocation4 + $0x1b0] sm:$0xff] }
 0x1a9   :  { %v656_v54 = vsel %vm655_vm1, %v3257_v8, %v652_v48  ;;  %vm692_vm7 = vmor %vm690_vm6, %vm691_vm5  ;;  %v4441_v48 = vld [vmem:[#allocation4 + $0x188] sm:$0xff] }
 0x1aa   :  { %v661_v11 = vsel %vm658_vm3, %v660_v49, %v656_v54  ;;  %v674_v7 = vsel %vm673_vm2, %v3259_v1, %v670_v50  ;;  %v687_v62 = vsub.f32 1.0, %v686_v51  ;;  %v4444_v49 = vld [vmem:[#allocation4 + $0x190] sm:$0xff]  ;;  %v4447_v50 = vld [vmem:[#allocation4 + $0x198] sm:$0xff]  ;;  %v4450_v51 = vld [vmem:[#allocation4 + $0x160] sm:$0xff] }
 0x1ab   :  { %v679_v12 = vsel %vm676_vm4, %v678_v52, %v674_v7  ;;  %v700_v31 = vmul.f32 %v3263_v3, %v661_v11  ;;  %v4453_v52 = vld [vmem:[#allocation4 + $0x168] sm:$0xff]  ;;  %v4456_v54 = vld [vmem:[#allocation4 + $0x170] sm:$0xff]  ;;  %v4459_v3 = vld [vmem:[#allocation4 + $0x178] sm:$0xff] }
 0x1ac   :  { %v699_v4 = vmul.f32 %v679_v12, %v4311_v53  ;;  %v688_v61 = vmul.f32 %v3261_v47, %v687_v62  ;;  %v4402_v53 = vld [vmem:[#allocation4 + $0x1e0] sm:$0xff]  ;;  %v4465_v7 = vld [vmem:[#allocation4 + $0x148] sm:$0xff]  ;;  %v4468_v62 = vld [vmem:[#allocation4 + $0x150] sm:$0xff] }
 0x1ad   :  { %v4462_v11 = vld [vmem:[#allocation4 + $0x140] sm:$0xff]  ;;  %v4471_v12 = vld [vmem:[#allocation4 + $0x158] sm:$0xff] }
 0x1ae   :  { %v4393_v6 = vadd.f32 %v700_v31, %v699_v4  ;;  %v689_v58 = vadd.f32 %v3261_v47, %v688_v61  ;;  %v4474_v31 = vld [vmem:[#allocation4 + $0x120] sm:$0xff]  ;;  %v4477_v4 = vld [vmem:[#allocation4 + $0x128] sm:$0xff]  ;;  %v4480_v61 = vld [vmem:[#allocation4 + $0x130] sm:$0xff] }
 0x1b0   :  { %3264 = vtanh.f32 %v4393_v6  ;;  %v693_v0 = vsel %vm692_vm7, %v3261_v47, %v689_v58  ;;  %v4438_v47 = vld [vmem:[#allocation4 + $0x180] sm:$0xff]  ;;  %v4483_v58 = vld [vmem:[#allocation4 + $0x138] sm:$0xff] }
 0x1b1   :  { %v698_v5 = vsel %vm695_vm8, %v697_v44, %v693_v0  ;;  %v4492_v0 = vld [vmem:[#allocation4 + $0x110] sm:$0xff]  ;;  %v4495_v44 = vld [vmem:[#allocation4 + $0x118] sm:$0xff] }
 0x1b2   :  { %6251 = vst [vmem:[#allocation17_spill] sm:$0xff] %v4492_v0 }
 0x1b3   :  { %6252 = vst [vmem:[#allocation18_spill] sm:$0xff] %v4495_v44 }
 0x1b6   :  { %v3265_v8 = vpop.eup %3264 }
 0x1b7   :  { %v4396_v1 = vmul.f32 %v3265_v8, %v698_v5  ;;  %v4498_v8 = vld [vmem:[#allocation4 + $0xe0] sm:$0xff]  ;;  %v4501_v5 = vld [vmem:[#allocation4 + $0xe8] sm:$0xff] }
 0x1b8   :  { %6253 = vst [vmem:[#allocation25_spill] sm:$0xff] %v4501_v5 }
 0x1b9   :  { %6250 = vst [vmem:[#allocation19_spill] sm:$0xff] %v4396_v1  ;;  %725 = vmatmul.f32.vlgmr.msrb.gmra.mxu0 %v4396_v1  ;;  %745 = vmatmul.f32.vlgmr.msra.gmra.mxu1 %v4396_v1 }
 0x1ba   :  { %765 = vmatmul.f32.vlgmr.msra.gmra.mxu2 %v4396_v1  ;;  %785 = vmatmul.f32.vlgmr.msra.gmra.mxu3 %v4396_v1  ;;  %v4504_v1 = vld [vmem:[#allocation4 + $0xf0] sm:$0xff] }
 0x1bb   :  { %1007 = vmatpush.msrb.mxu0 %v4402_v53  ;;  %1027 = vmatpush.msra.mxu1 %v4405_v2  ;;  %6254 = vst [vmem:[#allocation23_spill] sm:$0xff] %v4504_v1 }
 0x1bc   :  { %1047 = vmatpush.msra.mxu2 %v4408_v63  ;;  %1067 = vmatpush.msra.mxu3 %v4411_v57 }
 0x1bd   :  { %1008 = vmatpush.msrb.mxu0 %v4414_v13  ;;  %1028 = vmatpush.msra.mxu1 %v4417_v14 }
 0x1be   :  { %1048 = vmatpush.msra.mxu2 %v4420_v18  ;;  %1068 = vmatpush.msra.mxu3 %v4423_v40 }
 0x1bf   :  { %1009 = vmatpush.msrb.mxu0 %v4426_v41  ;;  %1029 = vmatpush.msra.mxu1 %v4429_v43 }
 0x1c0   :  { %1049 = vmatpush.msra.mxu2 %v4432_v45  ;;  %1069 = vmatpush.msra.mxu3 %v4435_v46 }
 0x1c1   :  { %1010 = vmatpush.msrb.mxu0 %v4438_v47  ;;  %1030 = vmatpush.msra.mxu1 %v4441_v48 }
 0x1c2   :  { %1050 = vmatpush.msra.mxu2 %v4444_v49  ;;  %1070 = vmatpush.msra.mxu3 %v4447_v50 }
 0x1c3   :  { %1011 = vmatpush.msrb.mxu0 %v4450_v51  ;;  %1031 = vmatpush.msra.mxu1 %v4453_v52 }
 0x1c4   :  { %1051 = vmatpush.msra.mxu2 %v4456_v54  ;;  %1071 = vmatpush.msra.mxu3 %v4459_v3 }
 0x1c5   :  { %1012 = vmatpush.msrb.mxu0 %v4462_v11  ;;  %1032 = vmatpush.msra.mxu1 %v4465_v7 }
 0x1c6   :  { %1052 = vmatpush.msra.mxu2 %v4468_v62  ;;  %1072 = vmatpush.msra.mxu3 %v4471_v12 }
 0x1c7   :  { %1013 = vmatpush.msrb.mxu0 %v4474_v31  ;;  %1033 = vmatpush.msra.mxu1 %v4477_v4 }
 0x1c8   :  { %1053 = vmatpush.msra.mxu2 %v4480_v61  ;;  %1073 = vmatpush.msra.mxu3 %v4483_v58 }
 0x1c9   :  { %1014 = vmatpush.msrb.mxu0 %v4486_v10  ;;  %1034 = vmatpush.msra.mxu1 %v4489_v59 }
 0x1ca   :  { %1054 = vmatpush.msra.mxu2 %v4492_v0  ;;  %1074 = vmatpush.msra.mxu3 %v4495_v44  ;;  %v4510_v0 = vld [vmem:[#allocation4 + $0xc0] sm:$0xff]  ;;  %v4513_v44 = vld [vmem:[#allocation4 + $0xc8] sm:$0xff] }
 0x1cb   :  { %1015 = vmatpush.msrb.mxu0 %v4498_v8  ;;  %1035 = vmatpush.msra.mxu1 %v4501_v5  ;;  %6255 = vst [vmem:[#allocation20_spill] sm:$0xff] %v4510_v0  ;;  %v4518_v5 = vld [vmem:[#allocation4 + $0xa0] sm:$0xff] }
 0x1cc   :  { %1055 = vmatpush.msra.mxu2 %v4504_v1  ;;  %1075 = vmatpush.msra.mxu3 %v4507_v17  ;;  %6256 = vst [vmem:[#allocation22_spill] sm:$0xff] %v4518_v5  ;;  %v4521_v1 = vld [vmem:[#allocation4 + $0xa8] sm:$0xff] }
 0x1cd   :  { %1016 = vmatpush.msrb.mxu0 %v4510_v0  ;;  %1036 = vmatpush.msra.mxu1 %v4513_v44  ;;  %6257 = vst [vmem:[#allocation29_spill] sm:$0xff] %v4521_v1  ;;  %v4526_v0 = vld [vmem:[#allocation4 + $0x80] sm:$0xff] }
 0x1ce   :  { %1056 = vmatpush.msra.mxu2 %v4006_v56  ;;  %1076 = vmatpush.msra.mxu3 %v6217_v9  ;;  %6258 = vst [vmem:[#allocation27_spill] sm:$0xff] %v4526_v0  ;;  %v6259_v56 = vld [vmem:[#allocation47_spill] sm:$0xff] }
 0x1cf   :  { %1017 = vmatpush.msrb.mxu0 %v4518_v5  ;;  %1037 = vmatpush.msra.mxu1 %v4521_v1  ;;  %v171_v9 = vadd.f32 %v6259_v56, %v6242_v39 }
 0x1d0   :  { %1057 = vmatpush.msra.mxu2 %v6220_v15  ;;  %1077 = vmatpush.msra.mxu3 %v6221_v16  ;;  %v6260_v15 = vld [vmem:[#allocation50_spill] sm:$0xff] }
 0x1d1   :  { %1018 = vmatpush.msrb.mxu0 %v4526_v0  ;;  %1038 = vmatpush.msra.mxu1 %v6223_v19  ;;  %v212_v16 = vadd.f32 %v6260_v15, %v6244_v42 }
 0x1d2   :  { %1058 = vmatpush.msra.mxu2 %v6224_v20  ;;  %1078 = vmatpush.msra.mxu3 %v6225_v21 }
 0x1d3   :  { %1019 = vmatpush.msrb.mxu0 %v6226_v22  ;;  %1039 = vmatpush.msra.mxu1 %v6227_v23 }
 0x1d4   :  { %1059 = vmatpush.msra.mxu2 %v6228_v24  ;;  %1079 = vmatpush.msra.mxu3 %v6229_v25 }
 0x1d5   :  { %1020 = vmatpush.msrb.mxu0 %v6230_v26  ;;  %1040 = vmatpush.msra.mxu1 %v6231_v27  ;;  %v6261_v27 = vld [vmem:[#allocation53_spill] sm:$0xff] }
 0x1d6   :  { %1060 = vmatpush.msra.mxu2 %v6232_v28  ;;  %1080 = vmatpush.msra.mxu3 %v6233_v29  ;;  %v294_v28 = vadd.f32 %v6261_v27, %v6246_v55 }
 0x1d7   :  { %1021 = vmatpush.msrb.mxu0 %v6234_v30  ;;  %1041 = vmatpush.msra.mxu1 %v6235_v32 }
 0x1d8   :  { %1061 = vmatpush.msra.mxu2 %v6236_v33  ;;  %1081 = vmatpush.msra.mxu3 %v6237_v34 }
 0x1d9   :  { %1022 = vmatpush.msrb.mxu0 %v6238_v35  ;;  %1042 = vmatpush.msra.mxu1 %v6239_v36 }
 0x1da   :  { %1062 = vmatpush.msra.mxu2 %v6240_v37  ;;  %1082 = vmatpush.msra.mxu3 %v6241_v38 }
 0x236   :  { %v726_v19 = vpop.f32.mrf.mxu0  ;;  %v746_v20 = vpop.f32.mrf.mxu1 }
 0x237   :  { %v789_v21 = vadd.f32 %v726_v19, %v171_v9  ;;  %v790_v22 = vadd.f32 %v746_v20, %v212_v16  ;;  %v6262_v9 = vld [vmem:[#allocation52_spill] sm:$0xff] }
 0x238   :  { %v253_v15 = vadd.f32 %v6262_v9, %v6248_v60 }
 0x239   :  { %v793_v23 = vsub.f32 0.0, %v789_v21  ;;  %v811_v24 = vsub.f32 0.0, %v790_v22 }
 0x23b   :  { %v794_v25 = vmul.f32 1.442695, %v793_v23  ;;  %v812_v26 = vmul.f32 1.442695, %v811_v24 }
 0x23d   :  { %3266 = vpow2.f32 %v794_v25  ;;  %v786_v29 = vpop.f32.mrf.mxu3  ;;  %v766_v38 = vpop.f32.mrf.mxu2 }
 0x23e   :  { %3268 = vpow2.f32 %v812_v26  ;;  %v792_v30 = vadd.f32 %v786_v29, %v294_v28  ;;  %v791_v20 = vadd.f32 %v766_v38, %v253_v15 }
 0x240   :  { %v830_v32 = vsub.f32 0.0, %v792_v30 }
 0x242   :  { %v831_v33 = vmul.f32 1.442695, %v830_v32 }
 0x243   :  { %v3267_v34 = vpop.eup %3266 }
 0x244   :  { %v3269_v35 = vpop.eup %3268  ;;  %v796_v36 = vadd.f32 1.0, %v3267_v34  ;;  %3270 = vpow2.f32 %v831_v33 }
 0x245   :  { %v814_v37 = vadd.f32 1.0, %v3269_v35 }
 0x246   :  { %3272 = vrcp.f32 %v796_v36  ;;  %v808_v26 = vand.u32 2147483648, %v796_v36  ;;  %v806_v29 = vand.u32 2147483647, %v796_v36  ;;  %vm802_vm11 = vweird.f32 %v796_v36 }
 0x247   :  { %3274 = vrcp.f32 %v814_v37  ;;  %v826_v27 = vand.u32 2147483648, %v814_v37  ;;  %v824_v32 = vand.u32 2147483647, %v814_v37  ;;  %vm820_vm12 = vweird.f32 %v814_v37 }
 0x248   :  { %v809_v35 = vor.u32 1.1754944e-38, %v808_v26  ;;  %vm807_vm15 = vcmp.eq.f32.partialorder %v806_v29, 8.507059e+37 }
 0x249   :  { %v827_v9 = vor.u32 1.1754944e-38, %v826_v27  ;;  %vm825_vm0 = vcmp.eq.f32.partialorder %v824_v32, 8.507059e+37 }
 0x24a   :  { %v3271_v56 = vpop.eup %3270 }
 0x24b   :  { %v833_v16 = vadd.f32 1.0, %v3271_v56 }
 0x24c   :  { %v3273_v19 = vpop.eup %3272 }
 0x24d   :  { %v3275_v21 = vpop.eup %3274  ;;  %v798_v22 = vmul.f32 %v3273_v19, %v796_v36  ;;  %3276 = vrcp.f32 %v833_v16  ;;  %vm803_vm9 = vweird.f32 %v3273_v19  ;;  %v845_v26 = vand.u32 2147483648, %v833_v16 }
 0x24e   :  { %v816_v23 = vmul.f32 %v3275_v21, %v814_v37  ;;  %3278 = vtanh.f32 %v791_v20  ;;  %vm821_vm10 = vweird.f32 %v3275_v21  ;;  %vm804_vm13 = vmor %vm802_vm11, %vm803_vm9  ;;  %vm839_vm2 = vweird.f32 %v833_v16 }
 0x24f   :  { %v799_v24 = vsub.f32 1.0, %v798_v22  ;;  %vm822_vm14 = vmor %vm820_vm12, %vm821_vm10  ;;  %v846_v29 = vor.u32 1.1754944e-38, %v845_v26  ;;  %v4646_v26 = vld [vmem:[#allocation4 + $0x50] sm:$0xff] }
 0x250   :  { %v817_v25 = vsub.f32 1.0, %v816_v23  ;;  %6282 = vst [vmem:[#allocation41_spill] sm:$0xff] %v4646_v26 }
 0x251   :  { %v800_v28 = vmul.f32 %v3273_v19, %v799_v24 }
 0x252   :  { %v818_v30 = vmul.f32 %v3275_v21, %v817_v25 }
 0x253   :  { %v3277_v33 = vpop.eup %3276  ;;  %v801_v34 = vadd.f32 %v3273_v19, %v800_v28 }
 0x254   :  { %v819_v38 = vadd.f32 %v3275_v21, %v818_v30  ;;  %v835_v56 = vmul.f32 %v3277_v33, %v833_v16  ;;  %v3279_v20 = vpop.eup %3278  ;;  %vm840_vm1 = vweird.f32 %v3277_v33 }
 0x255   :  { %v805_v15 = vsel %vm804_vm13, %v3273_v19, %v801_v34  ;;  %v843_v19 = vand.u32 2147483647, %v833_v16  ;;  %vm841_vm3 = vmor %vm839_vm2, %vm840_vm1  ;;  %v6267_v16 = vld [vmem:[#allocation23_spill] sm:$0xff]  ;;  %v4604_v34 = vld [vmem:[#allocation4 + $0xd0] sm:$0xff] }
 0x256   :  { %v810_v22 = vsel %vm807_vm15, %v809_v35, %v805_v15  ;;  %v823_v23 = vsel %vm822_vm14, %v3275_v21, %v819_v38  ;;  %v836_v24 = vsub.f32 1.0, %v835_v56  ;;  %6269 = vst [vmem:[#allocation26_spill] sm:$0xff] %v4604_v34  ;;  %v4607_v35 = vld [vmem:[#allocation4 + $0xd8] sm:$0xff]  ;;  %v4612_v38 = vld [vmem:[#allocation4 + $0xb0] sm:$0xff] }
 0x257   :  { %v828_v25 = vsel %vm825_vm0, %v827_v9, %v823_v23  ;;  %v849_v60 = vmul.f32 %v3279_v20, %v810_v22  ;;  %vm844_vm4 = vcmp.eq.f32.partialorder %v843_v19, 8.507059e+37  ;;  %6270 = vst [vmem:[#allocation34_spill] sm:$0xff] %v4607_v35  ;;  %v4615_v56 = vld [vmem:[#allocation4 + $0xb8] sm:$0xff]  ;;  %v4619_v9 = vld [vmem:[#allocation4 + $0x88] sm:$0xff]  ;;  %v4622_v15 = vld [vmem:[#allocation4 + $0x90] sm:$0xff] }
 0x258   :  { %v848_v55 = vmul.f32 %v828_v25, %v4393_v6  ;;  %v837_v28 = vmul.f32 %v3277_v33, %v836_v24  ;;  %v6266_v6 = vld [vmem:[#allocation25_spill] sm:$0xff]  ;;  %6271 = vst [vmem:[#allocation31_spill] sm:$0xff] %v4612_v38  ;;  %v4625_v20 = vld [vmem:[#allocation4 + $0x98] sm:$0xff]  ;;  %v4628_v22 = vld [vmem:[#allocation4 + $0x60] sm:$0xff] }
 0x259   :  { %6272 = vst [vmem:[#allocation24_spill] sm:$0xff] %v4615_v56  ;;  %v4631_v23 = vld [vmem:[#allocation4 + $0x68] sm:$0xff]  ;;  %v4634_v24 = vld [vmem:[#allocation4 + $0x70] sm:$0xff]  ;;  %v4637_v25 = vld [vmem:[#allocation4 + $0x78] sm:$0xff] }
 0x25a   :  { %v4557_v36 = vadd.f32 %v849_v60, %v848_v55  ;;  %v838_v37 = vadd.f32 %v3277_v33, %v837_v28  ;;  %v6264_v55 = vld [vmem:[#allocation17_spill] sm:$0xff]  ;;  %v6265_v60 = vld [vmem:[#allocation18_spill] sm:$0xff]  ;;  %6273 = vst [vmem:[#allocation30_spill] sm:$0xff] %v4619_v9  ;;  %v4640_v28 = vld [vmem:[#allocation4 + $0x40] sm:$0xff] }
 0x25b   :  { %6274 = vst [vmem:[#allocation37_spill] sm:$0xff] %v4622_v15  ;;  %v4649_v19 = vld [vmem:[#allocation4 + $0x58] sm:$0xff] }
 0x25c   :  { %3280 = vtanh.f32 %v4557_v36  ;;  %v842_v27 = vsel %vm841_vm3, %v3277_v33, %v838_v37  ;;  %v6268_v33 = vld [vmem:[#allocation20_spill] sm:$0xff]  ;;  %6275 = vst [vmem:[#allocation35_spill] sm:$0xff] %v4625_v20  ;;  %v4643_v37 = vld [vmem:[#allocation4 + $0x48] sm:$0xff] }
 0x25d   :  { %v847_v30 = vsel %vm844_vm4, %v846_v29, %v842_v27  ;;  %6276 = vst [vmem:[#allocation28_spill] sm:$0xff] %v4628_v22  ;;  %v4652_v27 = vld [vmem:[#allocation4 + $0x20] sm:$0xff]  ;;  %v4655_v29 = vld [vmem:[#allocation4 + $0x28] sm:$0xff] }
 0x25e   :  { %6277 = vst [vmem:[#allocation33_spill] sm:$0xff] %v4631_v23 }
 0x25f   :  { %6278 = vst [vmem:[#allocation39_spill] sm:$0xff] %v4634_v24 }
 0x260   :  { %6279 = vst [vmem:[#allocation38_spill] sm:$0xff] %v4637_v25 }
 0x261   :  { %6280 = vst [vmem:[#allocation32_spill] sm:$0xff] %v4640_v28 }
 0x262   :  { %v3281_v21 = vpop.eup %3280  ;;  %6281 = vst [vmem:[#allocation36_spill] sm:$0xff] %v4643_v37 }
 0x263   :  { %v4560_v32 = vmul.f32 %v3281_v21, %v847_v30  ;;  %6283 = vst [vmem:[#allocation40_spill] sm:$0xff] %v4649_v19  ;;  %v4658_v21 = vld [vmem:[#allocation4 + $0x30] sm:$0xff]  ;;  %v4661_v30 = vld [vmem:[#allocation4 + $0x38] sm:$0xff] }
 0x264   :  { %6284 = vst [vmem:[#allocation45_spill] sm:$0xff] %v4652_v27 }
 0x265   :  { %6263 = vst [vmem:[#allocation21_spill] sm:$0xff] %v4560_v32  ;;  %874 = vmatmul.f32.vlgmr.msra.gmra.mxu0 %v4560_v32  ;;  %894 = vmatmul.f32.vlgmr.msrb.gmra.mxu1 %v4560_v32 }
 0x266   :  { %914 = vmatmul.f32.vlgmr.msrb.gmra.mxu2 %v4560_v32  ;;  %934 = vmatmul.f32.vlgmr.msrb.gmra.mxu3 %v4560_v32  ;;  %6285 = vst [vmem:[#allocation46_spill] sm:$0xff] %v4655_v29  ;;  %v4664_v32 = vld [vmem:[#allocation4] sm:$0xff] }
 0x267   :  { %1156 = vmatpush.msra.mxu0 %v4402_v53  ;;  %1176 = vmatpush.msrb.mxu1 %v4405_v2  ;;  %6286 = vst [vmem:[#allocation49_spill] sm:$0xff] %v4658_v21 }
 0x268   :  { %1196 = vmatpush.msrb.mxu2 %v4408_v63  ;;  %1216 = vmatpush.msrb.mxu3 %v4411_v57  ;;  %6287 = vst [vmem:[#allocation48_spill] sm:$0xff] %v4661_v30 }
 0x269   :  { %1157 = vmatpush.msra.mxu0 %v4414_v13  ;;  %1177 = vmatpush.msrb.mxu1 %v4417_v14  ;;  %6288 = vst [vmem:[#allocation47_spill] sm:$0xff] %v4664_v32 }
 0x26a   :  { %1197 = vmatpush.msrb.mxu2 %v4420_v18  ;;  %1217 = vmatpush.msrb.mxu3 %v4423_v40 }
 0x26b   :  { %1158 = vmatpush.msra.mxu0 %v4426_v41  ;;  %1178 = vmatpush.msrb.mxu1 %v4429_v43 }
 0x26c   :  { %1198 = vmatpush.msrb.mxu2 %v4432_v45  ;;  %1218 = vmatpush.msrb.mxu3 %v4435_v46 }
 0x26d   :  { %1159 = vmatpush.msra.mxu0 %v4438_v47  ;;  %1179 = vmatpush.msrb.mxu1 %v4441_v48 }
 0x26e   :  { %1199 = vmatpush.msrb.mxu2 %v4444_v49  ;;  %1219 = vmatpush.msrb.mxu3 %v4447_v50 }
 0x26f   :  { %1160 = vmatpush.msra.mxu0 %v4450_v51  ;;  %1180 = vmatpush.msrb.mxu1 %v4453_v52 }
 0x270   :  { %1200 = vmatpush.msrb.mxu2 %v4456_v54  ;;  %1220 = vmatpush.msrb.mxu3 %v4459_v3 }
 0x271   :  { %1161 = vmatpush.msra.mxu0 %v4462_v11  ;;  %1181 = vmatpush.msrb.mxu1 %v4465_v7 }
 0x272   :  { %1201 = vmatpush.msrb.mxu2 %v4468_v62  ;;  %1221 = vmatpush.msrb.mxu3 %v4471_v12 }
 0x273   :  { %1162 = vmatpush.msra.mxu0 %v4474_v31  ;;  %1182 = vmatpush.msrb.mxu1 %v4477_v4 }
 0x274   :  { %1202 = vmatpush.msrb.mxu2 %v4480_v61  ;;  %1222 = vmatpush.msrb.mxu3 %v4483_v58 }
 0x275   :  { %1163 = vmatpush.msra.mxu0 %v4486_v10  ;;  %1183 = vmatpush.msrb.mxu1 %v4489_v59 }
 0x276   :  { %1203 = vmatpush.msrb.mxu2 %v6264_v55  ;;  %1223 = vmatpush.msrb.mxu3 %v6265_v60 }
 0x277   :  { %1164 = vmatpush.msra.mxu0 %v4498_v8  ;;  %1184 = vmatpush.msrb.mxu1 %v6266_v6 }
 0x278   :  { %1204 = vmatpush.msrb.mxu2 %v6267_v16  ;;  %1224 = vmatpush.msrb.mxu3 %v4507_v17 }
 0x279   :  { %1165 = vmatpush.msra.mxu0 %v6268_v33  ;;  %1185 = vmatpush.msrb.mxu1 %v4513_v44 }
 0x27a   :  { %1205 = vmatpush.msrb.mxu2 %v4604_v34  ;;  %1225 = vmatpush.msrb.mxu3 %v4607_v35 }
 0x27b   :  { %1166 = vmatpush.msra.mxu0 %v4518_v5  ;;  %1186 = vmatpush.msrb.mxu1 %v4521_v1 }
 0x27c   :  { %1206 = vmatpush.msrb.mxu2 %v4612_v38  ;;  %1226 = vmatpush.msrb.mxu3 %v4615_v56 }
 0x27d   :  { %1167 = vmatpush.msra.mxu0 %v4526_v0  ;;  %1187 = vmatpush.msrb.mxu1 %v4619_v9 }
 0x27e   :  { %1207 = vmatpush.msrb.mxu2 %v4622_v15  ;;  %1227 = vmatpush.msrb.mxu3 %v4625_v20  ;;  %v6294_v15 = vld [vmem:[#allocation71_spill] sm:$0xff] }
 0x27f   :  { %1168 = vmatpush.msra.mxu0 %v4628_v22  ;;  %1188 = vmatpush.msrb.mxu1 %v4631_v23 }
 0x280   :  { %1208 = vmatpush.msrb.mxu2 %v4634_v24  ;;  %1228 = vmatpush.msrb.mxu3 %v4637_v25 }
 0x281   :  { %1169 = vmatpush.msra.mxu0 %v4640_v28  ;;  %1189 = vmatpush.msrb.mxu1 %v4643_v37 }
 0x282   :  { %1209 = vmatpush.msrb.mxu2 %v4646_v26  ;;  %1229 = vmatpush.msrb.mxu3 %v4649_v19  ;;  %v4667_v19 = vld [vmem:[#allocation4 + $0x8] sm:$0xff] }
 0x283   :  { %1170 = vmatpush.msra.mxu0 %v4652_v27  ;;  %1190 = vmatpush.msrb.mxu1 %v4655_v29  ;;  %6289 = vst [vmem:[#allocation50_spill] sm:$0xff] %v4667_v19  ;;  %v4670_v27 = vld [vmem:[#allocation4 + $0x10] sm:$0xff]  ;;  %v4673_v29 = vld [vmem:[#allocation4 + $0x18] sm:$0xff] }
 0x284   :  { %1210 = vmatpush.msrb.mxu2 %v4658_v21  ;;  %1230 = vmatpush.msrb.mxu3 %v4661_v30  ;;  %6290 = vst [vmem:[#allocation53_spill] sm:$0xff] %v4670_v27  ;;  %v6292_v21 = vld [vmem:[#allocation51_spill] sm:$0xff]  ;;  %v6293_v30 = vld [vmem:[#allocation54_spill] sm:$0xff] }
 0x285   :  { %1171 = vmatpush.msra.mxu0 %v4664_v32  ;;  %1191 = vmatpush.msrb.mxu1 %v4667_v19  ;;  %6291 = vst [vmem:[#allocation52_spill] sm:$0xff] %v4673_v29  ;;  %v174_v26 = vadd.f32 %v6292_v21, %v6242_v39  ;;  %v215_v37 = vadd.f32 %v6293_v30, %v6244_v42 }
 0x286   :  { %1211 = vmatpush.msrb.mxu2 %v4670_v27  ;;  %1231 = vmatpush.msrb.mxu3 %v4673_v29  ;;  %v6295_v27 = vld [vmem:[#allocation57_spill] sm:$0xff] }
 0x287   :  { %v297_v9 = vadd.f32 %v6295_v27, %v6294_v15 }
 0x2e2   :  { %v875_v28 = vpop.f32.mrf.mxu0  ;;  %v895_v32 = vpop.f32.mrf.mxu1 }
 0x2e3   :  { %v938_v25 = vadd.f32 %v875_v28, %v174_v26  ;;  %v939_v24 = vadd.f32 %v895_v32, %v215_v37 }
 0x2e5   :  { %v942_v23 = vsub.f32 0.0, %v938_v25  ;;  %v960_v19 = vsub.f32 0.0, %v939_v24  ;;  %v6297_v25 = vld [vmem:[#allocation56_spill] sm:$0xff] }
 0x2e7   :  { %v943_v22 = vmul.f32 1.442695, %v942_v23  ;;  %v961_v20 = vmul.f32 1.442695, %v960_v19  ;;  %v6296_v23 = vld [vmem:[#allocation73_spill] sm:$0xff] }
 0x2e8   :  { %v256_v28 = vadd.f32 %v6297_v25, %v6296_v23 }
 0x2e9   :  { %3282 = vpow2.f32 %v943_v22  ;;  %v935_v0 = vpop.f32.mrf.mxu3  ;;  %v915_v32 = vpop.f32.mrf.mxu2 }
 0x2ea   :  { %3284 = vpow2.f32 %v961_v20  ;;  %v941_v29 = vadd.f32 %v935_v0, %v297_v9  ;;  %v940_v22 = vadd.f32 %v915_v32, %v256_v28 }
 0x2ec   :  { %v979_v56 = vsub.f32 0.0, %v941_v29 }
 0x2ee   :  { %v980_v21 = vmul.f32 1.442695, %v979_v56 }
 0x2ef   :  { %v3283_v39 = vpop.eup %3282 }
 0x2f0   :  { %v3285_v38 = vpop.eup %3284  ;;  %v945_v30 = vadd.f32 1.0, %v3283_v39  ;;  %3286 = vpow2.f32 %v980_v21 }
 0x2f1   :  { %v963_v42 = vadd.f32 1.0, %v3285_v38 }
 0x2f2   :  { %3288 = vrcp.f32 %v945_v30  ;;  %v957_v27 = vand.u32 2147483648, %v945_v30  ;;  %v955_v29 = vand.u32 2147483647, %v945_v30  ;;  %vm951_vm7 = vweird.f32 %v945_v30 }
 0x2f3   :  { %3290 = vrcp.f32 %v963_v42  ;;  %v975_v39 = vand.u32 2147483648, %v963_v42  ;;  %v973_v15 = vand.u32 2147483647, %v963_v42  ;;  %vm969_vm8 = vweird.f32 %v963_v42 }
 0x2f4   :  { %v958_v32 = vor.u32 1.1754944e-38, %v957_v27  ;;  %vm956_vm11 = vcmp.eq.f32.partialorder %v955_v29, 8.507059e+37 }
 0x2f5   :  { %vm974_vm12 = vcmp.eq.f32.partialorder %v973_v15, 8.507059e+37 }
 0x2f6   :  { %v3287_v24 = vpop.eup %3286 }
 0x2f7   :  { %v982_v37 = vadd.f32 1.0, %v3287_v24 }
 0x2f8   :  { %v3289_v26 = vpop.eup %3288 }
 0x2f9   :  { %v3291_v19 = vpop.eup %3290  ;;  %v947_v20 = vmul.f32 %v3289_v26, %v945_v30  ;;  %3292 = vrcp.f32 %v982_v37  ;;  %vm952_vm5 = vweird.f32 %v3289_v26  ;;  %v994_v27 = vand.u32 2147483648, %v982_v37 }
 0x2fa   :  { %v965_v0 = vmul.f32 %v3291_v19, %v963_v42  ;;  %3294 = vtanh.f32 %v940_v22  ;;  %vm970_vm6 = vweird.f32 %v3291_v19  ;;  %vm953_vm9 = vmor %vm951_vm7, %vm952_vm5  ;;  %vm988_vm14 = vweird.f32 %v982_v37 }
 0x2fb   :  { %v948_v56 = vsub.f32 1.0, %v947_v20  ;;  %vm971_vm10 = vmor %vm969_vm8, %vm970_vm6  ;;  %v976_v20 = vor.u32 1.1754944e-38, %v975_v39  ;;  %v995_v29 = vor.u32 1.1754944e-38, %v994_v27  ;;  %v6317_v27 = vld [vmem:[#allocation45_spill] sm:$0xff] }
 0x2fc   :  { %v966_v9 = vsub.f32 1.0, %v965_v0 }
 0x2fd   :  { %v949_v38 = vmul.f32 %v3289_v26, %v948_v56 }
 0x2fe   :  { %v967_v21 = vmul.f32 %v3291_v19, %v966_v9 }
 0x2ff   :  { %v3293_v1 = vpop.eup %3292  ;;  %v950_v25 = vadd.f32 %v3289_v26, %v949_v38 }
 0x300   :  { %v968_v24 = vadd.f32 %v3291_v19, %v967_v21  ;;  %v984_v28 = vmul.f32 %v3293_v1, %v982_v37  ;;  %v3295_v22 = vpop.eup %3294  ;;  %vm989_vm13 = vweird.f32 %v3293_v1 }
 0x301   :  { %v954_v0 = vsel %vm953_vm9, %v3289_v26, %v950_v25  ;;  %v992_v26 = vand.u32 2147483647, %v982_v37  ;;  %vm990_vm15 = vmor %vm988_vm14, %vm989_vm13  ;;  %v6305_v37 = vld [vmem:[#allocation27_spill] sm:$0xff]  ;;  %v6306_v25 = vld [vmem:[#allocation30_spill] sm:$0xff] }
 0x302   :  { %v959_v23 = vsel %vm956_vm11, %v958_v32, %v954_v0  ;;  %v972_v56 = vsel %vm971_vm10, %v3291_v19, %v968_v24  ;;  %v985_v5 = vsub.f32 1.0, %v984_v28  ;;  %v6307_v32 = vld [vmem:[#allocation37_spill] sm:$0xff]  ;;  %v6308_v24 = vld [vmem:[#allocation35_spill] sm:$0xff]  ;;  %v6309_v28 = vld [vmem:[#allocation28_spill] sm:$0xff] }
 0x303   :  { %v977_v9 = vsel %vm974_vm12, %v976_v20, %v972_v56  ;;  %v998_v35 = vmul.f32 %v3295_v22, %v959_v23  ;;  %vm993_vm0 = vcmp.eq.f32.partialorder %v992_v26, 8.507059e+37  ;;  %v6304_v23 = vld [vmem:[#allocation24_spill] sm:$0xff]  ;;  %v6310_v20 = vld [vmem:[#allocation33_spill] sm:$0xff]  ;;  %v6311_v0 = vld [vmem:[#allocation39_spill] sm:$0xff] }
 0x304   :  { %v997_v34 = vmul.f32 %v977_v9, %v4557_v36  ;;  %v986_v38 = vmul.f32 %v3293_v1, %v985_v5  ;;  %v6300_v5 = vld [vmem:[#allocation34_spill] sm:$0xff]  ;;  %v6313_v56 = vld [vmem:[#allocation32_spill] sm:$0xff] }
 0x305   :  { %v6301_v36 = vld [vmem:[#allocation22_spill] sm:$0xff]  ;;  %v6314_v9 = vld [vmem:[#allocation36_spill] sm:$0xff] }
 0x306   :  { %v4685_v30 = vadd.f32 %v998_v35, %v997_v34  ;;  %v987_v42 = vadd.f32 %v3293_v1, %v986_v38  ;;  %v6302_v34 = vld [vmem:[#allocation29_spill] sm:$0xff]  ;;  %v6303_v35 = vld [vmem:[#allocation31_spill] sm:$0xff]  ;;  %v6312_v22 = vld [vmem:[#allocation38_spill] sm:$0xff] }
 0x307   :  { %v6315_v38 = vld [vmem:[#allocation41_spill] sm:$0xff]  ;;  %v6318_v26 = vld [vmem:[#allocation46_spill] sm:$0xff] }
 0x308   :  { %3296 = vtanh.f32 %v4685_v30  ;;  %v991_v39 = vsel %vm990_vm15, %v3293_v1, %v987_v42  ;;  %v6299_v1 = vld [vmem:[#allocation26_spill] sm:$0xff]  ;;  %v6316_v42 = vld [vmem:[#allocation40_spill] sm:$0xff] }
 0x309   :  { %v996_v19 = vsel %vm993_vm0, %v995_v29, %v991_v39  ;;  %v6319_v39 = vld [vmem:[#allocation49_spill] sm:$0xff]  ;;  %v6320_v29 = vld [vmem:[#allocation48_spill] sm:$0xff] }
 0x30e   :  { %v3297_v15 = vpop.eup %3296 }
 0x30f   :  { %v4688_v21 = vmul.f32 %v3297_v15, %v996_v19  ;;  %v6321_v15 = vld [vmem:[#allocation47_spill] sm:$0xff]  ;;  %v6322_v19 = vld [vmem:[#allocation50_spill] sm:$0xff] }
 0x311   :  { %6298 = vst [vmem:[#allocation17_spill] sm:$0xff] %v4688_v21  ;;  %1023 = vmatmul.f32.vlgmr.msrb.gmra.mxu0 %v4688_v21  ;;  %1043 = vmatmul.f32.vlgmr.msra.gmra.mxu1 %v4688_v21 }
 0x312   :  { %1063 = vmatmul.f32.vlgmr.msra.gmra.mxu2 %v4688_v21  ;;  %1083 = vmatmul.f32.vlgmr.msra.gmra.mxu3 %v4688_v21  ;;  %v6323_v21 = vld [vmem:[#allocation53_spill] sm:$0xff] }
 0x313   :  { %1305 = vmatpush.msrb.mxu0 %v4402_v53  ;;  %1325 = vmatpush.msra.mxu1 %v4405_v2 }
 0x314   :  { %1345 = vmatpush.msra.mxu2 %v4408_v63  ;;  %1365 = vmatpush.msra.mxu3 %v4411_v57 }
 0x315   :  { %1306 = vmatpush.msrb.mxu0 %v4414_v13  ;;  %1326 = vmatpush.msra.mxu1 %v4417_v14 }
 0x316   :  { %1346 = vmatpush.msra.mxu2 %v4420_v18  ;;  %1366 = vmatpush.msra.mxu3 %v4423_v40 }
 0x317   :  { %1307 = vmatpush.msrb.mxu0 %v4426_v41  ;;  %1327 = vmatpush.msra.mxu1 %v4429_v43 }
 0x318   :  { %1347 = vmatpush.msra.mxu2 %v4432_v45  ;;  %1367 = vmatpush.msra.mxu3 %v4435_v46 }
 0x319   :  { %1308 = vmatpush.msrb.mxu0 %v4438_v47  ;;  %1328 = vmatpush.msra.mxu1 %v4441_v48 }
 0x31a   :  { %1348 = vmatpush.msra.mxu2 %v4444_v49  ;;  %1368 = vmatpush.msra.mxu3 %v4447_v50 }
 0x31b   :  { %1309 = vmatpush.msrb.mxu0 %v4450_v51  ;;  %1329 = vmatpush.msra.mxu1 %v4453_v52 }
 0x31c   :  { %1349 = vmatpush.msra.mxu2 %v4456_v54  ;;  %1369 = vmatpush.msra.mxu3 %v4459_v3 }
 0x31d   :  { %1310 = vmatpush.msrb.mxu0 %v4462_v11  ;;  %1330 = vmatpush.msra.mxu1 %v4465_v7 }
 0x31e   :  { %1350 = vmatpush.msra.mxu2 %v4468_v62  ;;  %1370 = vmatpush.msra.mxu3 %v4471_v12 }
 0x31f   :  { %1311 = vmatpush.msrb.mxu0 %v4474_v31  ;;  %1331 = vmatpush.msra.mxu1 %v4477_v4 }
 0x320   :  { %1351 = vmatpush.msra.mxu2 %v4480_v61  ;;  %1371 = vmatpush.msra.mxu3 %v4483_v58 }
 0x321   :  { %1312 = vmatpush.msrb.mxu0 %v4486_v10  ;;  %1332 = vmatpush.msra.mxu1 %v4489_v59 }
 0x322   :  { %1352 = vmatpush.msra.mxu2 %v6264_v55  ;;  %1372 = vmatpush.msra.mxu3 %v6265_v60 }
 0x323   :  { %1313 = vmatpush.msrb.mxu0 %v4498_v8  ;;  %1333 = vmatpush.msra.mxu1 %v6266_v6 }
 0x324   :  { %1353 = vmatpush.msra.mxu2 %v6267_v16  ;;  %1373 = vmatpush.msra.mxu3 %v4507_v17 }
 0x325   :  { %1314 = vmatpush.msrb.mxu0 %v6268_v33  ;;  %1334 = vmatpush.msra.mxu1 %v4513_v44 }
 0x326   :  { %1354 = vmatpush.msra.mxu2 %v6299_v1  ;;  %1374 = vmatpush.msra.mxu3 %v6300_v5 }
 0x327   :  { %1315 = vmatpush.msrb.mxu0 %v6301_v36  ;;  %1335 = vmatpush.msra.mxu1 %v6302_v34 }
 0x328   :  { %1355 = vmatpush.msra.mxu2 %v6303_v35  ;;  %1375 = vmatpush.msra.mxu3 %v6304_v23 }
 0x329   :  { %1316 = vmatpush.msrb.mxu0 %v6305_v37  ;;  %1336 = vmatpush.msra.mxu1 %v6306_v25  ;;  %v6329_v25 = vld [vmem:[#allocation71_spill] sm:$0xff] }
 0x32a   :  { %1356 = vmatpush.msra.mxu2 %v6307_v32  ;;  %1376 = vmatpush.msra.mxu3 %v6308_v24 }
 0x32b   :  { %1317 = vmatpush.msrb.mxu0 %v6309_v28  ;;  %1337 = vmatpush.msra.mxu1 %v6310_v20 }
 0x32c   :  { %1357 = vmatpush.msra.mxu2 %v6311_v0  ;;  %1377 = vmatpush.msra.mxu3 %v6312_v22  ;;  %v6328_v0 = vld [vmem:[#allocation58_spill] sm:$0xff] }
 0x32d   :  { %1318 = vmatpush.msrb.mxu0 %v6313_v56  ;;  %1338 = vmatpush.msra.mxu1 %v6314_v9  ;;  %v6324_v56 = vld [vmem:[#allocation52_spill] sm:$0xff]  ;;  %v6325_v9 = vld [vmem:[#allocation59_spill] sm:$0xff] }
 0x32e   :  { %1358 = vmatpush.msra.mxu2 %v6315_v38  ;;  %1378 = vmatpush.msra.mxu3 %v6316_v42  ;;  %v6326_v38 = vld [vmem:[#allocation55_spill] sm:$0xff]  ;;  %v6327_v42 = vld [vmem:[#allocation68_spill] sm:$0xff] }
 0x32f   :  { %1319 = vmatpush.msrb.mxu0 %v6317_v27  ;;  %1339 = vmatpush.msra.mxu1 %v6318_v26  ;;  %v177_v22 = vadd.f32 %v6326_v38, %v6325_v9  ;;  %v218_v27 = vadd.f32 %v6328_v0, %v6327_v42 }
 0x330   :  { %1359 = vmatpush.msra.mxu2 %v6319_v39  ;;  %1379 = vmatpush.msra.mxu3 %v6320_v29 }
 0x331   :  { %1320 = vmatpush.msrb.mxu0 %v6321_v15  ;;  %1340 = vmatpush.msra.mxu1 %v6322_v19  ;;  %v6330_v19 = vld [vmem:[#allocation61_spill] sm:$0xff] }
 0x332   :  { %1360 = vmatpush.msra.mxu2 %v6323_v21  ;;  %1380 = vmatpush.msra.mxu3 %v6324_v56  ;;  %v300_v37 = vadd.f32 %v6330_v19, %v6329_v25 }
 0x38e   :  { %v1024_v20 = vpop.f32.mrf.mxu0  ;;  %v1044_v26 = vpop.f32.mrf.mxu1 }
 0x38f   :  { %v1087_v28 = vadd.f32 %v1024_v20, %v177_v22  ;;  %v1088_v39 = vadd.f32 %v1044_v26, %v218_v27  ;;  %v6332_v22 = vld [vmem:[#allocation60_spill] sm:$0xff] }
 0x391   :  { %v1091_v24 = vsub.f32 0.0, %v1087_v28  ;;  %v1109_v29 = vsub.f32 0.0, %v1088_v39 }
 0x393   :  { %v1092_v32 = vmul.f32 1.442695, %v1091_v24  ;;  %v1110_v15 = vmul.f32 1.442695, %v1109_v29  ;;  %v6331_v24 = vld [vmem:[#allocation73_spill] sm:$0xff] }
 0x394   :  { %v259_v27 = vadd.f32 %v6332_v22, %v6331_v24 }
 0x395   :  { %3298 = vpow2.f32 %v1092_v32  ;;  %v1084_v21 = vpop.f32.mrf.mxu3  ;;  %v1064_v28 = vpop.f32.mrf.mxu2 }
 0x396   :  { %3300 = vpow2.f32 %v1110_v15  ;;  %v1090_v56 = vadd.f32 %v1084_v21, %v300_v37  ;;  %v1089_v32 = vadd.f32 %v1064_v28, %v259_v27 }
 0x398   :  { %v1128_v23 = vsub.f32 0.0, %v1090_v56 }
 0x39a   :  { %v1129_v38 = vmul.f32 1.442695, %v1128_v23 }
 0x39b   :  { %v3299_v9 = vpop.eup %3298 }
 0x39c   :  { %v3301_v35 = vpop.eup %3300  ;;  %v1094_v0 = vadd.f32 1.0, %v3299_v9  ;;  %3302 = vpow2.f32 %v1129_v38 }
 0x39d   :  { %v1112_v42 = vadd.f32 1.0, %v3301_v35 }
 0x39e   :  { %3304 = vrcp.f32 %v1094_v0  ;;  %v1106_v56 = vand.u32 2147483648, %v1094_v0  ;;  %v1104_v19 = vand.u32 2147483647, %v1094_v0  ;;  %vm1100_vm3 = vweird.f32 %v1094_v0 }
 0x39f   :  { %3306 = vrcp.f32 %v1112_v42  ;;  %v1124_v9 = vand.u32 2147483648, %v1112_v42  ;;  %v1122_v25 = vand.u32 2147483647, %v1112_v42  ;;  %vm1118_vm4 = vweird.f32 %v1112_v42 }
 0x3a0   :  { %v1107_v28 = vor.u32 1.1754944e-38, %v1106_v56  ;;  %vm1105_vm7 = vcmp.eq.f32.partialorder %v1104_v19, 8.507059e+37 }
 0x3a1   :  { %vm1123_vm8 = vcmp.eq.f32.partialorder %v1122_v25, 8.507059e+37 }
 0x3a2   :  { %v3303_v20 = vpop.eup %3302 }
 0x3a3   :  { %v1131_v26 = vadd.f32 1.0, %v3303_v20 }
 0x3a4   :  { %v3305_v39 = vpop.eup %3304 }
 0x3a5   :  { %v3307_v29 = vpop.eup %3306  ;;  %v1096_v15 = vmul.f32 %v3305_v39, %v1094_v0  ;;  %3308 = vrcp.f32 %v1131_v26  ;;  %vm1101_vm1 = vweird.f32 %v3305_v39  ;;  %v1143_v56 = vand.u32 2147483648, %v1131_v26 }
 0x3a6   :  { %v1114_v21 = vmul.f32 %v3307_v29, %v1112_v42  ;;  %3310 = vtanh.f32 %v1089_v32  ;;  %vm1119_vm2 = vweird.f32 %v3307_v29  ;;  %vm1102_vm5 = vmor %vm1100_vm3, %vm1101_vm1  ;;  %vm1137_vm10 = vweird.f32 %v1131_v26 }
 0x3a7   :  { %v1097_v23 = vsub.f32 1.0, %v1096_v15  ;;  %vm1120_vm6 = vmor %vm1118_vm4, %vm1119_vm2  ;;  %v1125_v15 = vor.u32 1.1754944e-38, %v1124_v9  ;;  %v1144_v19 = vor.u32 1.1754944e-38, %v1143_v56 }
 0x3a8   :  { %v1115_v37 = vsub.f32 1.0, %v1114_v21 }
 0x3a9   :  { %v1098_v35 = vmul.f32 %v3305_v39, %v1097_v23 }
 0x3aa   :  { %v1116_v38 = vmul.f32 %v3307_v29, %v1115_v37 }
 0x3ab   :  { %v3309_v34 = vpop.eup %3308  ;;  %v1099_v22 = vadd.f32 %v3305_v39, %v1098_v35 }
 0x3ac   :  { %v1117_v20 = vadd.f32 %v3307_v29, %v1116_v38  ;;  %v1133_v27 = vmul.f32 %v3309_v34, %v1131_v26  ;;  %v3311_v32 = vpop.eup %3310  ;;  %vm1138_vm9 = vweird.f32 %v3309_v34 }
 0x3ad   :  { %v1103_v21 = vsel %vm1102_vm5, %v3305_v39, %v1099_v22  ;;  %v1141_v39 = vand.u32 2147483647, %v1131_v26  ;;  %vm1139_vm11 = vmor %vm1137_vm10, %vm1138_vm9 }
 0x3ae   :  { %v1108_v24 = vsel %vm1105_vm7, %v1107_v28, %v1103_v21  ;;  %v1121_v23 = vsel %vm1120_vm6, %v3307_v29, %v1117_v20  ;;  %v1134_v36 = vsub.f32 1.0, %v1133_v27 }
 0x3af   :  { %v1126_v37 = vsel %vm1123_vm8, %v1125_v15, %v1121_v23  ;;  %v1147_v5 = vmul.f32 %v3311_v32, %v1108_v24  ;;  %vm1142_vm12 = vcmp.eq.f32.partialorder %v1141_v39, 8.507059e+37 }
 0x3b0   :  { %v1146_v1 = vmul.f32 %v1126_v37, %v4685_v30  ;;  %v1135_v35 = vmul.f32 %v3309_v34, %v1134_v36  ;;  %v6364_v36 = vld [vmem:[#allocation63_spill] sm:$0xff]  ;;  %v6365_v37 = vld [vmem:[#allocation73_spill] sm:$0xff] }
 0x3b2   :  { %v4767_v0 = vadd.f32 %v1147_v5, %v1146_v1  ;;  %v1136_v42 = vadd.f32 %v3309_v34, %v1135_v35  ;;  %v6363_v5 = vld [vmem:[#allocation71_spill] sm:$0xff]  ;;  %v6366_v35 = vld [vmem:[#allocation65_spill] sm:$0xff] }
 0x3b4   :  { %3312 = vtanh.f32 %v4767_v0  ;;  %v1140_v9 = vsel %vm1139_vm11, %v3309_v34, %v1136_v42  ;;  %v303_v34 = vadd.f32 %v6364_v36, %v6363_v5  ;;  %v262_v42 = vadd.f32 %v6366_v35, %v6365_v37  ;;  %v1666_v36 = vld [vmem:[#allocation7 + $0x1d8] sm:$0xff] }
 0x3b5   :  { %v1145_v29 = vsel %vm1142_vm12, %v1144_v19, %v1140_v9  ;;  %v1658_v35 = vld [vmem:[#allocation7 + $0x198] sm:$0xff] }
 0x3ba   :  { %v3313_v25 = vpop.eup %3312 }
 0x3bb   :  { %v4770_v38 = vmul.f32 %v3313_v25, %v1145_v29 }
 0x3bd   :  { %1172 = vmatmul.f32.vlgmr.msra.gmra.mxu0 %v4770_v38  ;;  %1192 = vmatmul.f32.vlgmr.msrb.gmra.mxu1 %v4770_v38 }
 0x3be   :  { %1212 = vmatmul.f32.vlgmr.msrb.gmra.mxu2 %v4770_v38  ;;  %1232 = vmatmul.f32.vlgmr.msrb.gmra.mxu3 %v4770_v38 }
 0x3bf   :  { %1454 = vmatpush.msra.mxu0 %v4402_v53  ;;  %1474 = vmatpush.msrb.mxu1 %v4405_v2  ;;  %v6333_v53 = vld [vmem:[#allocation26_spill] sm:$0xff] }
 0x3c0   :  { %1494 = vmatpush.msrb.mxu2 %v4408_v63  ;;  %1514 = vmatpush.msrb.mxu3 %v4411_v57  ;;  %v6334_v2 = vld [vmem:[#allocation34_spill] sm:$0xff]  ;;  %v6336_v57 = vld [vmem:[#allocation29_spill] sm:$0xff] }
 0x3c1   :  { %1455 = vmatpush.msra.mxu0 %v4414_v13  ;;  %1475 = vmatpush.msrb.mxu1 %v4417_v14  ;;  %v6335_v63 = vld [vmem:[#allocation22_spill] sm:$0xff]  ;;  %v6337_v13 = vld [vmem:[#allocation31_spill] sm:$0xff]  ;;  %v6338_v14 = vld [vmem:[#allocation24_spill] sm:$0xff] }
 0x3c2   :  { %1495 = vmatpush.msrb.mxu2 %v4420_v18  ;;  %1515 = vmatpush.msrb.mxu3 %v4423_v40  ;;  %v6339_v18 = vld [vmem:[#allocation27_spill] sm:$0xff]  ;;  %v6340_v40 = vld [vmem:[#allocation30_spill] sm:$0xff] }
 0x3c3   :  { %1456 = vmatpush.msra.mxu0 %v4426_v41  ;;  %1476 = vmatpush.msrb.mxu1 %v4429_v43  ;;  %v6342_v41 = vld [vmem:[#allocation35_spill] sm:$0xff]  ;;  %v6343_v43 = vld [vmem:[#allocation28_spill] sm:$0xff] }
 0x3c4   :  { %1496 = vmatpush.msrb.mxu2 %v4432_v45  ;;  %1516 = vmatpush.msrb.mxu3 %v4435_v46  ;;  %v6344_v45 = vld [vmem:[#allocation33_spill] sm:$0xff]  ;;  %v6345_v46 = vld [vmem:[#allocation39_spill] sm:$0xff] }
 0x3c5   :  { %1457 = vmatpush.msra.mxu0 %v4438_v47  ;;  %1477 = vmatpush.msrb.mxu1 %v4441_v48  ;;  %v6346_v47 = vld [vmem:[#allocation38_spill] sm:$0xff]  ;;  %v6347_v48 = vld [vmem:[#allocation32_spill] sm:$0xff] }
 0x3c6   :  { %1497 = vmatpush.msrb.mxu2 %v4444_v49  ;;  %1517 = vmatpush.msrb.mxu3 %v4447_v50  ;;  %v6348_v49 = vld [vmem:[#allocation36_spill] sm:$0xff]  ;;  %v6349_v50 = vld [vmem:[#allocation41_spill] sm:$0xff] }
 0x3c7   :  { %1458 = vmatpush.msra.mxu0 %v4450_v51  ;;  %1478 = vmatpush.msrb.mxu1 %v4453_v52  ;;  %v6350_v51 = vld [vmem:[#allocation40_spill] sm:$0xff]  ;;  %v6351_v52 = vld [vmem:[#allocation45_spill] sm:$0xff] }
 0x3c8   :  { %1498 = vmatpush.msrb.mxu2 %v4456_v54  ;;  %1518 = vmatpush.msrb.mxu3 %v4459_v3  ;;  %v6352_v54 = vld [vmem:[#allocation46_spill] sm:$0xff]  ;;  %v6353_v3 = vld [vmem:[#allocation49_spill] sm:$0xff] }
 0x3c9   :  { %1459 = vmatpush.msra.mxu0 %v4462_v11  ;;  %1479 = vmatpush.msrb.mxu1 %v4465_v7  ;;  %v6354_v11 = vld [vmem:[#allocation48_spill] sm:$0xff]  ;;  %v6355_v7 = vld [vmem:[#allocation47_spill] sm:$0xff] }
 0x3ca   :  { %1499 = vmatpush.msrb.mxu2 %v4468_v62  ;;  %1519 = vmatpush.msrb.mxu3 %v4471_v12  ;;  %v6356_v62 = vld [vmem:[#allocation50_spill] sm:$0xff]  ;;  %v6357_v12 = vld [vmem:[#allocation53_spill] sm:$0xff] }
 0x3cb   :  { %1460 = vmatpush.msra.mxu0 %v4474_v31  ;;  %1480 = vmatpush.msrb.mxu1 %v4477_v4  ;;  %v6358_v31 = vld [vmem:[#allocation52_spill] sm:$0xff]  ;;  %v6359_v4 = vld [vmem:[#allocation59_spill] sm:$0xff] }
 0x3cc   :  { %1500 = vmatpush.msrb.mxu2 %v4480_v61  ;;  %1520 = vmatpush.msrb.mxu3 %v4483_v58  ;;  %v6360_v61 = vld [vmem:[#allocation42_spill] sm:$0xff] }
 0x3cd   :  { %1461 = vmatpush.msra.mxu0 %v4486_v10  ;;  %1481 = vmatpush.msrb.mxu1 %v4489_v59  ;;  %v180_v58 = vadd.f32 %v6360_v61, %v6359_v4  ;;  %v6361_v10 = vld [vmem:[#allocation68_spill] sm:$0xff]  ;;  %v6362_v59 = vld [vmem:[#allocation62_spill] sm:$0xff] }
 0x3ce   :  { %1501 = vmatpush.msrb.mxu2 %v6264_v55  ;;  %1521 = vmatpush.msrb.mxu3 %v6265_v60 }
 0x3cf   :  { %1462 = vmatpush.msra.mxu0 %v4498_v8  ;;  %1482 = vmatpush.msrb.mxu1 %v6266_v6 }
 0x3d0   :  { %1502 = vmatpush.msrb.mxu2 %v6267_v16  ;;  %1522 = vmatpush.msrb.mxu3 %v4507_v17  ;;  %v6341_v17 = vld [vmem:[#allocation37_spill] sm:$0xff] }
 0x3d1   :  { %1463 = vmatpush.msra.mxu0 %v6268_v33  ;;  %1483 = vmatpush.msrb.mxu1 %v4513_v44  ;;  %v221_v44 = vadd.f32 %v6362_v59, %v6361_v10 }
 0x3d2   :  { %1503 = vmatpush.msrb.mxu2 %v6333_v53  ;;  %1523 = vmatpush.msrb.mxu3 %v6334_v2 }
 0x3d3   :  { %1464 = vmatpush.msra.mxu0 %v6335_v63  ;;  %1484 = vmatpush.msrb.mxu1 %v6336_v57 }
 0x3d4   :  { %1504 = vmatpush.msrb.mxu2 %v6337_v13  ;;  %1524 = vmatpush.msrb.mxu3 %v6338_v14 }
 0x3d5   :  { %1465 = vmatpush.msra.mxu0 %v6339_v18  ;;  %1485 = vmatpush.msrb.mxu1 %v6340_v40 }
 0x3d6   :  { %1505 = vmatpush.msrb.mxu2 %v6341_v17  ;;  %1525 = vmatpush.msrb.mxu3 %v6342_v41 }
 0x3d7   :  { %1466 = vmatpush.msra.mxu0 %v6343_v43  ;;  %1486 = vmatpush.msrb.mxu1 %v6344_v45 }
 0x3d8   :  { %1506 = vmatpush.msrb.mxu2 %v6345_v46  ;;  %1526 = vmatpush.msrb.mxu3 %v6346_v47 }
 0x3d9   :  { %1467 = vmatpush.msra.mxu0 %v6347_v48  ;;  %1487 = vmatpush.msrb.mxu1 %v6348_v49 }
 0x3da   :  { %1507 = vmatpush.msrb.mxu2 %v6349_v50  ;;  %1527 = vmatpush.msrb.mxu3 %v6350_v51 }
 0x3db   :  { %1468 = vmatpush.msra.mxu0 %v6351_v52  ;;  %1488 = vmatpush.msrb.mxu1 %v6352_v54 }
 0x3dc   :  { %1508 = vmatpush.msrb.mxu2 %v6353_v3  ;;  %1528 = vmatpush.msrb.mxu3 %v6354_v11 }
 0x3dd   :  { %1469 = vmatpush.msra.mxu0 %v6355_v7  ;;  %1489 = vmatpush.msrb.mxu1 %v6356_v62 }
 0x3de   :  { %1509 = vmatpush.msrb.mxu2 %v6357_v12  ;;  %1529 = vmatpush.msrb.mxu3 %v6358_v31 }
 0x43a   :  { %v1173_v8 = vpop.f32.mrf.mxu0  ;;  %v1193_v55 = vpop.f32.mrf.mxu1 }
 0x43b   :  { %v1236_v60 = vadd.f32 %v1173_v8, %v180_v58  ;;  %v1237_v6 = vadd.f32 %v1193_v55, %v221_v44 }
 0x43d   :  { %v1240_v16 = vsub.f32 0.0, %v1236_v60  ;;  %v1258_v33 = vsub.f32 0.0, %v1237_v6  ;;  %v1668_v60 = vld [vmem:[#allocation7 + $0x1e8] sm:$0xff]  ;;  %v1669_v6 = vld [vmem:[#allocation7 + $0x1f0] sm:$0xff] }
 0x43f   :  { %v1241_v30 = vmul.f32 1.442695, %v1240_v16  ;;  %v1259_v1 = vmul.f32 1.442695, %v1258_v33  ;;  %v1670_v16 = vld [vmem:[#allocation7 + $0x1f8] sm:$0xff]  ;;  %v1663_v33 = vld [vmem:[#allocation7 + $0x1c0] sm:$0xff] }
 0x441   :  { %3314 = vpow2.f32 %v1241_v30  ;;  %v1233_v24 = vpop.f32.mrf.mxu3  ;;  %v1213_v32 = vpop.f32.mrf.mxu2  ;;  %v1664_v30 = vld [vmem:[#allocation7 + $0x1c8] sm:$0xff] }
 0x442   :  { %3316 = vpow2.f32 %v1259_v1  ;;  %v1239_v26 = vadd.f32 %v1233_v24, %v303_v34  ;;  %v1238_v9 = vadd.f32 %v1213_v32, %v262_v42  ;;  %v1665_v1 = vld [vmem:[#allocation7 + $0x1d0] sm:$0xff]  ;;  %v1659_v34 = vld [vmem:[#allocation7 + $0x1a0] sm:$0xff]  ;;  %v1660_v24 = vld [vmem:[#allocation7 + $0x1a8] sm:$0xff] }
 0x443   :  { %v6368_v32 = vld [vmem:[#allocation64_spill] sm:$0xff] }
 0x444   :  { %v1277_v22 = vsub.f32 0.0, %v1239_v26  ;;  %v1661_v26 = vld [vmem:[#allocation7 + $0x1b0] sm:$0xff] }
 0x446   :  { %v1278_v28 = vmul.f32 1.442695, %v1277_v22  ;;  %v1662_v22 = vld [vmem:[#allocation7 + $0x1b8] sm:$0xff] }
 0x447   :  { %v3315_v20 = vpop.eup %3314 }
 0x448   :  { %v3317_v27 = vpop.eup %3316  ;;  %v1243_v15 = vadd.f32 1.0, %v3315_v20  ;;  %3318 = vpow2.f32 %v1278_v28  ;;  %v1655_v28 = vld [vmem:[#allocation7 + $0x180] sm:$0xff]  ;;  %v1656_v20 = vld [vmem:[#allocation7 + $0x188] sm:$0xff] }
 0x449   :  { %v1261_v21 = vadd.f32 1.0, %v3317_v27  ;;  %v1657_v27 = vld [vmem:[#allocation7 + $0x190] sm:$0xff] }
 0x44a   :  { %3320 = vrcp.f32 %v1243_v15  ;;  %v1255_v63 = vand.u32 2147483648, %v1243_v15  ;;  %v1253_v14 = vand.u32 2147483647, %v1243_v15  ;;  %vm1249_vm15 = vweird.f32 %v1243_v15 }
 0x44b   :  { %3322 = vrcp.f32 %v1261_v21  ;;  %v1273_v57 = vand.u32 2147483648, %v1261_v21  ;;  %v1271_v40 = vand.u32 2147483647, %v1261_v21  ;;  %vm1267_vm0 = vweird.f32 %v1261_v21 }
 0x44c   :  { %v1256_v43 = vor.u32 1.1754944e-38, %v1255_v63  ;;  %vm1254_vm3 = vcmp.eq.f32.partialorder %v1253_v14, 8.507059e+37  ;;  %v1648_v63 = vld [vmem:[#allocation7 + $0x148] sm:$0xff] }
 0x44d   :  { %v1274_v47 = vor.u32 1.1754944e-38, %v1273_v57  ;;  %vm1272_vm4 = vcmp.eq.f32.partialorder %v1271_v40, 8.507059e+37  ;;  %v1649_v57 = vld [vmem:[#allocation7 + $0x150] sm:$0xff]  ;;  %v1643_v40 = vld [vmem:[#allocation7 + $0x120] sm:$0xff] }
 0x44e   :  { %v3319_v23 = vpop.eup %3318 }
 0x44f   :  { %v1280_v56 = vadd.f32 1.0, %v3319_v23  ;;  %v224_v23 = vadd.f32 %v6368_v32, %v6361_v10  ;;  %v1615_v32 = vld [vmem:[#allocation7 + $0x40] sm:$0xff] }
 0x450   :  { %v3321_v39 = vpop.eup %3320 }
 0x451   :  { %v3323_v19 = vpop.eup %3322  ;;  %v1245_v25 = vmul.f32 %v3321_v39, %v1243_v15  ;;  %3324 = vrcp.f32 %v1280_v56  ;;  %vm1250_vm13 = vweird.f32 %v3321_v39  ;;  %v1292_v31 = vand.u32 2147483648, %v1280_v56  ;;  %v6367_v15 = vld [vmem:[#allocation43_spill] sm:$0xff] }
 0x452   :  { %v1263_v29 = vmul.f32 %v3323_v19, %v1261_v21  ;;  %3326 = vtanh.f32 %v1238_v9  ;;  %vm1268_vm14 = vweird.f32 %v3323_v19  ;;  %vm1251_vm1 = vmor %vm1249_vm15, %vm1250_vm13  ;;  %vm1286_vm6 = vweird.f32 %v1280_v56  ;;  %v1652_v9 = vld [vmem:[#allocation7 + $0x168] sm:$0xff] }
 0x453   :  { %v1246_v53 = vsub.f32 1.0, %v1245_v25  ;;  %vm1269_vm2 = vmor %vm1267_vm0, %vm1268_vm14  ;;  %v1290_v61 = vand.u32 2147483647, %v1280_v56  ;;  %v1293_v59 = vor.u32 1.1754944e-38, %v1292_v31  ;;  %v183_v21 = vadd.f32 %v6367_v15, %v6359_v4  ;;  %v1638_v31 = vld [vmem:[#allocation7 + $0xf8] sm:$0xff]  ;;  %v1621_v15 = vld [vmem:[#allocation7 + $0x70] sm:$0xff] }
 0x454   :  { %v1264_v2 = vsub.f32 1.0, %v1263_v29 }
 0x455   :  { %v1247_v13 = vmul.f32 %v3321_v39, %v1246_v53  ;;  %vm1291_vm8 = vcmp.eq.f32.partialorder %v1290_v61, 8.507059e+37  ;;  %v1654_v53 = vld [vmem:[#allocation7 + $0x178] sm:$0xff] }
 0x456   :  { %v1265_v18 = vmul.f32 %v3323_v19, %v1264_v2  ;;  %v1647_v2 = vld [vmem:[#allocation7 + $0x140] sm:$0xff] }
 0x457   :  { %v3325_v17 = vpop.eup %3324  ;;  %v1248_v41 = vadd.f32 %v3321_v39, %v1247_v13 }
 0x458   :  { %v1266_v45 = vadd.f32 %v3323_v19, %v1265_v18  ;;  %v1282_v46 = vmul.f32 %v3325_v17, %v1280_v56  ;;  %v3327_v49 = vpop.eup %3326  ;;  %vm1287_vm5 = vweird.f32 %v3325_v17  ;;  %v1650_v18 = vld [vmem:[#allocation7 + $0x158] sm:$0xff] }
 0x459   :  { %v1252_v48 = vsel %vm1251_vm1, %v3321_v39, %v1248_v41  ;;  %vm1288_vm7 = vmor %vm1286_vm6, %vm1287_vm5  ;;  %v1651_v39 = vld [vmem:[#allocation7 + $0x160] sm:$0xff]  ;;  %v1645_v41 = vld [vmem:[#allocation7 + $0x130] sm:$0xff] }
 0x45a   :  { %v1257_v50 = vsel %vm1254_vm3, %v1256_v43, %v1252_v48  ;;  %v1270_v51 = vsel %vm1269_vm2, %v3323_v19, %v1266_v45  ;;  %v1283_v52 = vsub.f32 1.0, %v1282_v46  ;;  %v1653_v19 = vld [vmem:[#allocation7 + $0x170] sm:$0xff]  ;;  %v1646_v46 = vld [vmem:[#allocation7 + $0x138] sm:$0xff] }
 0x45b   :  { %v1275_v54 = vsel %vm1272_vm4, %v1274_v47, %v1270_v51  ;;  %v1296_v3 = vmul.f32 %v3327_v49, %v1257_v50  ;;  %v6369_v47 = vld [vmem:[#allocation66_spill] sm:$0xff]  ;;  %v1639_v49 = vld [vmem:[#allocation7 + $0x100] sm:$0xff]  ;;  %v1640_v50 = vld [vmem:[#allocation7 + $0x108] sm:$0xff] }
 0x45c   :  { %v1295_v11 = vmul.f32 %v1275_v54, %v4767_v0  ;;  %v1284_v7 = vmul.f32 %v3325_v17, %v1283_v52  ;;  %v1667_v0 = vld [vmem:[#allocation7 + $0x1e0] sm:$0xff]  ;;  %v306_v48 = vadd.f32 %v6369_v47, %v6363_v5  ;;  %v1641_v51 = vld [vmem:[#allocation7 + $0x110] sm:$0xff]  ;;  %v1642_v54 = vld [vmem:[#allocation7 + $0x118] sm:$0xff] }
 0x45e   :  { %v4849_v62 = vadd.f32 %v1296_v3, %v1295_v11  ;;  %v1285_v12 = vadd.f32 %v3325_v17, %v1284_v7  ;;  %v1635_v11 = vld [vmem:[#allocation7 + $0xe0] sm:$0xff]  ;;  %v1636_v7 = vld [vmem:[#allocation7 + $0xe8] sm:$0xff] }
 0x460   :  { %3328 = vtanh.f32 %v4849_v62  ;;  %v1289_v58 = vsel %vm1288_vm7, %v3325_v17, %v1285_v12  ;;  %v1644_v17 = vld [vmem:[#allocation7 + $0x128] sm:$0xff]  ;;  %v1637_v12 = vld [vmem:[#allocation7 + $0xf0] sm:$0xff] }
 0x461   :  { %v1294_v8 = vsel %vm1291_vm8, %v1293_v59, %v1289_v58  ;;  %v1631_v58 = vld [vmem:[#allocation7 + $0xc0] sm:$0xff]  ;;  %v1632_v59 = vld [vmem:[#allocation7 + $0xc8] sm:$0xff] }
 0x466   :  { %v3329_v44 = vpop.eup %3328 }
 0x467   :  { %v4852_v55 = vmul.f32 %v3329_v44, %v1294_v8  ;;  %v1633_v44 = vld [vmem:[#allocation7 + $0xd0] sm:$0xff]  ;;  %v1634_v8 = vld [vmem:[#allocation7 + $0xd8] sm:$0xff] }
 0x469   :  { %1321 = vmatmul.f32.vlgmr.msrb.gmra.mxu0 %v4852_v55  ;;  %1341 = vmatmul.f32.vlgmr.msra.gmra.mxu1 %v4852_v55 }
 0x46a   :  { %1361 = vmatmul.f32.vlgmr.msra.gmra.mxu2 %v4852_v55  ;;  %1381 = vmatmul.f32.vlgmr.msra.gmra.mxu3 %v4852_v55 }
 0x46b   :  { %1681 = vmatpush.msrb.mxu0 %v1667_v0  ;;  %1722 = vmatpush.msra.mxu1 %v1668_v60  ;;  %v1627_v60 = vld [vmem:[#allocation7 + $0xa0] sm:$0xff] }
 0x46c   :  { %1763 = vmatpush.msra.mxu2 %v1669_v6  ;;  %1804 = vmatpush.msra.mxu3 %v1670_v16  ;;  %v1628_v6 = vld [vmem:[#allocation7 + $0xa8] sm:$0xff]  ;;  %v1629_v16 = vld [vmem:[#allocation7 + $0xb0] sm:$0xff] }
 0x46d   :  { %1682 = vmatpush.msrb.mxu0 %v1663_v33  ;;  %1723 = vmatpush.msra.mxu1 %v1664_v30  ;;  %v1630_v30 = vld [vmem:[#allocation7 + $0xb8] sm:$0xff] }
 0x46e   :  { %1764 = vmatpush.msra.mxu2 %v1665_v1  ;;  %1805 = vmatpush.msra.mxu3 %v1666_v36  ;;  %v1623_v1 = vld [vmem:[#allocation7 + $0x80] sm:$0xff]  ;;  %v1624_v36 = vld [vmem:[#allocation7 + $0x88] sm:$0xff] }
 0x46f   :  { %1683 = vmatpush.msrb.mxu0 %v1659_v34  ;;  %1724 = vmatpush.msra.mxu1 %v1660_v24 }
 0x470   :  { %1765 = vmatpush.msra.mxu2 %v1661_v26  ;;  %1806 = vmatpush.msra.mxu3 %v1662_v22  ;;  %v1625_v26 = vld [vmem:[#allocation7 + $0x90] sm:$0xff]  ;;  %v1626_v22 = vld [vmem:[#allocation7 + $0x98] sm:$0xff] }
 0x471   :  { %1684 = vmatpush.msrb.mxu0 %v1655_v28  ;;  %1725 = vmatpush.msra.mxu1 %v1656_v20  ;;  %v1619_v20 = vld [vmem:[#allocation7 + $0x60] sm:$0xff] }
 0x472   :  { %1766 = vmatpush.msra.mxu2 %v1657_v27  ;;  %1807 = vmatpush.msra.mxu3 %v1658_v35  ;;  %v1620_v27 = vld [vmem:[#allocation7 + $0x68] sm:$0xff]  ;;  %v1617_v35 = vld [vmem:[#allocation7 + $0x50] sm:$0xff] }
 0x473   :  { %1685 = vmatpush.msrb.mxu0 %v1651_v39  ;;  %1726 = vmatpush.msra.mxu1 %v1652_v9  ;;  %v1612_v9 = vld [vmem:[#allocation7 + $0x28] sm:$0xff] }
 0x474   :  { %1767 = vmatpush.msra.mxu2 %v1653_v19  ;;  %1808 = vmatpush.msra.mxu3 %v1654_v53  ;;  %v1613_v19 = vld [vmem:[#allocation7 + $0x30] sm:$0xff]  ;;  %v6370_v53 = vld [vmem:[#allocation69_spill] sm:$0xff] }
 0x475   :  { %1686 = vmatpush.msrb.mxu0 %v1647_v2  ;;  %1727 = vmatpush.msra.mxu1 %v1648_v63  ;;  %v265_v2 = vadd.f32 %v6370_v53, %v6365_v37  ;;  %v1607_v63 = vld [vmem:[#allocation7] sm:$0xff] }
 0x476   :  { %1768 = vmatpush.msra.mxu2 %v1649_v57  ;;  %1809 = vmatpush.msra.mxu3 %v1650_v18  ;;  %v1608_v57 = vld [vmem:[#allocation7 + $0x8] sm:$0xff]  ;;  %v1610_v18 = vld [vmem:[#allocation7 + $0x18] sm:$0xff]  ;;  %v4940_v53 = vld [vmem:[#allocation9 + $0x180] sm:$0xff] }
 0x477   :  { %1687 = vmatpush.msrb.mxu0 %v1643_v40  ;;  %1728 = vmatpush.msra.mxu1 %v1644_v17 }
 0x478   :  { %1769 = vmatpush.msra.mxu2 %v1645_v41  ;;  %1810 = vmatpush.msra.mxu3 %v1646_v46 }
 0x479   :  { %1688 = vmatpush.msrb.mxu0 %v1639_v49  ;;  %1729 = vmatpush.msra.mxu1 %v1640_v50 }
 0x47a   :  { %1770 = vmatpush.msra.mxu2 %v1641_v51  ;;  %1811 = vmatpush.msra.mxu3 %v1642_v54 }
 0x47b   :  { %1689 = vmatpush.msrb.mxu0 %v1635_v11  ;;  %1730 = vmatpush.msra.mxu1 %v1636_v7 }
 0x47c   :  { %1771 = vmatpush.msra.mxu2 %v1637_v12  ;;  %1812 = vmatpush.msra.mxu3 %v1638_v31 }
 0x47d   :  { %1690 = vmatpush.msrb.mxu0 %v1631_v58  ;;  %1731 = vmatpush.msra.mxu1 %v1632_v59 }
 0x47e   :  { %1772 = vmatpush.msra.mxu2 %v1633_v44  ;;  %1813 = vmatpush.msra.mxu3 %v1634_v8 }
 0x47f   :  { %1691 = vmatpush.msrb.mxu0 %v1627_v60  ;;  %1732 = vmatpush.msra.mxu1 %v1628_v6 }
 0x480   :  { %1773 = vmatpush.msra.mxu2 %v1629_v16  ;;  %1814 = vmatpush.msra.mxu3 %v1630_v30 }
 0x481   :  { %1692 = vmatpush.msrb.mxu0 %v1623_v1  ;;  %1733 = vmatpush.msra.mxu1 %v1624_v36 }
 0x482   :  { %1774 = vmatpush.msra.mxu2 %v1625_v26  ;;  %1815 = vmatpush.msra.mxu3 %v1626_v22 }
 0x483   :  { %1693 = vmatpush.msrb.mxu0 %v1619_v20  ;;  %1734 = vmatpush.msra.mxu1 %v1620_v27  ;;  %v6372_v27 = vld [vmem:[#allocation19_spill] sm:$0xff] }
 0x484   :  { %1775 = vmatpush.msra.mxu2 %v1621_v15  ;;  %v6373_v15 = vld [vmem:[#allocation21_spill] sm:$0xff] }
 0x485   :  { %1694 = vmatpush.msrb.mxu0 %v1615_v32  ;;  %v4898_v32 = vld [vmem:[#allocation9 + $0x1e8] sm:$0xff] }
 0x486   :  { %1776 = vmatpush.msra.mxu2 %v1617_v35  ;;  %6375 = vst [vmem:[#allocation25_spill] sm:$0xff] %v4898_v32  ;;  %v4904_v35 = vld [vmem:[#allocation9 + $0x1c8] sm:$0xff] }
 0x487   :  { %6377 = vst [vmem:[#allocation20_spill] sm:$0xff] %v4904_v35 }
 0x488   :  { %1777 = vmatpush.msra.mxu2 %v1613_v19  ;;  %v6380_v19 = vld [vmem:[#allocation17_spill] sm:$0xff] }
 0x4e6   :  { %v1322_v42 = vpop.f32.mrf.mxu0  ;;  %v1342_v56 = vpop.f32.mrf.mxu1 }
 0x4e7   :  { %v1385_v25 = vadd.f32 %v1322_v42, %v183_v21  ;;  %v1386_v29 = vadd.f32 %v1342_v56, %v224_v23  ;;  %v1622_v21 = vld [vmem:[#allocation7 + $0x78] sm:$0xff]  ;;  %v1616_v23 = vld [vmem:[#allocation7 + $0x48] sm:$0xff]  ;;  %v1611_v56 = vld [vmem:[#allocation7 + $0x20] sm:$0xff] }
 0x4e8   :  { %1816 = vmatpush.msra.mxu3 %v1622_v21  ;;  %v1618_v42 = vld [vmem:[#allocation7 + $0x58] sm:$0xff]  ;;  %1735 = vmatpush.msra.mxu1 %v1616_v23  ;;  %v4896_v21 = vld [vmem:[#allocation9 + $0x1e0] sm:$0xff] }
 0x4e9   :  { %v1389_v13 = vsub.f32 0.0, %v1385_v25  ;;  %v1407_v14 = vsub.f32 0.0, %v1386_v29  ;;  %v1614_v25 = vld [vmem:[#allocation7 + $0x38] sm:$0xff]  ;;  %1695 = vmatpush.msrb.mxu0 %v1611_v56  ;;  %6374 = vst [vmem:[#allocation18_spill] sm:$0xff] %v4896_v21  ;;  %v4900_v23 = vld [vmem:[#allocation9 + $0x1c0] sm:$0xff] }
 0x4ea   :  { %1817 = vmatpush.msra.mxu3 %v1618_v42  ;;  %1736 = vmatpush.msra.mxu1 %v1612_v9  ;;  %6376 = vst [vmem:[#allocation23_spill] sm:$0xff] %v4900_v23  ;;  %v4906_v42 = vld [vmem:[#allocation9 + $0x1f8] sm:$0xff]  ;;  %v4909_v56 = vld [vmem:[#allocation9 + $0x1a0] sm:$0xff] }
 0x4eb   :  { %v1390_v43 = vmul.f32 1.442695, %v1389_v13  ;;  %v1408_v45 = vmul.f32 1.442695, %v1407_v14  ;;  %v1609_v14 = vld [vmem:[#allocation7 + $0x10] sm:$0xff]  ;;  %1696 = vmatpush.msrb.mxu0 %v1607_v63  ;;  %6378 = vst [vmem:[#allocation51_spill] sm:$0xff] %v4909_v56 }
 0x4ec   :  { %1818 = vmatpush.msra.mxu3 %v1614_v25  ;;  %1737 = vmatpush.msra.mxu1 %v1608_v57  ;;  %v4913_v9 = vld [vmem:[#allocation9 + $0x1d8] sm:$0xff]  ;;  %v4932_v25 = vld [vmem:[#allocation9 + $0x1f0] sm:$0xff]  ;;  %v6381_v57 = vld [vmem:[#allocation44_spill] sm:$0xff] }
 0x4ed   :  { %3330 = vpow2.f32 %v1390_v43  ;;  %v1382_v52 = vpop.f32.mrf.mxu3  ;;  %v1362_v39 = vpop.f32.mrf.mxu2  ;;  %1778 = vmatpush.msra.mxu2 %v1609_v14  ;;  %6379 = vst [vmem:[#allocation54_spill] sm:$0xff] %v4913_v9  ;;  %v4949_v63 = vld [vmem:[#allocation9 + $0x1b0] sm:$0xff]  ;;  %v6382_v14 = vld [vmem:[#allocation67_spill] sm:$0xff] }
 0x4ee   :  { %3332 = vpow2.f32 %v1408_v45  ;;  %v1388_v3 = vadd.f32 %v1382_v52, %v306_v48  ;;  %v1387_v17 = vadd.f32 %v1362_v39, %v265_v2  ;;  %1819 = vmatpush.msra.mxu3 %v1610_v18  ;;  %v4911_v39 = vld [vmem:[#allocation9 + $0x1a8] sm:$0xff]  ;;  %v227_v18 = vadd.f32 %v6382_v14, %v6361_v10  ;;  %v4973_v10 = vld [vmem:[#allocation9 + $0x170] sm:$0xff] }
 0x4ef   :  { %v4942_v2 = vld [vmem:[#allocation9 + $0x188] sm:$0xff] }
 0x4f0   :  { %v1426_v61 = vsub.f32 0.0, %v1388_v3 }
 0x4f2   :  { %v1427_v0 = vmul.f32 1.442695, %v1426_v61 }
 0x4f3   :  { %v3331_v33 = vpop.eup %3330 }
 0x4f4   :  { %v3333_v34 = vpop.eup %3332  ;;  %v4864_v24 = vadd.f32 1.0, %v3331_v33  ;;  %3334 = vpow2.f32 %v1427_v0 }
 0x4f5   :  { %v4866_v28 = vadd.f32 1.0, %v3333_v34 }
 0x4f6   :  { %3336 = vrcp.f32 %v4864_v24  ;;  %v1404_v48 = vand.u32 2147483648, %v4864_v24  ;;  %v1402_v51 = vand.u32 2147483647, %v4864_v24  ;;  %vm1398_vm11 = vweird.f32 %v4864_v24 }
 0x4f7   :  { %3338 = vrcp.f32 %v4866_v28  ;;  %v1422_v49 = vand.u32 2147483648, %v4866_v28  ;;  %v1420_v54 = vand.u32 2147483647, %v4866_v28  ;;  %vm1416_vm12 = vweird.f32 %v4866_v28 }
 0x4f8   :  { %v1405_v7 = vor.u32 1.1754944e-38, %v1404_v48  ;;  %vm1403_vm15 = vcmp.eq.f32.partialorder %v1402_v51, 8.507059e+37 }
 0x4f9   :  { %v1423_v61 = vor.u32 1.1754944e-38, %v1422_v49  ;;  %vm1421_vm0 = vcmp.eq.f32.partialorder %v1420_v54, 8.507059e+37  ;;  %v4969_v49 = vld [vmem:[#allocation9 + $0x148] sm:$0xff]  ;;  %v4980_v54 = vld [vmem:[#allocation9 + $0x150] sm:$0xff] }
 0x4fa   :  { %v3335_v29 = vpop.eup %3334 }
 0x4fb   :  { %v1429_v13 = vadd.f32 1.0, %v3335_v29  ;;  %v4935_v29 = vld [vmem:[#allocation9 + $0x1d0] sm:$0xff] }
 0x4fc   :  { %v3337_v40 = vpop.eup %3336 }
 0x4fd   :  { %v3339_v41 = vpop.eup %3338  ;;  %v1394_v43 = vmul.f32 %v3337_v40, %v4864_v24  ;;  %3340 = vrcp.f32 %v1429_v13  ;;  %vm1399_vm9 = vweird.f32 %v3337_v40  ;;  %v1441_v36 = vand.u32 2147483648, %v1429_v13 }
 0x4fe   :  { %v1412_v45 = vmul.f32 %v3339_v41, %v4866_v28  ;;  %3342 = vtanh.f32 %v1387_v17  ;;  %vm1417_vm10 = vweird.f32 %v3339_v41  ;;  %vm1400_vm13 = vmor %vm1398_vm11, %vm1399_vm9  ;;  %vm1435_vm2 = vweird.f32 %v1429_v13  ;;  %v4959_v17 = vld [vmem:[#allocation9 + $0x168] sm:$0xff] }
 0x4ff   :  { %v1395_v46 = vsub.f32 1.0, %v1394_v43  ;;  %vm1418_vm14 = vmor %vm1416_vm12, %vm1417_vm10  ;;  %v1439_v34 = vand.u32 2147483647, %v1429_v13  ;;  %v1442_v26 = vor.u32 1.1754944e-38, %v1441_v36  ;;  %v5014_v36 = vld [vmem:[#allocation9 + $0x130] sm:$0xff] }
 0x500   :  { %v1413_v47 = vsub.f32 1.0, %v1412_v45 }
 0x501   :  { %v1396_v50 = vmul.f32 %v3337_v40, %v1395_v46  ;;  %vm1440_vm4 = vcmp.eq.f32.partialorder %v1439_v34, 8.507059e+37  ;;  %v4965_v46 = vld [vmem:[#allocation9 + $0x190] sm:$0xff] }
 0x502   :  { %v1414_v52 = vmul.f32 %v3339_v41, %v1413_v47 }
 0x503   :  { %v3341_v3 = vpop.eup %3340  ;;  %v1397_v11 = vadd.f32 %v3337_v40, %v1396_v50 }
 0x504   :  { %v1415_v12 = vadd.f32 %v3339_v41, %v1414_v52  ;;  %v1431_v31 = vmul.f32 %v3341_v3, %v1429_v13  ;;  %v3343_v59 = vpop.eup %3342  ;;  %vm1436_vm1 = vweird.f32 %v3341_v3  ;;  %v186_v13 = vadd.f32 %v6381_v57, %v6359_v4  ;;  %v4967_v4 = vld [vmem:[#allocation9 + $0x140] sm:$0xff]  ;;  %v4977_v52 = vld [vmem:[#allocation9 + $0x158] sm:$0xff]  ;;  %v5037_v57 = vld [vmem:[#allocation9 + $0x88] sm:$0xff] }
 0x505   :  { %v1401_v58 = vsel %vm1400_vm13, %v3337_v40, %v1397_v11  ;;  %vm1437_vm3 = vmor %vm1435_vm2, %vm1436_vm1  ;;  %v4957_v40 = vld [vmem:[#allocation9 + $0x160] sm:$0xff]  ;;  %6389 = vst [vmem:[#allocation60_spill] sm:$0xff] %v5037_v57 }
 0x506   :  { %v1406_v44 = vsel %vm1403_vm15, %v1405_v7, %v1401_v58  ;;  %v1419_v8 = vsel %vm1418_vm14, %v3339_v41, %v1415_v12  ;;  %v1432_v0 = vsub.f32 1.0, %v1431_v31  ;;  %v4961_v41 = vld [vmem:[#allocation9 + $0x178] sm:$0xff]  ;;  %v4983_v7 = vld [vmem:[#allocation9 + $0x120] sm:$0xff]  ;;  %v4985_v12 = vld [vmem:[#allocation9 + $0x128] sm:$0xff] }
 0x507   :  { %v1424_v60 = vsel %vm1421_vm0, %v1423_v61, %v1419_v8  ;;  %v1445_v6 = vmul.f32 %v3343_v59, %v1406_v44  ;;  %v6383_v31 = vld [vmem:[#allocation70_spill] sm:$0xff]  ;;  %v4992_v58 = vld [vmem:[#allocation9 + $0x100] sm:$0xff]  ;;  %v4994_v59 = vld [vmem:[#allocation9 + $0x108] sm:$0xff] }
 0x508   :  { %v1444_v16 = vmul.f32 %v1424_v60, %v4849_v62  ;;  %v1433_v33 = vmul.f32 %v3341_v3, %v1432_v0  ;;  %v6371_v62 = vld [vmem:[#allocation74_spill] sm:$0xff]  ;;  %v309_v61 = vadd.f32 %v6383_v31, %v6363_v5  ;;  %v4996_v44 = vld [vmem:[#allocation9 + $0x138] sm:$0xff]  ;;  %v4999_v0 = vld [vmem:[#allocation9 + $0xe0] sm:$0xff] }
 0x509   :  { %v5001_v60 = vld [vmem:[#allocation9 + $0xe8] sm:$0xff]  ;;  %v5072_v31 = vld [vmem:[#allocation9 + $0x90] sm:$0xff] }
 0x50a   :  { %v4881_v30 = vadd.f32 %v1445_v6, %v1444_v16  ;;  %v1434_v1 = vadd.f32 %v3341_v3, %v1433_v33  ;;  %v5003_v6 = vld [vmem:[#allocation9 + $0x118] sm:$0xff]  ;;  %v5010_v33 = vld [vmem:[#allocation9 + $0xc0] sm:$0xff]  ;;  %6398 = vst [vmem:[#allocation37_spill] sm:$0xff] %v5072_v31 }
 0x50b   :  { %v5007_v16 = vld [vmem:[#allocation9 + $0xf8] sm:$0xff] }
 0x50c   :  { %3344 = vtanh.f32 %v4881_v30  ;;  %v1438_v24 = vsel %vm1437_vm3, %v3341_v3, %v1434_v1  ;;  %v5012_v1 = vld [vmem:[#allocation9 + $0xc8] sm:$0xff] }
 0x50d   :  { %v1443_v28 = vsel %vm1440_vm4, %v1442_v26, %v1438_v24  ;;  %v5018_v24 = vld [vmem:[#allocation9 + $0xd8] sm:$0xff]  ;;  %v5021_v26 = vld [vmem:[#allocation9 + $0xa0] sm:$0xff] }
 0x50e   :  { %6384 = vst [vmem:[#allocation57_spill] sm:$0xff] %v5018_v24 }
 0x50f   :  { %6385 = vst [vmem:[#allocation56_spill] sm:$0xff] %v5021_v26 }
 0x512   :  { %v3345_v22 = vpop.eup %3344 }
 0x513   :  { %v1448_v20 = vmul.f32 %v3345_v22, %v1443_v28  ;;  %v5023_v22 = vld [vmem:[#allocation9 + $0xa8] sm:$0xff]  ;;  %v5026_v28 = vld [vmem:[#allocation9 + $0x110] sm:$0xff] }
 0x514   :  { %6386 = vst [vmem:[#allocation55_spill] sm:$0xff] %v5023_v22 }
 0x515   :  { %1470 = vmatmul.f32.vlgmr.msra.gmra.mxu0 %v1448_v20  ;;  %1490 = vmatmul.f32.vlgmr.msrb.gmra.mxu1 %v1448_v20 }
 0x516   :  { %1510 = vmatmul.f32.vlgmr.msrb.gmra.mxu2 %v1448_v20  ;;  %1530 = vmatmul.f32.vlgmr.msrb.gmra.mxu3 %v1448_v20 }
 0x517   :  { %1945 = vmatpush.msra.mxu0 %v4896_v21  ;;  %1965 = vmatpush.msrb.mxu1 %v4898_v32 }
 0x518   :  { %2005 = vmatpush.msrb.mxu3 %v4906_v42  ;;  %1985 = vmatpush.msrb.mxu2 %v4932_v25 }
 0x519   :  { %1946 = vmatpush.msra.mxu0 %v4900_v23  ;;  %1966 = vmatpush.msrb.mxu1 %v4904_v35 }
 0x51a   :  { %2006 = vmatpush.msrb.mxu3 %v4913_v9  ;;  %1986 = vmatpush.msrb.mxu2 %v4935_v29 }
 0x51b   :  { %1947 = vmatpush.msra.mxu0 %v4909_v56  ;;  %1967 = vmatpush.msrb.mxu1 %v4911_v39 }
 0x51c   :  { %1987 = vmatpush.msrb.mxu2 %v4949_v63 }
 0x51d   :  { %1697 = vmatmul.f32.vlgmr.msrb.gmra.mxu0 %v6371_v62  ;;  %1738 = vmatmul.f32.vlgmr.msra.gmra.mxu1 %v6371_v62 }
 0x51e   :  { %1779 = vmatmul.f32.vlgmr.msra.gmra.mxu2 %v6371_v62  ;;  %1820 = vmatmul.f32.vlgmr.msra.gmra.mxu3 %v6371_v62  ;;  %v5030_v62 = vld [vmem:[#allocation9 + $0xb8] sm:$0xff] }
 0x51f   :  { %1948 = vmatpush.msra.mxu0 %v4940_v53  ;;  %1968 = vmatpush.msrb.mxu1 %v4942_v2  ;;  %6387 = vst [vmem:[#allocation58_spill] sm:$0xff] %v5030_v62 }
 0x520   :  { %1988 = vmatpush.msrb.mxu2 %v4965_v46 }
 0x521   :  { %1949 = vmatpush.msra.mxu0 %v4957_v40  ;;  %1969 = vmatpush.msrb.mxu1 %v4959_v17 }
 0x522   :  { %1989 = vmatpush.msrb.mxu2 %v4973_v10 }
 0x523   :  { %1950 = vmatpush.msra.mxu0 %v4967_v4  ;;  %1970 = vmatpush.msrb.mxu1 %v4969_v49 }
 0x524   :  { %1990 = vmatpush.msrb.mxu2 %v4980_v54 }
 0x525   :  { %1700 = vmatmul.f32.gmra.mxu0 %v6372_v27  ;;  %1741 = vmatmul.f32.gmra.mxu1 %v6372_v27 }
 0x526   :  { %1782 = vmatmul.f32.gmra.mxu2 %v6372_v27  ;;  %1823 = vmatmul.f32.gmra.mxu3 %v6372_v27  ;;  %v5032_v27 = vld [vmem:[#allocation9 + $0xf0] sm:$0xff] }
 0x527   :  { %1951 = vmatpush.msra.mxu0 %v4983_v7  ;;  %1971 = vmatpush.msrb.mxu1 %v4985_v12 }
 0x528   :  { %1991 = vmatpush.msrb.mxu2 %v5014_v36 }
 0x529   :  { %1952 = vmatpush.msra.mxu0 %v4992_v58  ;;  %1972 = vmatpush.msrb.mxu1 %v4994_v59 }
 0x52a   :  { %1992 = vmatpush.msrb.mxu2 %v5026_v28 }
 0x52b   :  { %1953 = vmatpush.msra.mxu0 %v4999_v0  ;;  %1973 = vmatpush.msrb.mxu1 %v5001_v60 }
 0x52c   :  { %1993 = vmatpush.msrb.mxu2 %v5032_v27 }
 0x52d   :  { %1703 = vmatmul.f32.gmra.mxu0 %v6373_v15  ;;  %1744 = vmatmul.f32.gmra.mxu1 %v6373_v15 }
 0x52e   :  { %1785 = vmatmul.f32.gmra.mxu2 %v6373_v15  ;;  %1826 = vmatmul.f32.gmra.mxu3 %v6373_v15 }
 0x52f   :  { %1954 = vmatpush.msra.mxu0 %v5010_v33  ;;  %1974 = vmatpush.msrb.mxu1 %v5012_v1 }
 0x531   :  { %1955 = vmatpush.msra.mxu0 %v5021_v26  ;;  %1975 = vmatpush.msrb.mxu1 %v5023_v22 }
 0x533   :  { %1976 = vmatpush.msrb.mxu1 %v5037_v57  ;;  %v5096_v57 = vld [vmem:[#allocation9 + $0x8] sm:$0xff] }
 0x534   :  { %6406 = vst [vmem:[#allocation36_spill] sm:$0xff] %v5096_v57 }
 0x535   :  { %1706 = vmatmul.f32.gmra.mxu0 %v6380_v19  ;;  %1747 = vmatmul.f32.gmra.mxu1 %v6380_v19 }
 0x536   :  { %1788 = vmatmul.f32.gmra.mxu2 %v6380_v19  ;;  %1829 = vmatmul.f32.gmra.mxu3 %v6380_v19  ;;  %v5035_v19 = vld [vmem:[#allocation9 + $0x80] sm:$0xff] }
 0x537   :  { %6388 = vst [vmem:[#allocation61_spill] sm:$0xff] %v5035_v19  ;;  %1956 = vmatpush.msra.mxu0 %v5035_v19 }
 0x53d   :  { %1709 = vmatmul.f32.gmra.mxu0 %v4770_v38  ;;  %1750 = vmatmul.f32.gmra.mxu1 %v4770_v38 }
 0x53e   :  { %1791 = vmatmul.f32.gmra.mxu2 %v4770_v38  ;;  %1832 = vmatmul.f32.gmra.mxu3 %v4770_v38  ;;  %v4938_v38 = vld [vmem:[#allocation9 + $0x1b8] sm:$0xff] }
 0x53f   :  { %2007 = vmatpush.msrb.mxu3 %v4938_v38 }
 0x545   :  { %1712 = vmatmul.f32.gmra.mxu0 %v4852_v55  ;;  %1753 = vmatmul.f32.gmra.mxu1 %v4852_v55 }
 0x546   :  { %1794 = vmatmul.f32.gmra.mxu2 %v4852_v55  ;;  %1835 = vmatmul.f32.gmra.mxu3 %v4852_v55  ;;  %v4947_v55 = vld [vmem:[#allocation9 + $0x198] sm:$0xff] }
 0x547   :  { %2008 = vmatpush.msrb.mxu3 %v4947_v55 }
 0x549   :  { %2009 = vmatpush.msrb.mxu3 %v4961_v41 }
 0x54b   :  { %2010 = vmatpush.msrb.mxu3 %v4977_v52 }
 0x54d   :  { %1715 = vmatmul.f32.gmra.mxu0 %v1448_v20  ;;  %1756 = vmatmul.f32.gmra.mxu1 %v1448_v20 }
 0x54e   :  { %1797 = vmatmul.f32.gmra.mxu2 %v1448_v20  ;;  %1838 = vmatmul.f32.gmra.mxu3 %v1448_v20 }
 0x54f   :  { %2011 = vmatpush.msrb.mxu3 %v4996_v44 }
 0x551   :  { %2012 = vmatpush.msrb.mxu3 %v5003_v6 }
 0x553   :  { %2013 = vmatpush.msrb.mxu3 %v5007_v16 }
 0x555   :  { %2014 = vmatpush.msrb.mxu3 %v5018_v24 }
 0x557   :  { %2015 = vmatpush.msrb.mxu3 %v5030_v62 }
 0x592   :  { %v1471_v43 = vpop.f32.mrf.mxu0  ;;  %v1491_v45 = vpop.f32.mrf.mxu1 }
 0x593   :  { %v1534_v47 = vadd.f32 %v1471_v43, %v186_v13  ;;  %v1535_v48 = vadd.f32 %v1491_v45, %v227_v18  ;;  %v5044_v18 = vld [vmem:[#allocation9 + $0x98] sm:$0xff]  ;;  %v5046_v43 = vld [vmem:[#allocation9 + $0xd0] sm:$0xff] }
 0x594   :  { %6390 = vst [vmem:[#allocation26_spill] sm:$0xff] %v5044_v18  ;;  %2016 = vmatpush.msrb.mxu3 %v5044_v18  ;;  %1994 = vmatpush.msrb.mxu2 %v5046_v43 }
 0x595   :  { %v1538_v50 = vsub.f32 0.0, %v1534_v47  ;;  %v1556_v51 = vsub.f32 0.0, %v1535_v48  ;;  %6391 = vst [vmem:[#allocation34_spill] sm:$0xff] %v5046_v43  ;;  %v5051_v47 = vld [vmem:[#allocation9 + $0x60] sm:$0xff]  ;;  %v5053_v48 = vld [vmem:[#allocation9 + $0x68] sm:$0xff] }
 0x596   :  { %6392 = vst [vmem:[#allocation22_spill] sm:$0xff] %v5051_v47  ;;  %1957 = vmatpush.msra.mxu0 %v5051_v47  ;;  %1977 = vmatpush.msrb.mxu1 %v5053_v48  ;;  %v5088_v47 = vld [vmem:[#allocation9 + $0x38] sm:$0xff] }
 0x597   :  { %v1539_v3 = vmul.f32 1.442695, %v1538_v50  ;;  %v1557_v11 = vmul.f32 1.442695, %v1556_v51  ;;  %6393 = vst [vmem:[#allocation29_spill] sm:$0xff] %v5053_v48  ;;  %v5059_v50 = vld [vmem:[#allocation9 + $0xb0] sm:$0xff] }
 0x598   :  { %6394 = vst [vmem:[#allocation31_spill] sm:$0xff] %v5059_v50  ;;  %v5061_v51 = vld [vmem:[#allocation9 + $0x78] sm:$0xff]  ;;  %1995 = vmatpush.msrb.mxu2 %v5059_v50  ;;  %v5086_v48 = vld [vmem:[#allocation9 + $0x70] sm:$0xff] }
 0x599   :  { %3346 = vpow2.f32 %v1539_v3  ;;  %v1531_v8 = vpop.f32.mrf.mxu3  ;;  %6395 = vst [vmem:[#allocation24_spill] sm:$0xff] %v5061_v51  ;;  %v5066_v3 = vld [vmem:[#allocation9 + $0x40] sm:$0xff]  ;;  %2017 = vmatpush.msrb.mxu3 %v5061_v51 }
 0x59a   :  { %3348 = vpow2.f32 %v1557_v11  ;;  %v1537_v5 = vadd.f32 %v1531_v8, %v309_v61  ;;  %6396 = vst [vmem:[#allocation27_spill] sm:$0xff] %v5066_v3  ;;  %v5068_v11 = vld [vmem:[#allocation9 + $0x48] sm:$0xff]  ;;  %v5074_v61 = vld [vmem:[#allocation9 + $0x58] sm:$0xff]  ;;  %v1511_v8 = vpop.f32.mrf.mxu2  ;;  %1958 = vmatpush.msra.mxu0 %v5066_v3  ;;  %1996 = vmatpush.msrb.mxu2 %v5072_v31  ;;  %v5094_v51 = vld [vmem:[#allocation9] sm:$0xff] }
 0x59b   :  { %6397 = vst [vmem:[#allocation30_spill] sm:$0xff] %v5068_v11  ;;  %1978 = vmatpush.msrb.mxu1 %v5068_v11  ;;  %2018 = vmatpush.msrb.mxu3 %v5074_v61  ;;  %v5102_v11 = vld [vmem:[#allocation9 + $0x18] sm:$0xff] }
 0x59c   :  { %v1575_v34 = vsub.f32 0.0, %v1537_v5  ;;  %6399 = vst [vmem:[#allocation35_spill] sm:$0xff] %v5074_v61  ;;  %v5078_v5 = vld [vmem:[#allocation9 + $0x20] sm:$0xff]  ;;  %1997 = vmatpush.msrb.mxu2 %v5086_v48 }
 0x59d   :  { %6400 = vst [vmem:[#allocation28_spill] sm:$0xff] %v5078_v5  ;;  %1959 = vmatpush.msra.mxu0 %v5078_v5  ;;  %2019 = vmatpush.msrb.mxu3 %v5088_v47 }
 0x59e   :  { %v1576_v20 = vmul.f32 1.442695, %v1575_v34  ;;  %v5080_v34 = vld [vmem:[#allocation9 + $0x28] sm:$0xff]  ;;  %6403 = vst [vmem:[#allocation39_spill] sm:$0xff] %v5086_v48  ;;  %v5116_v48 = vld [vmem:[#allocation9 + $0x10] sm:$0xff] }
 0x59f   :  { %v3347_v15 = vpop.eup %3346  ;;  %6401 = vst [vmem:[#allocation33_spill] sm:$0xff] %v5080_v34  ;;  %1979 = vmatpush.msrb.mxu1 %v5080_v34  ;;  %1960 = vmatpush.msra.mxu0 %v5094_v51 }
 0x5a0   :  { %v3349_v13 = vpop.eup %3348  ;;  %v5040_v14 = vadd.f32 1.0, %v3347_v15  ;;  %3350 = vpow2.f32 %v1576_v20  ;;  %v6402_v15 = vld [vmem:[#allocation72_spill] sm:$0xff]  ;;  %6404 = vst [vmem:[#allocation38_spill] sm:$0xff] %v5088_v47  ;;  %2020 = vmatpush.msrb.mxu3 %v5102_v11 }
 0x5a1   :  { %v5048_v45 = vadd.f32 1.0, %v3349_v13  ;;  %v268_v13 = vadd.f32 %v6402_v15, %v6365_v37  ;;  %6405 = vst [vmem:[#allocation32_spill] sm:$0xff] %v5094_v51  ;;  %v5100_v15 = vld [vmem:[#allocation9 + $0x50] sm:$0xff]  ;;  %1980 = vmatpush.msrb.mxu1 %v5096_v57  ;;  %2093 = vmatpush.msrb.mxu0 %v4896_v21 }
 0x5a2   :  { %3352 = vrcp.f32 %v5040_v14  ;;  %6407 = vst [vmem:[#allocation41_spill] sm:$0xff] %v5100_v15  ;;  %1998 = vmatpush.msrb.mxu2 %v5100_v15  ;;  %v1553_v5 = vand.u32 2147483648, %v5040_v14  ;;  %2153 = vmatpush.msra.mxu3 %v4906_v42  ;;  %vm1547_vm7 = vweird.f32 %v5040_v14 }
 0x5a3   :  { %3354 = vrcp.f32 %v5048_v45  ;;  %v1536_v37 = vadd.f32 %v1511_v8, %v268_v13  ;;  %6408 = vst [vmem:[#allocation40_spill] sm:$0xff] %v5102_v11  ;;  %v5111_v8 = vld [vmem:[#allocation9 + $0x30] sm:$0xff]  ;;  %2113 = vmatpush.msra.mxu1 %v4898_v32  ;;  %v1571_v51 = vand.u32 2147483648, %v5048_v45  ;;  %2094 = vmatpush.msrb.mxu0 %v4900_v23  ;;  %vm1565_vm8 = vweird.f32 %v5048_v45 }
 0x5a4   :  { %6409 = vst [vmem:[#allocation45_spill] sm:$0xff] %v5111_v8  ;;  %1999 = vmatpush.msrb.mxu2 %v5111_v8  ;;  %2154 = vmatpush.msra.mxu3 %v4913_v9 }
 0x5a5   :  { %6410 = vst [vmem:[#allocation46_spill] sm:$0xff] %v5116_v48  ;;  %2114 = vmatpush.msra.mxu1 %v4904_v35  ;;  %2095 = vmatpush.msrb.mxu0 %v4909_v56 }
 0x5a6   :  { %v3351_v20 = vpop.eup %3350  ;;  %2000 = vmatpush.msrb.mxu2 %v5116_v48  ;;  %2155 = vmatpush.msra.mxu3 %v4938_v38 }
 0x5a7   :  { %v5090_v18 = vadd.f32 1.0, %v3351_v20  ;;  %2115 = vmatpush.msra.mxu1 %v4911_v39  ;;  %2096 = vmatpush.msrb.mxu0 %v4940_v53 }
 0x5a8   :  { %v3353_v19 = vpop.eup %3352  ;;  %2133 = vmatpush.msra.mxu2 %v4932_v25  ;;  %2156 = vmatpush.msra.mxu3 %v4947_v55 }
 0x5a9   :  { %v3355_v20 = vpop.eup %3354  ;;  %v1543_v3 = vmul.f32 %v3353_v19, %v5040_v14  ;;  %3356 = vrcp.f32 %v5090_v18  ;;  %vm1548_vm5 = vweird.f32 %v3353_v19  ;;  %2116 = vmatpush.msra.mxu1 %v4942_v2  ;;  %2097 = vmatpush.msrb.mxu0 %v4957_v40  ;;  %vm1584_vm14 = vweird.f32 %v5090_v18 }
 0x5aa   :  { %v1561_v61 = vmul.f32 %v3355_v20, %v5048_v45  ;;  %3358 = vtanh.f32 %v1536_v37  ;;  %vm1566_vm6 = vweird.f32 %v3355_v20  ;;  %v1569_v37 = vand.u32 2147483647, %v5048_v45  ;;  %vm1549_vm9 = vmor %vm1547_vm7, %vm1548_vm5  ;;  %2134 = vmatpush.msra.mxu2 %v4935_v29  ;;  %2157 = vmatpush.msra.mxu3 %v4961_v41 }
 0x5ab   :  { %v1544_v13 = vsub.f32 1.0, %v1543_v3  ;;  %v1551_v3 = vand.u32 2147483647, %v5040_v14  ;;  %vm1567_vm10 = vmor %vm1565_vm8, %vm1566_vm6  ;;  %2117 = vmatpush.msra.mxu1 %v4959_v17  ;;  %2098 = vmatpush.msrb.mxu0 %v4967_v4 }
 0x5ac   :  { %v1562_v34 = vsub.f32 1.0, %v1561_v61  ;;  %vm1570_vm12 = vcmp.eq.f32.partialorder %v1569_v37, 8.507059e+37  ;;  %2135 = vmatpush.msra.mxu2 %v4949_v63  ;;  %2158 = vmatpush.msra.mxu3 %v4977_v52  ;;  %v6412_v37 = vld [vmem:[#allocation60_spill] sm:$0xff] }
 0x5ad   :  { %v1545_v57 = vmul.f32 %v3353_v19, %v1544_v13  ;;  %vm1552_vm11 = vcmp.eq.f32.partialorder %v1551_v3, 8.507059e+37  ;;  %2118 = vmatpush.msra.mxu1 %v4969_v49  ;;  %2099 = vmatpush.msrb.mxu0 %v4983_v7  ;;  %v6411_v3 = vld [vmem:[#allocation61_spill] sm:$0xff] }
 0x5ae   :  { %v1563_v61 = vmul.f32 %v3355_v20, %v1562_v34  ;;  %v1554_v34 = vor.u32 1.1754944e-38, %v1553_v5  ;;  %2136 = vmatpush.msra.mxu2 %v4965_v46  ;;  %2159 = vmatpush.msra.mxu3 %v4996_v44 }
 0x5af   :  { %v5127_v21 = vpop.eup %3356  ;;  %v1546_v32 = vadd.f32 %v3353_v19, %v1545_v57  ;;  %v1572_v57 = vor.u32 1.1754944e-38, %v1571_v51  ;;  %2119 = vmatpush.msra.mxu1 %v4985_v12  ;;  %2100 = vmatpush.msrb.mxu0 %v4992_v58 }
 0x5b0   :  { %v1564_v13 = vadd.f32 %v3355_v20, %v1563_v61  ;;  %v1580_v23 = vmul.f32 %v5127_v21, %v5090_v18  ;;  %v3359_v45 = vpop.eup %3358  ;;  %vm1585_vm13 = vweird.f32 %v5127_v21  ;;  %2137 = vmatpush.msra.mxu2 %v4973_v10  ;;  %2160 = vmatpush.msra.mxu3 %v5003_v6 }
 0x5b1   :  { %v1550_v14 = vsel %vm1549_vm9, %v3353_v19, %v1546_v32  ;;  %vm1586_vm15 = vmor %vm1584_vm14, %vm1585_vm13  ;;  %2120 = vmatpush.msra.mxu1 %v4994_v59  ;;  %2101 = vmatpush.msrb.mxu0 %v4999_v0 }
 0x5b2   :  { %v1555_v9 = vsel %vm1552_vm11, %v1554_v34, %v1550_v14  ;;  %v1568_v5 = vsel %vm1567_vm10, %v3355_v20, %v1564_v13  ;;  %v1581_v61 = vsub.f32 1.0, %v1580_v23  ;;  %2138 = vmatpush.msra.mxu2 %v4980_v54  ;;  %2161 = vmatpush.msra.mxu3 %v5007_v16  ;;  %v6413_v34 = vld [vmem:[#allocation26_spill] sm:$0xff]  ;;  %v6416_v14 = vld [vmem:[#allocation24_spill] sm:$0xff] }
 0x5b3   :  { %v1573_v35 = vsel %vm1570_vm12, %v1572_v57, %v1568_v5  ;;  %v1594_v56 = vmul.f32 %v3359_v45, %v1555_v9  ;;  %2121 = vmatpush.msra.mxu1 %v5001_v60  ;;  %2102 = vmatpush.msrb.mxu0 %v5010_v33  ;;  %v6414_v13 = vld [vmem:[#allocation22_spill] sm:$0xff]  ;;  %v6415_v57 = vld [vmem:[#allocation29_spill] sm:$0xff]  ;;  %v6417_v45 = vmov 0.0   ;;  %v6418_v5 = vld [vmem:[#allocation39_spill] sm:$0xff] }
 0x5b4   :  { %v1593_v32 = vmul.f32 %v1573_v35, %v4881_v30  ;;  %v1582_v19 = vmul.f32 %v5127_v21, %v1581_v61  ;;  %v1590_v30 = vand.u32 2147483648, %v5090_v18  ;;  %v1588_v35 = vand.u32 2147483647, %v5090_v18  ;;  %2139 = vmatpush.msra.mxu2 %v5014_v36  ;;  %2162 = vmatpush.msra.mxu3 %v5018_v24  ;;  %v6419_v61 = vld [vmem:[#allocation27_spill] sm:$0xff] }
 0x5b5   :  { %2122 = vmatpush.msra.mxu1 %v5012_v1  ;;  %2103 = vmatpush.msrb.mxu0 %v5021_v26 }
 0x5b6   :  { %v1595_v23 = vadd.f32 %v1594_v56, %v1593_v32  ;;  %v1583_v9 = vadd.f32 %v5127_v21, %v1582_v19  ;;  %v1591_v51 = vor.u32 1.1754944e-38, %v1590_v30  ;;  %vm1589_vm0 = vcmp.eq.f32.partialorder %v1588_v35, 8.507059e+37  ;;  %2140 = vmatpush.msra.mxu2 %v5026_v28  ;;  %2163 = vmatpush.msra.mxu3 %v5030_v62  ;;  %v6420_v32 = vld [vmem:[#allocation30_spill] sm:$0xff]  ;;  %v6421_v19 = vld [vmem:[#allocation35_spill] sm:$0xff]  ;;  %v6424_v30 = vld [vmem:[#allocation32_spill] sm:$0xff] }
 0x5b7   :  { %2123 = vmatpush.msra.mxu1 %v5023_v22  ;;  %2104 = vmatpush.msrb.mxu0 %v6411_v3  ;;  %v6425_v35 = vld [vmem:[#allocation36_spill] sm:$0xff] }
 0x5b8   :  { %3360 = vtanh.f32 %v1595_v23  ;;  %v1587_v56 = vsel %vm1586_vm15, %v5127_v21, %v1583_v9  ;;  %2141 = vmatpush.msra.mxu2 %v5032_v27  ;;  %2164 = vmatpush.msra.mxu3 %v6413_v34  ;;  %v6422_v23 = vld [vmem:[#allocation28_spill] sm:$0xff]  ;;  %v6423_v9 = vld [vmem:[#allocation33_spill] sm:$0xff] }
 0x5b9   :  { %v1592_v20 = vsel %vm1589_vm0, %v1591_v51, %v1587_v56  ;;  %2124 = vmatpush.msra.mxu1 %v6412_v37  ;;  %2105 = vmatpush.msrb.mxu0 %v6414_v13  ;;  %v6426_v56 = vld [vmem:[#allocation18_spill] sm:$0xff]  ;;  %v6427_v51 = vld [vmem:[#allocation25_spill] sm:$0xff] }
 0x5ba   :  { %2142 = vmatpush.msra.mxu2 %v5046_v43  ;;  %2165 = vmatpush.msra.mxu3 %v6416_v14 }
 0x5bb   :  { %2125 = vmatpush.msra.mxu1 %v6415_v57  ;;  %2106 = vmatpush.msrb.mxu0 %v6419_v61 }
 0x5bc   :  { %2143 = vmatpush.msra.mxu2 %v5059_v50  ;;  %2166 = vmatpush.msra.mxu3 %v6421_v19 }
 0x5bd   :  { %2126 = vmatpush.msra.mxu1 %v6420_v32  ;;  %2107 = vmatpush.msrb.mxu0 %v6422_v23 }
 0x5be   :  { %v3361_v18 = vpop.eup %3360  ;;  %2144 = vmatpush.msra.mxu2 %v5072_v31  ;;  %2167 = vmatpush.msra.mxu3 %v5088_v47 }
 0x5bf   :  { %v1597_v21 = vmul.f32 %v3361_v18, %v1592_v20  ;;  %2127 = vmatpush.msra.mxu1 %v6423_v9  ;;  %2108 = vmatpush.msrb.mxu0 %v6424_v30  ;;  %v6428_v18 = vld [vmem:[#allocation23_spill] sm:$0xff]  ;;  %v6429_v20 = vld [vmem:[#allocation20_spill] sm:$0xff] }
 0x5c0   :  { %2145 = vmatpush.msra.mxu2 %v6418_v5  ;;  %2168 = vmatpush.msra.mxu3 %v5102_v11 }
 0x5c1   :  { %1718 = vmatmul.f32.gmra.mxu0 %v1597_v21  ;;  %1759 = vmatmul.f32.gmra.mxu1 %v1597_v21 }
 0x5c2   :  { %1800 = vmatmul.f32.gmra.mxu2 %v1597_v21  ;;  %1841 = vmatmul.f32.gmra.mxu3 %v1597_v21  ;;  %v6430_v21 = vld [vmem:[#allocation54_spill] sm:$0xff] }
 0x5c3   :  { %2146 = vmatpush.msra.mxu2 %v5100_v15  ;;  %2128 = vmatpush.msra.mxu1 %v6425_v35 }
 0x5c5   :  { %2147 = vmatpush.msra.mxu2 %v5111_v8 }
 0x5c7   :  { %2148 = vmatpush.msra.mxu2 %v5116_v48 }
 0x5c9   :  { %1961 = vmatmul.f32.vlgmr.msra.gmra.mxu0 %v6417_v45  ;;  %1981 = vmatmul.f32.vlgmr.msrb.gmra.mxu1 %v6417_v45 }
 0x5ca   :  { %2001 = vmatmul.f32.vlgmr.msrb.gmra.mxu2 %v6417_v45  ;;  %2021 = vmatmul.f32.vlgmr.msrb.gmra.mxu3 %v6417_v45  ;;  %v6431_v45 = vld [vmem:[#allocation51_spill] sm:$0xff] }
 0x5cb   :  { %2241 = vmatpush.msra.mxu0 %v6426_v56  ;;  %2261 = vmatpush.msrb.mxu1 %v6427_v51 }
 0x5cc   :  { %2281 = vmatpush.msrb.mxu2 %v4932_v25  ;;  %2301 = vmatpush.msrb.mxu3 %v4906_v42 }
 0x5cd   :  { %2242 = vmatpush.msra.mxu0 %v6428_v18  ;;  %2262 = vmatpush.msrb.mxu1 %v6429_v20 }
 0x5ce   :  { %2282 = vmatpush.msrb.mxu2 %v4935_v29  ;;  %2302 = vmatpush.msrb.mxu3 %v6430_v21 }
 0x5cf   :  { %2243 = vmatpush.msra.mxu0 %v6431_v45  ;;  %2263 = vmatpush.msrb.mxu1 %v4911_v39 }
 0x5d0   :  { %2283 = vmatpush.msrb.mxu2 %v4949_v63  ;;  %2303 = vmatpush.msrb.mxu3 %v4938_v38 }
 0x5d1   :  { %2244 = vmatpush.msra.mxu0 %v4940_v53  ;;  %2264 = vmatpush.msrb.mxu1 %v4942_v2 }
 0x5d2   :  { %2284 = vmatpush.msrb.mxu2 %v4965_v46  ;;  %2304 = vmatpush.msrb.mxu3 %v4947_v55 }
 0x5d3   :  { %2245 = vmatpush.msra.mxu0 %v4957_v40  ;;  %2265 = vmatpush.msrb.mxu1 %v4959_v17 }
 0x5d4   :  { %2285 = vmatpush.msrb.mxu2 %v4973_v10  ;;  %2305 = vmatpush.msrb.mxu3 %v4961_v41 }
 0x5d5   :  { %2246 = vmatpush.msra.mxu0 %v4967_v4  ;;  %2266 = vmatpush.msrb.mxu1 %v4969_v49 }
 0x5d6   :  { %2286 = vmatpush.msrb.mxu2 %v4980_v54  ;;  %2306 = vmatpush.msrb.mxu3 %v4977_v52 }
 0x5d7   :  { %2247 = vmatpush.msra.mxu0 %v4983_v7  ;;  %2267 = vmatpush.msrb.mxu1 %v4985_v12 }
 0x5d8   :  { %2287 = vmatpush.msrb.mxu2 %v5014_v36  ;;  %2307 = vmatpush.msrb.mxu3 %v4996_v44 }
 0x5d9   :  { %2248 = vmatpush.msra.mxu0 %v4992_v58  ;;  %2268 = vmatpush.msrb.mxu1 %v4994_v59 }
 0x5da   :  { %2288 = vmatpush.msrb.mxu2 %v5026_v28  ;;  %2308 = vmatpush.msrb.mxu3 %v5003_v6 }
 0x5db   :  { %2249 = vmatpush.msra.mxu0 %v4999_v0  ;;  %2269 = vmatpush.msrb.mxu1 %v5001_v60 }
 0x5dc   :  { %2289 = vmatpush.msrb.mxu2 %v5032_v27  ;;  %2309 = vmatpush.msrb.mxu3 %v5007_v16 }
 0x5dd   :  { %2250 = vmatpush.msra.mxu0 %v5010_v33  ;;  %2270 = vmatpush.msrb.mxu1 %v5012_v1 }
 0x5de   :  { %2290 = vmatpush.msrb.mxu2 %v5046_v43  ;;  %2310 = vmatpush.msrb.mxu3 %v5018_v24 }
 0x5df   :  { %2251 = vmatpush.msra.mxu0 %v5021_v26  ;;  %2271 = vmatpush.msrb.mxu1 %v5023_v22 }
 0x5e0   :  { %2291 = vmatpush.msrb.mxu2 %v5059_v50  ;;  %2311 = vmatpush.msrb.mxu3 %v5030_v62 }
 0x5e1   :  { %2252 = vmatpush.msra.mxu0 %v6411_v3  ;;  %2272 = vmatpush.msrb.mxu1 %v6412_v37 }
 0x5e2   :  { %2292 = vmatpush.msrb.mxu2 %v5072_v31  ;;  %2312 = vmatpush.msrb.mxu3 %v6413_v34 }
 0x5e3   :  { %2253 = vmatpush.msra.mxu0 %v6414_v13  ;;  %2273 = vmatpush.msrb.mxu1 %v6415_v57 }
 0x5e4   :  { %2293 = vmatpush.msrb.mxu2 %v6418_v5  ;;  %2313 = vmatpush.msrb.mxu3 %v6416_v14 }
 0x5e5   :  { %2254 = vmatpush.msra.mxu0 %v6419_v61  ;;  %2274 = vmatpush.msrb.mxu1 %v6420_v32  ;;  %v1698_v32 = vpop.f32.mrf.mxu0  ;;  %v1821_v61 = vpop.f32.mrf.mxu3 }
 0x5e6   :  { %2294 = vmatpush.msrb.mxu2 %v5100_v15  ;;  %2314 = vmatpush.msrb.mxu3 %v6421_v19  ;;  %v1739_v15 = vpop.f32.mrf.mxu1 }
 0x5e7   :  { %2255 = vmatpush.msra.mxu0 %v6422_v23  ;;  %2275 = vmatpush.msrb.mxu1 %v6423_v9  ;;  %v1780_v9 = vpop.f32.mrf.mxu2 }
 0x5e8   :  { %2295 = vmatpush.msrb.mxu2 %v5111_v8  ;;  %2315 = vmatpush.msrb.mxu3 %v5088_v47 }
 0x5e9   :  { %2256 = vmatpush.msra.mxu0 %v6424_v30  ;;  %2276 = vmatpush.msrb.mxu1 %v6425_v35 }
 0x5ea   :  { %2296 = vmatpush.msrb.mxu2 %v5116_v48  ;;  %2316 = vmatpush.msrb.mxu3 %v5102_v11 }
 0x5ed   :  { %v5271_v19 = vpop.f32.mrf.mxu0  ;;  %v5275_v14 = vpop.f32.mrf.mxu3 }
 0x5ee   :  { %6432 = vst [vmem:[#allocation49_spill] sm:$0xff] %v5271_v19  ;;  %v5273_v23 = vpop.f32.mrf.mxu1 }
 0x5ef   :  { %6433 = vst [vmem:[#allocation48_spill] sm:$0xff] %v5273_v23  ;;  %v5281_v30 = vpop.f32.mrf.mxu2 }
 0x5f0   :  { %6434 = vst [vmem:[#allocation47_spill] sm:$0xff] %v5275_v14 }
 0x5f1   :  { %6437 = vst [vmem:[#allocation52_spill] sm:$0xff] %v5281_v30 }
 0x5f5   :  { %v5277_v8 = vpop.f32.mrf.mxu0  ;;  %v5283_v35 = vpop.f32.mrf.mxu3 }
 0x5f6   :  { %6435 = vst [vmem:[#allocation50_spill] sm:$0xff] %v5277_v8  ;;  %v5279_v47 = vpop.f32.mrf.mxu1 }
 0x5f7   :  { %6436 = vst [vmem:[#allocation53_spill] sm:$0xff] %v5279_v47  ;;  %v5289_v5 = vpop.f32.mrf.mxu2 }
 0x5f8   :  { %6438 = vst [vmem:[#allocation59_spill] sm:$0xff] %v5283_v35 }
 0x5f9   :  { %6441 = vst [vmem:[#allocation62_spill] sm:$0xff] %v5289_v5 }
 0x5fd   :  { %v5285_v48 = vpop.f32.mrf.mxu0  ;;  %v5291_v19 = vpop.f32.mrf.mxu3 }
 0x5fe   :  { %6439 = vst [vmem:[#allocation42_spill] sm:$0xff] %v5285_v48  ;;  %v5287_v11 = vpop.f32.mrf.mxu1 }
 0x5ff   :  { %6440 = vst [vmem:[#allocation68_spill] sm:$0xff] %v5287_v11  ;;  %v5297_v14 = vpop.f32.mrf.mxu2 }
 0x600   :  { %6442 = vst [vmem:[#allocation71_spill] sm:$0xff] %v5291_v19 }
 0x601   :  { %6445 = vst [vmem:[#allocation65_spill] sm:$0xff] %v5297_v14 }
 0x605   :  { %v5293_v23 = vpop.f32.mrf.mxu0  ;;  %v5299_v8 = vpop.f32.mrf.mxu3 }
 0x606   :  { %6443 = vst [vmem:[#allocation63_spill] sm:$0xff] %v5293_v23  ;;  %v5295_v57 = vpop.f32.mrf.mxu1 }
 0x607   :  { %6444 = vst [vmem:[#allocation73_spill] sm:$0xff] %v5295_v57  ;;  %v5305_v35 = vpop.f32.mrf.mxu2 }
 0x608   :  { %6446 = vst [vmem:[#allocation43_spill] sm:$0xff] %v5299_v8  ;;  %v1671_v8 = vld [vmem:[%s5886_s6] sm:$0xf] }
 0x609   :  { %6449 = vst [vmem:[#allocation69_spill] sm:$0xff] %v5305_v35  ;;  %v5326_v35 = vperm.slane %v1671_v8, 1  ;;  %v5334_v31 = vperm.slane %v1671_v8, 3 }
 0x60b   :  { %6458 = vst [vmem:[#allocation18_spill] sm:$0xff] %v5326_v35  ;;  %v1822_v62 = vadd.f32 %v1821_v61, %v5334_v31 }
 0x60c   :  { %6461 = vst [vmem:[#allocation20_spill] sm:$0xff] %v5334_v31 }
 0x60d   :  { %v5301_v47 = vpop.f32.mrf.mxu0  ;;  %v5307_v48 = vpop.f32.mrf.mxu3 }
 0x60e   :  { %6447 = vst [vmem:[#allocation64_spill] sm:$0xff] %v5301_v47  ;;  %v5303_v30 = vpop.f32.mrf.mxu1 }
 0x60f   :  { %6448 = vst [vmem:[#allocation66_spill] sm:$0xff] %v5303_v30  ;;  %v5313_v19 = vpop.f32.mrf.mxu2  ;;  %v5324_v30 = vperm.slane %v1671_v8, 0 }
 0x610   :  { %6450 = vst [vmem:[#allocation74_spill] sm:$0xff] %v5307_v48 }
 0x611   :  { %6453 = vst [vmem:[#allocation17_spill] sm:$0xff] %v5313_v19 }
 0x612   :  { %6457 = vst [vmem:[#allocation72_spill] sm:$0xff] %v5324_v30 }
 0x615   :  { %v5309_v11 = vpop.f32.mrf.mxu0  ;;  %v5315_v23 = vpop.f32.mrf.mxu3 }
 0x616   :  { %6451 = vst [vmem:[#allocation19_spill] sm:$0xff] %v5309_v11  ;;  %v5311_v5 = vpop.f32.mrf.mxu1  ;;  %v1699_v11 = vadd.f32 %v1698_v32, %v5324_v30 }
 0x617   :  { %6452 = vst [vmem:[#allocation21_spill] sm:$0xff] %v5311_v5  ;;  %v1740_v5 = vadd.f32 %v1739_v15, %v5326_v35  ;;  %v5332_v14 = vpop.f32.mrf.mxu2 }
 0x618   :  { %6454 = vst [vmem:[#allocation44_spill] sm:$0xff] %v5315_v23 }
 0x619   :  { %6460 = vst [vmem:[#allocation23_spill] sm:$0xff] %v5332_v14 }
 0x63e   :  { %v5320_v57 = vpop.f32.mrf.mxu0  ;;  %v5322_v47 = vpop.f32.mrf.mxu1 }
 0x63f   :  { %6455 = vst [vmem:[#allocation67_spill] sm:$0xff] %v5320_v57 }
 0x640   :  { %6456 = vst [vmem:[#allocation70_spill] sm:$0xff] %v5322_v47 }
 0x645   :  { %v5330_v48 = vpop.f32.mrf.mxu3  ;;  %v5337_v35 = vpop.f32.mrf.mxu2 }
 0x646   :  { %6459 = vst [vmem:[#allocation25_spill] sm:$0xff] %v5330_v48  ;;  %v1962_v19 = vpop.f32.mrf.mxu0  ;;  %v1982_v23 = vpop.f32.mrf.mxu1 }
 0x647   :  { %v2025_v13 = vadd.f32 %v1962_v19, %v1699_v11  ;;  %v2026_v34 = vadd.f32 %v1982_v23, %v1740_v5  ;;  %6462 = vst [vmem:[#allocation54_spill] sm:$0xff] %v5337_v35  ;;  %v5339_v19 = vperm.slane %v1671_v8, 2 }
 0x649   :  { %v2029_v57 = vsub.f32 0.0, %v2025_v13  ;;  %v2047_v47 = vsub.f32 0.0, %v2026_v34  ;;  %6463 = vst [vmem:[#allocation51_spill] sm:$0xff] %v5339_v19 }
 0x64b   :  { %v2030_v37 = vmul.f32 1.442695, %v2029_v57  ;;  %v2048_v3 = vmul.f32 1.442695, %v2047_v47 }
 0x64d   :  { %3362 = vpow2.f32 %v2030_v37  ;;  %v2022_v32 = vpop.f32.mrf.mxu3  ;;  %v2002_v47 = vpop.f32.mrf.mxu2  ;;  %v1781_v37 = vadd.f32 %v1780_v9, %v5339_v19 }
 0x64e   :  { %3364 = vpow2.f32 %v2048_v3  ;;  %v2028_v15 = vadd.f32 %v2022_v32, %v1822_v62 }
 0x64f   :  { %v2027_v62 = vadd.f32 %v2002_v47, %v1781_v37 }
 0x650   :  { %v2066_v48 = vsub.f32 0.0, %v2028_v15 }
 0x652   :  { %v2067_v30 = vmul.f32 1.442695, %v2066_v48 }
 0x653   :  { %v3363_v50 = vpop.eup %3362 }
 0x654   :  { %v3365_v14 = vpop.eup %3364  ;;  %v2032_v11 = vadd.f32 1.0, %v3363_v50  ;;  %3366 = vpow2.f32 %v2067_v30 }
 0x655   :  { %v2050_v5 = vadd.f32 1.0, %v3365_v14 }
 0x656   :  { %3368 = vrcp.f32 %v2032_v11  ;;  %v2044_v50 = vand.u32 2147483648, %v2032_v11  ;;  %v2042_v30 = vand.u32 2147483647, %v2032_v11  ;;  %vm2038_vm3 = vweird.f32 %v2032_v11 }
 0x657   :  { %3370 = vrcp.f32 %v2050_v5  ;;  %v2062_v14 = vand.u32 2147483648, %v2050_v5  ;;  %v2060_v35 = vand.u32 2147483647, %v2050_v5  ;;  %vm2056_vm4 = vweird.f32 %v2050_v5 }
 0x658   :  { %v2045_v47 = vor.u32 1.1754944e-38, %v2044_v50  ;;  %vm2043_vm6 = vcmp.eq.f32.partialorder %v2042_v30, 8.507059e+37 }
 0x659   :  { %vm2061_vm8 = vcmp.eq.f32.partialorder %v2060_v35, 8.507059e+37 }
 0x65a   :  { %v3367_v34 = vpop.eup %3366 }
 0x65b   :  { %v2069_v13 = vadd.f32 1.0, %v3367_v34 }
 0x65c   :  { %v3369_v3 = vpop.eup %3368 }
 0x65d   :  { %v3371_v57 = vpop.eup %3370  ;;  %v2034_v61 = vmul.f32 %v3369_v3, %v2032_v11  ;;  %3372 = vrcp.f32 %v2069_v13  ;;  %vm2039_vm1 = vweird.f32 %v3369_v3  ;;  %vm2075_vm10 = vweird.f32 %v2069_v13 }
 0x65e   :  { %v2052_v48 = vmul.f32 %v3371_v57, %v2050_v5  ;;  %3374 = vtanh.f32 %v2027_v62  ;;  %vm2057_vm2 = vweird.f32 %v3371_v57  ;;  %vm2040_vm5 = vmor %vm2038_vm3, %vm2039_vm1  ;;  %v2081_v5 = vand.u32 2147483648, %v2069_v13 }
 0x65f   :  { %v2035_v23 = vsub.f32 1.0, %v2034_v61  ;;  %vm2058_vm7 = vmor %vm2056_vm4, %vm2057_vm2  ;;  %v2063_v61 = vor.u32 1.1754944e-38, %v2062_v14 }
 0x660   :  { %v2053_v32 = vsub.f32 1.0, %v2052_v48  ;;  %v2082_v14 = vor.u32 1.1754944e-38, %v2081_v5 }
 0x661   :  { %v2036_v8 = vmul.f32 %v3369_v3, %v2035_v23 }
 0x662   :  { %v2054_v15 = vmul.f32 %v3371_v57, %v2053_v32 }
 0x663   :  { %v3373_v31 = vpop.eup %3372  ;;  %v2037_v9 = vadd.f32 %v3369_v3, %v2036_v8 }
 0x664   :  { %v2055_v34 = vadd.f32 %v3371_v57, %v2054_v15  ;;  %v2071_v37 = vmul.f32 %v3373_v31, %v2069_v13  ;;  %v3375_v62 = vpop.eup %3374  ;;  %vm2076_vm9 = vweird.f32 %v3373_v31 }
 0x665   :  { %v2041_v19 = vsel %vm2040_vm5, %v3369_v3, %v2037_v9  ;;  %v2079_v3 = vand.u32 2147483647, %v2069_v13  ;;  %vm2077_vm11 = vmor %vm2075_vm10, %vm2076_vm9 }
 0x666   :  { %v2046_v48 = vsel %vm2043_vm6, %v2045_v47, %v2041_v19  ;;  %v2059_v23 = vsel %vm2058_vm7, %v3371_v57, %v2055_v34  ;;  %v2072_v22 = vsub.f32 1.0, %v2071_v37 }
 0x667   :  { %v2064_v32 = vsel %vm2061_vm8, %v2063_v61, %v2059_v23  ;;  %v2085_v26 = vmul.f32 %v3375_v62, %v2046_v48  ;;  %vm2080_vm12 = vcmp.eq.f32.partialorder %v2079_v3, 8.507059e+37  ;;  %v6496_v23 = vld [vmem:[#allocation51_spill] sm:$0xff] }
 0x668   :  { %v2084_v24 = vmul.f32 0.0, %v2064_v32  ;;  %v2073_v43 = vmul.f32 %v3373_v31, %v2072_v22  ;;  %v6497_v32 = vld [vmem:[#allocation52_spill] sm:$0xff] }
 0x66a   :  { %v5342_v8 = vadd.f32 %v2085_v26, %v2084_v24  ;;  %v2074_v11 = vadd.f32 %v3373_v31, %v2073_v43  ;;  %v6493_v24 = vld [vmem:[#allocation48_spill] sm:$0xff] }
 0x66c   :  { %3376 = vtanh.f32 %v5342_v8  ;;  %v2078_v50 = vsel %vm2077_vm11, %v3373_v31, %v2074_v11  ;;  %v1784_v11 = vadd.f32 %v6497_v32, %v6496_v23  ;;  %v5481_v32 = vld [vmem:[#allocation9 + $0x140] sm:$0xff] }
 0x66d   :  { %v2083_v35 = vsel %vm2080_vm12, %v2082_v14, %v2078_v50 }
 0x672   :  { %v3377_v19 = vpop.eup %3376 }
 0x673   :  { %v2088_v57 = vmul.f32 %v3377_v19, %v2083_v35 }
 0x675   :  { %2109 = vmatmul.f32.vlgmr.msrb.gmra.mxu0 %v2088_v57  ;;  %2129 = vmatmul.f32.vlgmr.msra.gmra.mxu1 %v2088_v57 }
 0x676   :  { %2149 = vmatmul.f32.vlgmr.msra.gmra.mxu2 %v2088_v57  ;;  %2169 = vmatmul.f32.vlgmr.msra.gmra.mxu3 %v2088_v57 }
 0x677   :  { %2389 = vmatpush.msrb.mxu0 %v6426_v56  ;;  %2409 = vmatpush.msra.mxu1 %v6427_v51 }
 0x678   :  { %2429 = vmatpush.msra.mxu2 %v4932_v25  ;;  %2449 = vmatpush.msra.mxu3 %v4906_v42  ;;  %v6464_v42 = vld [vmem:[#allocation34_spill] sm:$0xff]  ;;  %v6466_v25 = vld [vmem:[#allocation56_spill] sm:$0xff] }
 0x679   :  { %2390 = vmatpush.msrb.mxu0 %v6428_v18  ;;  %2410 = vmatpush.msra.mxu1 %v6429_v20  ;;  %v6494_v20 = vld [vmem:[#allocation20_spill] sm:$0xff] }
 0x67a   :  { %2430 = vmatpush.msra.mxu2 %v4935_v29  ;;  %2450 = vmatpush.msra.mxu3 %v6430_v21  ;;  %v6467_v29 = vld [vmem:[#allocation55_spill] sm:$0xff] }
 0x67b   :  { %2391 = vmatpush.msrb.mxu0 %v6431_v45  ;;  %2411 = vmatpush.msra.mxu1 %v4911_v39  ;;  %v6465_v39 = vld [vmem:[#allocation57_spill] sm:$0xff]  ;;  %v6495_v21 = vld [vmem:[#allocation47_spill] sm:$0xff] }
 0x67c   :  { %2431 = vmatpush.msra.mxu2 %v4949_v63  ;;  %2451 = vmatpush.msra.mxu3 %v4938_v38  ;;  %v6468_v38 = vld [vmem:[#allocation31_spill] sm:$0xff]  ;;  %v6472_v63 = vld [vmem:[#allocation37_spill] sm:$0xff]  ;;  %v1825_v45 = vadd.f32 %v6495_v21, %v6494_v20  ;;  %v5445_v21 = vld [vmem:[#allocation9 + $0x1a0] sm:$0xff] }
 0x67d   :  { %2392 = vmatpush.msrb.mxu0 %v4940_v53  ;;  %2412 = vmatpush.msra.mxu1 %v4942_v2  ;;  %v6469_v53 = vld [vmem:[#allocation58_spill] sm:$0xff]  ;;  %v6470_v2 = vld [vmem:[#allocation61_spill] sm:$0xff] }
 0x67e   :  { %2432 = vmatpush.msra.mxu2 %v4965_v46  ;;  %2452 = vmatpush.msra.mxu3 %v4947_v55  ;;  %v6471_v55 = vld [vmem:[#allocation60_spill] sm:$0xff]  ;;  %v6476_v46 = vld [vmem:[#allocation39_spill] sm:$0xff] }
 0x67f   :  { %2393 = vmatpush.msrb.mxu0 %v4957_v40  ;;  %2413 = vmatpush.msra.mxu1 %v4959_v17  ;;  %v6473_v40 = vld [vmem:[#allocation26_spill] sm:$0xff] }
 0x680   :  { %2433 = vmatpush.msra.mxu2 %v4973_v10  ;;  %2453 = vmatpush.msra.mxu3 %v4961_v41  ;;  %v6474_v17 = vld [vmem:[#allocation22_spill] sm:$0xff]  ;;  %v6475_v41 = vld [vmem:[#allocation29_spill] sm:$0xff] }
 0x681   :  { %2394 = vmatpush.msrb.mxu0 %v4967_v4  ;;  %2414 = vmatpush.msra.mxu1 %v4969_v49  ;;  %v6477_v4 = vld [vmem:[#allocation24_spill] sm:$0xff]  ;;  %v6478_v49 = vld [vmem:[#allocation27_spill] sm:$0xff]  ;;  %v6479_v10 = vld [vmem:[#allocation30_spill] sm:$0xff] }
 0x682   :  { %2434 = vmatpush.msra.mxu2 %v4980_v54  ;;  %2454 = vmatpush.msra.mxu3 %v4977_v52  ;;  %v6480_v52 = vld [vmem:[#allocation41_spill] sm:$0xff]  ;;  %v6481_v54 = vld [vmem:[#allocation35_spill] sm:$0xff] }
 0x683   :  { %2395 = vmatpush.msrb.mxu0 %v4983_v7  ;;  %2415 = vmatpush.msra.mxu1 %v4985_v12  ;;  %v6482_v7 = vld [vmem:[#allocation28_spill] sm:$0xff]  ;;  %v6483_v12 = vld [vmem:[#allocation33_spill] sm:$0xff] }
 0x684   :  { %2435 = vmatpush.msra.mxu2 %v5014_v36  ;;  %2455 = vmatpush.msra.mxu3 %v4996_v44  ;;  %v6486_v44 = vld [vmem:[#allocation32_spill] sm:$0xff]  ;;  %v6492_v36 = vld [vmem:[#allocation18_spill] sm:$0xff] }
 0x685   :  { %2396 = vmatpush.msrb.mxu0 %v4992_v58  ;;  %2416 = vmatpush.msra.mxu1 %v4994_v59  ;;  %v6484_v58 = vld [vmem:[#allocation45_spill] sm:$0xff]  ;;  %v6485_v59 = vld [vmem:[#allocation38_spill] sm:$0xff]  ;;  %v1743_v26 = vadd.f32 %v6493_v24, %v6492_v36 }
 0x686   :  { %2436 = vmatpush.msra.mxu2 %v5026_v28  ;;  %2456 = vmatpush.msra.mxu3 %v5003_v6  ;;  %v6489_v6 = vld [vmem:[#allocation40_spill] sm:$0xff] }
 0x687   :  { %2397 = vmatpush.msrb.mxu0 %v4999_v0  ;;  %2417 = vmatpush.msra.mxu1 %v5001_v60  ;;  %v6487_v0 = vld [vmem:[#allocation36_spill] sm:$0xff]  ;;  %v6488_v60 = vld [vmem:[#allocation46_spill] sm:$0xff] }
 0x688   :  { %2437 = vmatpush.msra.mxu2 %v5032_v27  ;;  %2457 = vmatpush.msra.mxu3 %v5007_v16  ;;  %v6490_v16 = vld [vmem:[#allocation72_spill] sm:$0xff] }
 0x689   :  { %2398 = vmatpush.msrb.mxu0 %v5010_v33  ;;  %2418 = vmatpush.msra.mxu1 %v5012_v1  ;;  %v6491_v33 = vld [vmem:[#allocation49_spill] sm:$0xff] }
 0x68a   :  { %2438 = vmatpush.msra.mxu2 %v6464_v42  ;;  %2458 = vmatpush.msra.mxu3 %v6465_v39  ;;  %v1702_v1 = vadd.f32 %v6491_v33, %v6490_v16 }
 0x68b   :  { %2399 = vmatpush.msrb.mxu0 %v6466_v25  ;;  %2419 = vmatpush.msra.mxu1 %v6467_v29 }
 0x68c   :  { %2439 = vmatpush.msra.mxu2 %v6468_v38  ;;  %2459 = vmatpush.msra.mxu3 %v6469_v53 }
 0x68d   :  { %2400 = vmatpush.msrb.mxu0 %v6470_v2  ;;  %2420 = vmatpush.msra.mxu1 %v6471_v55 }
 0x68e   :  { %2440 = vmatpush.msra.mxu2 %v6472_v63  ;;  %2460 = vmatpush.msra.mxu3 %v6473_v40 }
 0x68f   :  { %2401 = vmatpush.msrb.mxu0 %v6474_v17  ;;  %2421 = vmatpush.msra.mxu1 %v6475_v41 }
 0x690   :  { %2441 = vmatpush.msra.mxu2 %v6476_v46  ;;  %2461 = vmatpush.msra.mxu3 %v6477_v4 }
 0x691   :  { %2402 = vmatpush.msrb.mxu0 %v6478_v49  ;;  %2422 = vmatpush.msra.mxu1 %v6479_v10 }
 0x692   :  { %2442 = vmatpush.msra.mxu2 %v6480_v52  ;;  %2462 = vmatpush.msra.mxu3 %v6481_v54 }
 0x693   :  { %2403 = vmatpush.msrb.mxu0 %v6482_v7  ;;  %2423 = vmatpush.msra.mxu1 %v6483_v12 }
 0x694   :  { %2443 = vmatpush.msra.mxu2 %v6484_v58  ;;  %2463 = vmatpush.msra.mxu3 %v6485_v59 }
 0x695   :  { %2404 = vmatpush.msrb.mxu0 %v6486_v44  ;;  %2424 = vmatpush.msra.mxu1 %v6487_v0 }
 0x696   :  { %2444 = vmatpush.msra.mxu2 %v6488_v60  ;;  %2464 = vmatpush.msra.mxu3 %v6489_v6 }
 0x6f2   :  { %v2110_v22 = vpop.f32.mrf.mxu0  ;;  %v2130_v28 = vpop.f32.mrf.mxu1 }
 0x6f3   :  { %v2173_v27 = vadd.f32 %v2110_v22, %v1702_v1  ;;  %v2174_v43 = vadd.f32 %v2130_v28, %v1743_v26  ;;  %v5424_v28 = vld [vmem:[#allocation9 + $0x1e8] sm:$0xff] }
 0x6f5   :  { %v2177_v31 = vsub.f32 0.0, %v2173_v27  ;;  %v2195_v56 = vsub.f32 0.0, %v2174_v43  ;;  %v5427_v27 = vld [vmem:[#allocation9 + $0x1f0] sm:$0xff]  ;;  %v5430_v43 = vld [vmem:[#allocation9 + $0x1f8] sm:$0xff] }
 0x6f7   :  { %v2178_v51 = vmul.f32 1.442695, %v2177_v31  ;;  %v2196_v18 = vmul.f32 1.442695, %v2195_v56  ;;  %v5433_v31 = vld [vmem:[#allocation9 + $0x1c0] sm:$0xff]  ;;  %v5436_v56 = vld [vmem:[#allocation9 + $0x1c8] sm:$0xff] }
 0x6f9   :  { %3378 = vpow2.f32 %v2178_v51  ;;  %v2170_v13 = vpop.f32.mrf.mxu3  ;;  %v2150_v62 = vpop.f32.mrf.mxu2  ;;  %v5439_v51 = vld [vmem:[#allocation9 + $0x1d0] sm:$0xff] }
 0x6fa   :  { %3380 = vpow2.f32 %v2196_v18  ;;  %v2176_v30 = vadd.f32 %v2170_v13, %v1825_v45  ;;  %v2175_v50 = vadd.f32 %v2150_v62, %v1784_v11  ;;  %v5442_v18 = vld [vmem:[#allocation9 + $0x1d8] sm:$0xff]  ;;  %v5448_v45 = vld [vmem:[#allocation9 + $0x1a8] sm:$0xff]  ;;  %v5451_v13 = vld [vmem:[#allocation9 + $0x1b0] sm:$0xff] }
 0x6fb   :  { %v5475_v62 = vld [vmem:[#allocation9 + $0x170] sm:$0xff]  ;;  %v5484_v11 = vld [vmem:[#allocation9 + $0x148] sm:$0xff] }
 0x6fc   :  { %v2214_v15 = vsub.f32 0.0, %v2176_v30  ;;  %v5454_v30 = vld [vmem:[#allocation9 + $0x1b8] sm:$0xff] }
 0x6fe   :  { %v2215_v9 = vmul.f32 1.442695, %v2214_v15  ;;  %v5457_v15 = vld [vmem:[#allocation9 + $0x180] sm:$0xff] }
 0x6ff   :  { %v3379_v47 = vpop.eup %3378 }
 0x700   :  { %v3381_v34 = vpop.eup %3380  ;;  %v2180_v37 = vadd.f32 1.0, %v3379_v47  ;;  %3382 = vpow2.f32 %v2215_v9  ;;  %v5460_v9 = vld [vmem:[#allocation9 + $0x188] sm:$0xff]  ;;  %v5463_v47 = vld [vmem:[#allocation9 + $0x190] sm:$0xff] }
 0x701   :  { %v2198_v61 = vadd.f32 1.0, %v3381_v34  ;;  %v5466_v34 = vld [vmem:[#allocation9 + $0x198] sm:$0xff] }
 0x702   :  { %3384 = vrcp.f32 %v2180_v37  ;;  %v2192_v39 = vand.u32 2147483648, %v2180_v37  ;;  %v2190_v38 = vand.u32 2147483647, %v2180_v37  ;;  %vm2186_vm15 = vweird.f32 %v2180_v37 }
 0x703   :  { %3386 = vrcp.f32 %v2198_v61  ;;  %v2210_v25 = vand.u32 2147483648, %v2198_v61  ;;  %v2208_v2 = vand.u32 2147483647, %v2198_v61  ;;  %vm2204_vm0 = vweird.f32 %v2198_v61 }
 0x704   :  { %v2193_v40 = vor.u32 1.1754944e-38, %v2192_v39  ;;  %vm2191_vm3 = vcmp.eq.f32.partialorder %v2190_v38, 8.507059e+37  ;;  %v5511_v39 = vld [vmem:[#allocation9 + $0x110] sm:$0xff]  ;;  %v5520_v38 = vld [vmem:[#allocation9 + $0xe8] sm:$0xff] }
 0x705   :  { %v2211_v46 = vor.u32 1.1754944e-38, %v2210_v25  ;;  %vm2209_vm4 = vcmp.eq.f32.partialorder %v2208_v2, 8.507059e+37  ;;  %v5514_v25 = vld [vmem:[#allocation9 + $0x118] sm:$0xff] }
 0x706   :  { %v3383_v48 = vpop.eup %3382  ;;  %v5526_v2 = vld [vmem:[#allocation9 + $0xf8] sm:$0xff] }
 0x707   :  { %v2217_v5 = vadd.f32 1.0, %v3383_v48  ;;  %v5478_v48 = vld [vmem:[#allocation9 + $0x178] sm:$0xff] }
 0x708   :  { %v3385_v3 = vpop.eup %3384 }
 0x709   :  { %v3387_v14 = vpop.eup %3386  ;;  %v2182_v19 = vmul.f32 %v3385_v3, %v2180_v37  ;;  %3388 = vrcp.f32 %v2217_v5  ;;  %vm2187_vm13 = vweird.f32 %v3385_v3  ;;  %v2229_v60 = vand.u32 2147483648, %v2217_v5  ;;  %v5469_v37 = vld [vmem:[#allocation9 + $0x160] sm:$0xff] }
 0x70a   :  { %v2200_v35 = vmul.f32 %v3387_v14, %v2198_v61  ;;  %3390 = vtanh.f32 %v2175_v50  ;;  %vm2205_vm14 = vweird.f32 %v3387_v14  ;;  %vm2188_vm1 = vmor %vm2186_vm15, %vm2187_vm13  ;;  %vm2223_vm6 = vweird.f32 %v2217_v5  ;;  %v5472_v61 = vld [vmem:[#allocation9 + $0x168] sm:$0xff]  ;;  %v5493_v50 = vld [vmem:[#allocation9 + $0x120] sm:$0xff] }
 0x70b   :  { %v2183_v57 = vsub.f32 1.0, %v2182_v19  ;;  %vm2206_vm2 = vmor %vm2204_vm0, %vm2205_vm14  ;;  %v2227_v6 = vand.u32 2147483647, %v2217_v5  ;;  %v2230_v1 = vor.u32 1.1754944e-38, %v2229_v60  ;;  %v5499_v19 = vld [vmem:[#allocation9 + $0x130] sm:$0xff]  ;;  %v5577_v60 = vld [vmem:[#allocation9 + $0x40] sm:$0xff] }
 0x70c   :  { %v2201_v42 = vsub.f32 1.0, %v2200_v35  ;;  %v5502_v35 = vld [vmem:[#allocation9 + $0x138] sm:$0xff]  ;;  %6512 = vst [vmem:[#allocation27_spill] sm:$0xff] %v5577_v60 }
 0x70d   :  { %v2184_v29 = vmul.f32 %v3385_v3, %v2183_v57  ;;  %vm2228_vm8 = vcmp.eq.f32.partialorder %v2227_v6, 8.507059e+37  ;;  %v5505_v57 = vld [vmem:[#allocation9 + $0x100] sm:$0xff]  ;;  %v5580_v6 = vld [vmem:[#allocation9 + $0x48] sm:$0xff] }
 0x70e   :  { %v2202_v53 = vmul.f32 %v3387_v14, %v2201_v42  ;;  %v5508_v42 = vld [vmem:[#allocation9 + $0x108] sm:$0xff]  ;;  %6513 = vst [vmem:[#allocation30_spill] sm:$0xff] %v5580_v6 }
 0x70f   :  { %v3389_v55 = vpop.eup %3388  ;;  %v2185_v63 = vadd.f32 %v3385_v3, %v2184_v29  ;;  %v5517_v29 = vld [vmem:[#allocation9 + $0xe0] sm:$0xff] }
 0x710   :  { %v2203_v17 = vadd.f32 %v3387_v14, %v2202_v53  ;;  %v2219_v41 = vmul.f32 %v3389_v55, %v2217_v5  ;;  %v3391_v49 = vpop.eup %3390  ;;  %vm2224_vm5 = vweird.f32 %v3389_v55  ;;  %v5487_v5 = vld [vmem:[#allocation9 + $0x150] sm:$0xff] }
 0x711   :  { %v2189_v4 = vsel %vm2188_vm1, %v3385_v3, %v2185_v63  ;;  %vm2225_vm7 = vmor %vm2223_vm6, %vm2224_vm5  ;;  %v5490_v3 = vld [vmem:[#allocation9 + $0x158] sm:$0xff]  ;;  %v5523_v53 = vld [vmem:[#allocation9 + $0xf0] sm:$0xff] }
 0x712   :  { %v2194_v10 = vsel %vm2191_vm3, %v2193_v40, %v2189_v4  ;;  %v2207_v52 = vsel %vm2206_vm2, %v3387_v14, %v2203_v17  ;;  %v2220_v54 = vsub.f32 1.0, %v2219_v41  ;;  %v5496_v14 = vld [vmem:[#allocation9 + $0x128] sm:$0xff]  ;;  %v5535_v40 = vld [vmem:[#allocation9 + $0xd0] sm:$0xff]  ;;  %v5538_v17 = vld [vmem:[#allocation9 + $0xd8] sm:$0xff] }
 0x713   :  { %v2212_v7 = vsel %vm2209_vm4, %v2211_v46, %v2207_v52  ;;  %v2233_v12 = vmul.f32 %v3391_v49, %v2194_v10  ;;  %v5532_v63 = vld [vmem:[#allocation9 + $0xc8] sm:$0xff]  ;;  %6498 = vst [vmem:[#allocation34_spill] sm:$0xff] %v5535_v40  ;;  %v5541_v41 = vld [vmem:[#allocation9 + $0xa0] sm:$0xff]  ;;  %v5547_v4 = vld [vmem:[#allocation9 + $0xb0] sm:$0xff] }
 0x714   :  { %v2232_v58 = vmul.f32 %v2212_v7, %v5342_v8  ;;  %v2221_v59 = vmul.f32 %v3389_v55, %v2220_v54  ;;  %v5421_v8 = vld [vmem:[#allocation9 + $0x1e0] sm:$0xff]  ;;  %6499 = vst [vmem:[#allocation57_spill] sm:$0xff] %v5538_v17  ;;  %v5544_v46 = vld [vmem:[#allocation9 + $0xa8] sm:$0xff]  ;;  %v5550_v49 = vld [vmem:[#allocation9 + $0xb8] sm:$0xff] }
 0x715   :  { %6500 = vst [vmem:[#allocation56_spill] sm:$0xff] %v5541_v41  ;;  %v5553_v10 = vld [vmem:[#allocation9 + $0x80] sm:$0xff]  ;;  %v5556_v52 = vld [vmem:[#allocation9 + $0x88] sm:$0xff]  ;;  %v5559_v54 = vld [vmem:[#allocation9 + $0x90] sm:$0xff] }
 0x716   :  { %v5418_v44 = vadd.f32 %v2233_v12, %v2232_v58  ;;  %v2222_v0 = vadd.f32 %v3389_v55, %v2221_v59  ;;  %6501 = vst [vmem:[#allocation55_spill] sm:$0xff] %v5544_v46  ;;  %v5562_v7 = vld [vmem:[#allocation9 + $0x98] sm:$0xff]  ;;  %v5565_v12 = vld [vmem:[#allocation9 + $0x60] sm:$0xff]  ;;  %v5568_v58 = vld [vmem:[#allocation9 + $0x68] sm:$0xff] }
 0x717   :  { %6502 = vst [vmem:[#allocation31_spill] sm:$0xff] %v5547_v4  ;;  %v5571_v59 = vld [vmem:[#allocation9 + $0x70] sm:$0xff] }
 0x718   :  { %3392 = vtanh.f32 %v5418_v44  ;;  %v2226_v33 = vsel %vm2225_vm7, %v3389_v55, %v2222_v0  ;;  %v5529_v55 = vld [vmem:[#allocation9 + $0xc0] sm:$0xff]  ;;  %6503 = vst [vmem:[#allocation58_spill] sm:$0xff] %v5550_v49  ;;  %v5574_v0 = vld [vmem:[#allocation9 + $0x78] sm:$0xff] }
 0x719   :  { %v2231_v26 = vsel %vm2228_vm8, %v2230_v1, %v2226_v33  ;;  %6504 = vst [vmem:[#allocation61_spill] sm:$0xff] %v5553_v10  ;;  %v5583_v33 = vld [vmem:[#allocation9 + $0x50] sm:$0xff]  ;;  %v5586_v1 = vld [vmem:[#allocation9 + $0x58] sm:$0xff] }
 0x71a   :  { %6505 = vst [vmem:[#allocation60_spill] sm:$0xff] %v5556_v52 }
 0x71b   :  { %6506 = vst [vmem:[#allocation37_spill] sm:$0xff] %v5559_v54 }
 0x71c   :  { %6507 = vst [vmem:[#allocation26_spill] sm:$0xff] %v5562_v7 }
 0x71d   :  { %6508 = vst [vmem:[#allocation22_spill] sm:$0xff] %v5565_v12 }
 0x71e   :  { %v3393_v24 = vpop.eup %3392  ;;  %6509 = vst [vmem:[#allocation29_spill] sm:$0xff] %v5568_v58 }
 0x71f   :  { %v2236_v22 = vmul.f32 %v3393_v24, %v2231_v26  ;;  %6510 = vst [vmem:[#allocation39_spill] sm:$0xff] %v5571_v59  ;;  %v5589_v24 = vld [vmem:[#allocation9 + $0x20] sm:$0xff]  ;;  %v5592_v26 = vld [vmem:[#allocation9 + $0x28] sm:$0xff] }
 0x720   :  { %6511 = vst [vmem:[#allocation24_spill] sm:$0xff] %v5574_v0 }
 0x721   :  { %2257 = vmatmul.f32.vlgmr.msra.gmra.mxu0 %v2236_v22  ;;  %2277 = vmatmul.f32.vlgmr.msrb.gmra.mxu1 %v2236_v22  ;;  %6514 = vst [vmem:[#allocation41_spill] sm:$0xff] %v5583_v33 }
 0x722   :  { %2297 = vmatmul.f32.vlgmr.msrb.gmra.mxu2 %v2236_v22  ;;  %2317 = vmatmul.f32.vlgmr.msrb.gmra.mxu3 %v2236_v22  ;;  %6515 = vst [vmem:[#allocation35_spill] sm:$0xff] %v5586_v1  ;;  %v5595_v22 = vld [vmem:[#allocation9 + $0x30] sm:$0xff] }
 0x723   :  { %2537 = vmatpush.msra.mxu0 %v5421_v8  ;;  %2557 = vmatpush.msrb.mxu1 %v5424_v28  ;;  %6516 = vst [vmem:[#allocation28_spill] sm:$0xff] %v5589_v24 }
 0x724   :  { %2577 = vmatpush.msrb.mxu2 %v5427_v27  ;;  %2597 = vmatpush.msrb.mxu3 %v5430_v43  ;;  %6517 = vst [vmem:[#allocation33_spill] sm:$0xff] %v5592_v26 }
 0x725   :  { %2538 = vmatpush.msra.mxu0 %v5433_v31  ;;  %2558 = vmatpush.msrb.mxu1 %v5436_v56  ;;  %6518 = vst [vmem:[#allocation45_spill] sm:$0xff] %v5595_v22 }
 0x726   :  { %2578 = vmatpush.msrb.mxu2 %v5439_v51  ;;  %2598 = vmatpush.msrb.mxu3 %v5442_v18 }
 0x727   :  { %2539 = vmatpush.msra.mxu0 %v5445_v21  ;;  %2559 = vmatpush.msrb.mxu1 %v5448_v45 }
 0x728   :  { %2579 = vmatpush.msrb.mxu2 %v5451_v13  ;;  %2599 = vmatpush.msrb.mxu3 %v5454_v30 }
 0x729   :  { %2540 = vmatpush.msra.mxu0 %v5457_v15  ;;  %2560 = vmatpush.msrb.mxu1 %v5460_v9 }
 0x72a   :  { %2580 = vmatpush.msrb.mxu2 %v5463_v47  ;;  %2600 = vmatpush.msrb.mxu3 %v5466_v34 }
 0x72b   :  { %2541 = vmatpush.msra.mxu0 %v5469_v37  ;;  %2561 = vmatpush.msrb.mxu1 %v5472_v61 }
 0x72c   :  { %2581 = vmatpush.msrb.mxu2 %v5475_v62  ;;  %2601 = vmatpush.msrb.mxu3 %v5478_v48 }
 0x72d   :  { %2542 = vmatpush.msra.mxu0 %v5481_v32  ;;  %2562 = vmatpush.msrb.mxu1 %v5484_v11 }
 0x72e   :  { %2582 = vmatpush.msrb.mxu2 %v5487_v5  ;;  %2602 = vmatpush.msrb.mxu3 %v5490_v3 }
 0x72f   :  { %2543 = vmatpush.msra.mxu0 %v5493_v50  ;;  %2563 = vmatpush.msrb.mxu1 %v5496_v14 }
 0x730   :  { %2583 = vmatpush.msrb.mxu2 %v5499_v19  ;;  %2603 = vmatpush.msrb.mxu3 %v5502_v35 }
 0x731   :  { %2544 = vmatpush.msra.mxu0 %v5505_v57  ;;  %2564 = vmatpush.msrb.mxu1 %v5508_v42 }
 0x732   :  { %2584 = vmatpush.msrb.mxu2 %v5511_v39  ;;  %2604 = vmatpush.msrb.mxu3 %v5514_v25 }
 0x733   :  { %2545 = vmatpush.msra.mxu0 %v5517_v29  ;;  %2565 = vmatpush.msrb.mxu1 %v5520_v38 }
 0x734   :  { %2585 = vmatpush.msrb.mxu2 %v5523_v53  ;;  %2605 = vmatpush.msrb.mxu3 %v5526_v2 }
 0x735   :  { %2546 = vmatpush.msra.mxu0 %v5529_v55  ;;  %2566 = vmatpush.msrb.mxu1 %v5532_v63 }
 0x736   :  { %2586 = vmatpush.msrb.mxu2 %v5535_v40  ;;  %2606 = vmatpush.msrb.mxu3 %v5538_v17 }
 0x737   :  { %2547 = vmatpush.msra.mxu0 %v5541_v41  ;;  %2567 = vmatpush.msrb.mxu1 %v5544_v46 }
 0x738   :  { %2587 = vmatpush.msrb.mxu2 %v5547_v4  ;;  %2607 = vmatpush.msrb.mxu3 %v5550_v49 }
 0x739   :  { %2548 = vmatpush.msra.mxu0 %v5553_v10  ;;  %2568 = vmatpush.msrb.mxu1 %v5556_v52 }
 0x73a   :  { %2588 = vmatpush.msrb.mxu2 %v5559_v54  ;;  %2608 = vmatpush.msrb.mxu3 %v5562_v7 }
 0x73b   :  { %2549 = vmatpush.msra.mxu0 %v5565_v12  ;;  %2569 = vmatpush.msrb.mxu1 %v5568_v58 }
 0x73c   :  { %2589 = vmatpush.msrb.mxu2 %v5571_v59  ;;  %2609 = vmatpush.msrb.mxu3 %v5574_v0 }
 0x73d   :  { %2550 = vmatpush.msra.mxu0 %v5577_v60  ;;  %2570 = vmatpush.msrb.mxu1 %v5580_v6  ;;  %v5598_v6 = vld [vmem:[#allocation9 + $0x38] sm:$0xff] }
 0x73e   :  { %2590 = vmatpush.msrb.mxu2 %v5583_v33  ;;  %2610 = vmatpush.msrb.mxu3 %v5586_v1  ;;  %6519 = vst [vmem:[#allocation38_spill] sm:$0xff] %v5598_v6  ;;  %v5601_v33 = vld [vmem:[#allocation9] sm:$0xff]  ;;  %v5604_v1 = vld [vmem:[#allocation9 + $0x8] sm:$0xff] }
 0x73f   :  { %2551 = vmatpush.msra.mxu0 %v5589_v24  ;;  %2571 = vmatpush.msrb.mxu1 %v5592_v26  ;;  %6520 = vst [vmem:[#allocation32_spill] sm:$0xff] %v5601_v33  ;;  %v5607_v24 = vld [vmem:[#allocation9 + $0x10] sm:$0xff]  ;;  %v5610_v26 = vld [vmem:[#allocation9 + $0x18] sm:$0xff] }
 0x740   :  { %2591 = vmatpush.msrb.mxu2 %v5595_v22  ;;  %2611 = vmatpush.msrb.mxu3 %v5598_v6  ;;  %6521 = vst [vmem:[#allocation36_spill] sm:$0xff] %v5604_v1  ;;  %v6524_v22 = vld [vmem:[#allocation50_spill] sm:$0xff]  ;;  %v6525_v6 = vld [vmem:[#allocation53_spill] sm:$0xff] }
 0x741   :  { %2552 = vmatpush.msra.mxu0 %v5601_v33  ;;  %2572 = vmatpush.msrb.mxu1 %v5604_v1  ;;  %6522 = vst [vmem:[#allocation46_spill] sm:$0xff] %v5607_v24  ;;  %v1705_v60 = vadd.f32 %v6524_v22, %v6490_v16  ;;  %v1746_v0 = vadd.f32 %v6525_v6, %v6492_v36 }
 0x742   :  { %2592 = vmatpush.msrb.mxu2 %v5607_v24  ;;  %6523 = vst [vmem:[#allocation40_spill] sm:$0xff] %v5610_v26  ;;  %2612 = vmatpush.msrb.mxu3 %v5610_v26  ;;  %v6526_v24 = vld [vmem:[#allocation59_spill] sm:$0xff] }
 0x743   :  { %v1828_v10 = vadd.f32 %v6526_v24, %v6494_v20 }
 0x79e   :  { %v2258_v59 = vpop.f32.mrf.mxu0  ;;  %v2278_v33 = vpop.f32.mrf.mxu1 }
 0x79f   :  { %v2321_v58 = vadd.f32 %v2258_v59, %v1705_v60  ;;  %v2322_v12 = vadd.f32 %v2278_v33, %v1746_v0 }
 0x7a1   :  { %v2325_v7 = vsub.f32 0.0, %v2321_v58  ;;  %v2343_v1 = vsub.f32 0.0, %v2322_v12 }
 0x7a3   :  { %v2326_v54 = vmul.f32 1.442695, %v2325_v7  ;;  %v2344_v52 = vmul.f32 1.442695, %v2343_v1  ;;  %v6527_v7 = vld [vmem:[#allocation62_spill] sm:$0xff] }
 0x7a4   :  { %v1787_v59 = vadd.f32 %v6527_v7, %v6496_v23 }
 0x7a5   :  { %3394 = vpow2.f32 %v2326_v54  ;;  %v2318_v49 = vpop.f32.mrf.mxu3  ;;  %v2298_v58 = vpop.f32.mrf.mxu2 }
 0x7a6   :  { %3396 = vpow2.f32 %v2344_v52  ;;  %v2324_v26 = vadd.f32 %v2318_v49, %v1828_v10  ;;  %v2323_v54 = vadd.f32 %v2298_v58, %v1787_v59 }
 0x7a8   :  { %v2362_v4 = vsub.f32 0.0, %v2324_v26 }
 0x7aa   :  { %v2363_v22 = vmul.f32 1.442695, %v2362_v4 }
 0x7ab   :  { %v3395_v16 = vpop.eup %3394 }
 0x7ac   :  { %v3397_v46 = vpop.eup %3396  ;;  %v2328_v6 = vadd.f32 1.0, %v3395_v16  ;;  %3398 = vpow2.f32 %v2363_v22 }
 0x7ad   :  { %v2346_v36 = vadd.f32 1.0, %v3397_v46 }
 0x7ae   :  { %3400 = vrcp.f32 %v2328_v6  ;;  %v2340_v1 = vand.u32 2147483648, %v2328_v6  ;;  %v2338_v24 = vand.u32 2147483647, %v2328_v6  ;;  %vm2334_vm11 = vweird.f32 %v2328_v6 }
 0x7af   :  { %3402 = vrcp.f32 %v2346_v36  ;;  %v2358_v16 = vand.u32 2147483648, %v2346_v36  ;;  %v2356_v22 = vand.u32 2147483647, %v2346_v36  ;;  %vm2352_vm12 = vweird.f32 %v2346_v36 }
 0x7b0   :  { %v2341_v58 = vor.u32 1.1754944e-38, %v2340_v1  ;;  %vm2339_vm15 = vcmp.eq.f32.partialorder %v2338_v24, 8.507059e+37 }
 0x7b1   :  { %vm2357_vm0 = vcmp.eq.f32.partialorder %v2356_v22, 8.507059e+37 }
 0x7b2   :  { %v3399_v12 = vpop.eup %3398 }
 0x7b3   :  { %v2365_v0 = vadd.f32 1.0, %v3399_v12 }
 0x7b4   :  { %v3401_v60 = vpop.eup %3400 }
 0x7b5   :  { %v3403_v33 = vpop.eup %3402  ;;  %v2330_v52 = vmul.f32 %v3401_v60, %v2328_v6  ;;  %3404 = vrcp.f32 %v2365_v0  ;;  %vm2335_vm9 = vweird.f32 %v3401_v60  ;;  %v2377_v1 = vand.u32 2147483648, %v2365_v0 }
 0x7b6   :  { %v2348_v49 = vmul.f32 %v3403_v33, %v2346_v36  ;;  %3406 = vtanh.f32 %v2323_v54  ;;  %vm2353_vm10 = vweird.f32 %v3403_v33  ;;  %vm2336_vm13 = vmor %vm2334_vm11, %vm2335_vm9  ;;  %vm2371_vm2 = vweird.f32 %v2365_v0 }
 0x7b7   :  { %v2331_v4 = vsub.f32 1.0, %v2330_v52  ;;  %vm2354_vm14 = vmor %vm2352_vm12, %vm2353_vm10  ;;  %v2359_v52 = vor.u32 1.1754944e-38, %v2358_v16  ;;  %v2378_v24 = vor.u32 1.1754944e-38, %v2377_v1  ;;  %v6546_v1 = vld [vmem:[#allocation28_spill] sm:$0xff] }
 0x7b8   :  { %v2349_v10 = vsub.f32 1.0, %v2348_v49 }
 0x7b9   :  { %v2332_v46 = vmul.f32 %v3401_v60, %v2331_v4 }
 0x7ba   :  { %v2350_v26 = vmul.f32 %v3403_v33, %v2349_v10 }
 0x7bb   :  { %v3405_v20 = vpop.eup %3404  ;;  %v2333_v7 = vadd.f32 %v3401_v60, %v2332_v46 }
 0x7bc   :  { %v2351_v12 = vadd.f32 %v3403_v33, %v2350_v26  ;;  %v2367_v59 = vmul.f32 %v3405_v20, %v2365_v0  ;;  %v3407_v54 = vpop.eup %3406  ;;  %vm2372_vm1 = vweird.f32 %v3405_v20 }
 0x7bd   :  { %v2337_v49 = vsel %vm2336_vm13, %v3401_v60, %v2333_v7  ;;  %v2375_v60 = vand.u32 2147483647, %v2365_v0  ;;  %vm2373_vm3 = vmor %vm2371_vm2, %vm2372_vm1  ;;  %v6534_v0 = vld [vmem:[#allocation61_spill] sm:$0xff]  ;;  %v6535_v7 = vld [vmem:[#allocation60_spill] sm:$0xff] }
 0x7be   :  { %v2342_v23 = vsel %vm2339_vm15, %v2341_v58, %v2337_v49  ;;  %v2355_v4 = vsel %vm2354_vm14, %v3403_v33, %v2351_v12  ;;  %v2368_v41 = vsub.f32 1.0, %v2367_v59  ;;  %v6536_v58 = vld [vmem:[#allocation37_spill] sm:$0xff]  ;;  %v6537_v12 = vld [vmem:[#allocation26_spill] sm:$0xff]  ;;  %v6540_v49 = vld [vmem:[#allocation39_spill] sm:$0xff] }
 0x7bf   :  { %v2360_v10 = vsel %vm2357_vm0, %v2359_v52, %v2355_v4  ;;  %v2381_v17 = vmul.f32 %v3407_v54, %v2342_v23  ;;  %vm2376_vm4 = vcmp.eq.f32.partialorder %v2375_v60, 8.507059e+37  ;;  %v6529_v23 = vld [vmem:[#allocation57_spill] sm:$0xff]  ;;  %v6538_v59 = vld [vmem:[#allocation22_spill] sm:$0xff]  ;;  %v6541_v54 = vld [vmem:[#allocation24_spill] sm:$0xff] }
 0x7c0   :  { %v2380_v40 = vmul.f32 %v2360_v10, %v5418_v44  ;;  %v2369_v46 = vmul.f32 %v3405_v20, %v2368_v41  ;;  %v6530_v44 = vld [vmem:[#allocation56_spill] sm:$0xff]  ;;  %v6533_v41 = vld [vmem:[#allocation58_spill] sm:$0xff]  ;;  %v6539_v52 = vld [vmem:[#allocation29_spill] sm:$0xff] }
 0x7c1   :  { %v6542_v4 = vld [vmem:[#allocation27_spill] sm:$0xff]  ;;  %v6543_v10 = vld [vmem:[#allocation30_spill] sm:$0xff]  ;;  %v6547_v60 = vld [vmem:[#allocation33_spill] sm:$0xff] }
 0x7c2   :  { %v5622_v6 = vadd.f32 %v2381_v17, %v2380_v40  ;;  %v2370_v36 = vadd.f32 %v3405_v20, %v2369_v46  ;;  %v6531_v40 = vld [vmem:[#allocation55_spill] sm:$0xff]  ;;  %v6544_v46 = vld [vmem:[#allocation41_spill] sm:$0xff] }
 0x7c3   :  { %v6532_v17 = vld [vmem:[#allocation31_spill] sm:$0xff] }
 0x7c4   :  { %3408 = vtanh.f32 %v5622_v6  ;;  %v2374_v16 = vsel %vm2373_vm3, %v3405_v20, %v2370_v36  ;;  %v6528_v20 = vld [vmem:[#allocation34_spill] sm:$0xff]  ;;  %v6545_v36 = vld [vmem:[#allocation35_spill] sm:$0xff] }
 0x7c5   :  { %v2379_v26 = vsel %vm2376_vm4, %v2378_v24, %v2374_v16  ;;  %v6548_v16 = vld [vmem:[#allocation45_spill] sm:$0xff]  ;;  %v6549_v24 = vld [vmem:[#allocation38_spill] sm:$0xff] }
 0x7ca   :  { %v3409_v33 = vpop.eup %3408 }
 0x7cb   :  { %v2384_v22 = vmul.f32 %v3409_v33, %v2379_v26  ;;  %v6550_v33 = vld [vmem:[#allocation32_spill] sm:$0xff] }
 0x7cc   :  { %v6551_v26 = vld [vmem:[#allocation36_spill] sm:$0xff] }
 0x7cd   :  { %2405 = vmatmul.f32.vlgmr.msrb.gmra.mxu0 %v2384_v22  ;;  %2425 = vmatmul.f32.vlgmr.msra.gmra.mxu1 %v2384_v22 }
 0x7ce   :  { %2445 = vmatmul.f32.vlgmr.msra.gmra.mxu2 %v2384_v22  ;;  %2465 = vmatmul.f32.vlgmr.msra.gmra.mxu3 %v2384_v22  ;;  %v6552_v22 = vld [vmem:[#allocation46_spill] sm:$0xff] }
 0x7cf   :  { %2685 = vmatpush.msrb.mxu0 %v5421_v8  ;;  %2705 = vmatpush.msra.mxu1 %v5424_v28 }
 0x7d0   :  { %2725 = vmatpush.msra.mxu2 %v5427_v27  ;;  %2745 = vmatpush.msra.mxu3 %v5430_v43 }
 0x7d1   :  { %2686 = vmatpush.msrb.mxu0 %v5433_v31  ;;  %2706 = vmatpush.msra.mxu1 %v5436_v56 }
 0x7d2   :  { %2726 = vmatpush.msra.mxu2 %v5439_v51  ;;  %2746 = vmatpush.msra.mxu3 %v5442_v18 }
 0x7d3   :  { %2687 = vmatpush.msrb.mxu0 %v5445_v21  ;;  %2707 = vmatpush.msra.mxu1 %v5448_v45 }
 0x7d4   :  { %2727 = vmatpush.msra.mxu2 %v5451_v13  ;;  %2747 = vmatpush.msra.mxu3 %v5454_v30 }
 0x7d5   :  { %2688 = vmatpush.msrb.mxu0 %v5457_v15  ;;  %2708 = vmatpush.msra.mxu1 %v5460_v9 }
 0x7d6   :  { %2728 = vmatpush.msra.mxu2 %v5463_v47  ;;  %2748 = vmatpush.msra.mxu3 %v5466_v34 }
 0x7d7   :  { %2689 = vmatpush.msrb.mxu0 %v5469_v37  ;;  %2709 = vmatpush.msra.mxu1 %v5472_v61 }
 0x7d8   :  { %2729 = vmatpush.msra.mxu2 %v5475_v62  ;;  %2749 = vmatpush.msra.mxu3 %v5478_v48 }
 0x7d9   :  { %2690 = vmatpush.msrb.mxu0 %v5481_v32  ;;  %2710 = vmatpush.msra.mxu1 %v5484_v11 }
 0x7da   :  { %2730 = vmatpush.msra.mxu2 %v5487_v5  ;;  %2750 = vmatpush.msra.mxu3 %v5490_v3 }
 0x7db   :  { %2691 = vmatpush.msrb.mxu0 %v5493_v50  ;;  %2711 = vmatpush.msra.mxu1 %v5496_v14 }
 0x7dc   :  { %2731 = vmatpush.msra.mxu2 %v5499_v19  ;;  %2751 = vmatpush.msra.mxu3 %v5502_v35 }
 0x7dd   :  { %2692 = vmatpush.msrb.mxu0 %v5505_v57  ;;  %2712 = vmatpush.msra.mxu1 %v5508_v42 }
 0x7de   :  { %2732 = vmatpush.msra.mxu2 %v5511_v39  ;;  %2752 = vmatpush.msra.mxu3 %v5514_v25 }
 0x7df   :  { %2693 = vmatpush.msrb.mxu0 %v5517_v29  ;;  %2713 = vmatpush.msra.mxu1 %v5520_v38 }
 0x7e0   :  { %2733 = vmatpush.msra.mxu2 %v5523_v53  ;;  %2753 = vmatpush.msra.mxu3 %v5526_v2 }
 0x7e1   :  { %2694 = vmatpush.msrb.mxu0 %v5529_v55  ;;  %2714 = vmatpush.msra.mxu1 %v5532_v63 }
 0x7e2   :  { %2734 = vmatpush.msra.mxu2 %v6528_v20  ;;  %2754 = vmatpush.msra.mxu3 %v6529_v23 }
 0x7e3   :  { %2695 = vmatpush.msrb.mxu0 %v6530_v44  ;;  %2715 = vmatpush.msra.mxu1 %v6531_v40 }
 0x7e4   :  { %2735 = vmatpush.msra.mxu2 %v6532_v17  ;;  %2755 = vmatpush.msra.mxu3 %v6533_v41 }
 0x7e5   :  { %2696 = vmatpush.msrb.mxu0 %v6534_v0  ;;  %2716 = vmatpush.msra.mxu1 %v6535_v7  ;;  %v6558_v7 = vld [vmem:[#allocation20_spill] sm:$0xff] }
 0x7e6   :  { %2736 = vmatpush.msra.mxu2 %v6536_v58  ;;  %2756 = vmatpush.msra.mxu3 %v6537_v12 }
 0x7e7   :  { %2697 = vmatpush.msrb.mxu0 %v6538_v59  ;;  %2717 = vmatpush.msra.mxu1 %v6539_v52 }
 0x7e8   :  { %2737 = vmatpush.msra.mxu2 %v6540_v49  ;;  %2757 = vmatpush.msra.mxu3 %v6541_v54  ;;  %v6557_v49 = vld [vmem:[#allocation68_spill] sm:$0xff] }
 0x7e9   :  { %2698 = vmatpush.msrb.mxu0 %v6542_v4  ;;  %2718 = vmatpush.msra.mxu1 %v6543_v10  ;;  %v6553_v4 = vld [vmem:[#allocation40_spill] sm:$0xff] }
 0x7ea   :  { %2738 = vmatpush.msra.mxu2 %v6544_v46  ;;  %2758 = vmatpush.msra.mxu3 %v6545_v36  ;;  %v6554_v10 = vld [vmem:[#allocation72_spill] sm:$0xff]  ;;  %v6555_v46 = vld [vmem:[#allocation42_spill] sm:$0xff] }
 0x7eb   :  { %2699 = vmatpush.msrb.mxu0 %v6546_v1  ;;  %2719 = vmatpush.msra.mxu1 %v6547_v60  ;;  %v1708_v54 = vadd.f32 %v6555_v46, %v6554_v10  ;;  %v6556_v36 = vld [vmem:[#allocation18_spill] sm:$0xff] }
 0x7ec   :  { %2739 = vmatpush.msra.mxu2 %v6548_v16  ;;  %2759 = vmatpush.msra.mxu3 %v6549_v24  ;;  %v1749_v1 = vadd.f32 %v6557_v49, %v6556_v36 }
 0x7ed   :  { %2700 = vmatpush.msrb.mxu0 %v6550_v33  ;;  %2720 = vmatpush.msra.mxu1 %v6551_v26  ;;  %v6559_v26 = vld [vmem:[#allocation71_spill] sm:$0xff] }
 0x7ee   :  { %2740 = vmatpush.msra.mxu2 %v6552_v22  ;;  %2760 = vmatpush.msra.mxu3 %v6553_v4  ;;  %v1831_v0 = vadd.f32 %v6559_v26, %v6558_v7 }
 0x84a   :  { %v2406_v52 = vpop.f32.mrf.mxu0  ;;  %v2426_v60 = vpop.f32.mrf.mxu1 }
 0x84b   :  { %v2469_v59 = vadd.f32 %v2406_v52, %v1708_v54  ;;  %v2470_v16 = vadd.f32 %v2426_v60, %v1749_v1  ;;  %v6561_v54 = vld [vmem:[#allocation65_spill] sm:$0xff] }
 0x84d   :  { %v2473_v12 = vsub.f32 0.0, %v2469_v59  ;;  %v2491_v24 = vsub.f32 0.0, %v2470_v16 }
 0x84f   :  { %v2474_v58 = vmul.f32 1.442695, %v2473_v12  ;;  %v2492_v33 = vmul.f32 1.442695, %v2491_v24  ;;  %v6560_v12 = vld [vmem:[#allocation51_spill] sm:$0xff] }
 0x850   :  { %v1790_v1 = vadd.f32 %v6561_v54, %v6560_v12 }
 0x851   :  { %3410 = vpow2.f32 %v2474_v58  ;;  %v2466_v22 = vpop.f32.mrf.mxu3  ;;  %v2446_v59 = vpop.f32.mrf.mxu2 }
 0x852   :  { %3412 = vpow2.f32 %v2492_v33  ;;  %v2472_v4 = vadd.f32 %v2466_v22, %v1831_v0  ;;  %v2471_v58 = vadd.f32 %v2446_v59, %v1790_v1 }
 0x854   :  { %v2510_v41 = vsub.f32 0.0, %v2472_v4 }
 0x856   :  { %v2511_v46 = vmul.f32 1.442695, %v2510_v41 }
 0x857   :  { %v3411_v10 = vpop.eup %3410 }
 0x858   :  { %v3413_v17 = vpop.eup %3412  ;;  %v2476_v49 = vadd.f32 1.0, %v3411_v10  ;;  %3414 = vpow2.f32 %v2511_v46 }
 0x859   :  { %v2494_v36 = vadd.f32 1.0, %v3413_v17 }
 0x85a   :  { %3416 = vrcp.f32 %v2476_v49  ;;  %v2488_v26 = vand.u32 2147483648, %v2476_v49  ;;  %v2486_v22 = vand.u32 2147483647, %v2476_v49  ;;  %vm2482_vm7 = vweird.f32 %v2476_v49 }
 0x85b   :  { %3418 = vrcp.f32 %v2494_v36  ;;  %v2506_v10 = vand.u32 2147483648, %v2494_v36  ;;  %v2504_v7 = vand.u32 2147483647, %v2494_v36  ;;  %vm2500_vm8 = vweird.f32 %v2494_v36 }
 0x85c   :  { %v2489_v59 = vor.u32 1.1754944e-38, %v2488_v26  ;;  %vm2487_vm11 = vcmp.eq.f32.partialorder %v2486_v22, 8.507059e+37 }
 0x85d   :  { %vm2505_vm12 = vcmp.eq.f32.partialorder %v2504_v7, 8.507059e+37 }
 0x85e   :  { %v3415_v52 = vpop.eup %3414 }
 0x85f   :  { %v2513_v60 = vadd.f32 1.0, %v3415_v52 }
 0x860   :  { %v3417_v16 = vpop.eup %3416 }
 0x861   :  { %v3419_v24 = vpop.eup %3418  ;;  %v2478_v33 = vmul.f32 %v3417_v16, %v2476_v49  ;;  %3420 = vrcp.f32 %v2513_v60  ;;  %vm2483_vm5 = vweird.f32 %v3417_v16  ;;  %v2525_v26 = vand.u32 2147483648, %v2513_v60 }
 0x862   :  { %v2496_v0 = vmul.f32 %v3419_v24, %v2494_v36  ;;  %3422 = vtanh.f32 %v2471_v58  ;;  %vm2501_vm6 = vweird.f32 %v3419_v24  ;;  %vm2484_vm9 = vmor %vm2482_vm7, %vm2483_vm5  ;;  %vm2519_vm14 = vweird.f32 %v2513_v60 }
 0x863   :  { %v2479_v41 = vsub.f32 1.0, %v2478_v33  ;;  %vm2502_vm10 = vmor %vm2500_vm8, %vm2501_vm6  ;;  %v2507_v33 = vor.u32 1.1754944e-38, %v2506_v10  ;;  %v2526_v22 = vor.u32 1.1754944e-38, %v2525_v26  ;;  %v6580_v26 = vld [vmem:[#allocation28_spill] sm:$0xff] }
 0x864   :  { %v2497_v4 = vsub.f32 1.0, %v2496_v0 }
 0x865   :  { %v2480_v17 = vmul.f32 %v3417_v16, %v2479_v41 }
 0x866   :  { %v2498_v46 = vmul.f32 %v3419_v24, %v2497_v4 }
 0x867   :  { %v3421_v40 = vpop.eup %3420  ;;  %v2481_v54 = vadd.f32 %v3417_v16, %v2480_v17 }
 0x868   :  { %v2499_v52 = vadd.f32 %v3419_v24, %v2498_v46  ;;  %v2515_v1 = vmul.f32 %v3421_v40, %v2513_v60  ;;  %v3423_v58 = vpop.eup %3422  ;;  %vm2520_vm13 = vweird.f32 %v3421_v40 }
 0x869   :  { %v2485_v0 = vsel %vm2484_vm9, %v3417_v16, %v2481_v54  ;;  %v2523_v16 = vand.u32 2147483647, %v2513_v60  ;;  %vm2521_vm15 = vmor %vm2519_vm14, %vm2520_vm13  ;;  %v6568_v60 = vld [vmem:[#allocation61_spill] sm:$0xff]  ;;  %v6569_v54 = vld [vmem:[#allocation60_spill] sm:$0xff] }
 0x86a   :  { %v2490_v12 = vsel %vm2487_vm11, %v2489_v59, %v2485_v0  ;;  %v2503_v41 = vsel %vm2502_vm10, %v3419_v24, %v2499_v52  ;;  %v2516_v44 = vsub.f32 1.0, %v2515_v1  ;;  %v6570_v59 = vld [vmem:[#allocation37_spill] sm:$0xff]  ;;  %v6571_v52 = vld [vmem:[#allocation26_spill] sm:$0xff]  ;;  %v6574_v0 = vld [vmem:[#allocation39_spill] sm:$0xff] }
 0x86b   :  { %v2508_v4 = vsel %vm2505_vm12, %v2507_v33, %v2503_v41  ;;  %v2529_v23 = vmul.f32 %v3423_v58, %v2490_v12  ;;  %vm2524_vm0 = vcmp.eq.f32.partialorder %v2523_v16, 8.507059e+37  ;;  %v6567_v12 = vld [vmem:[#allocation58_spill] sm:$0xff]  ;;  %v6573_v33 = vld [vmem:[#allocation29_spill] sm:$0xff]  ;;  %v6575_v58 = vld [vmem:[#allocation24_spill] sm:$0xff] }
 0x86c   :  { %v2528_v20 = vmul.f32 %v2508_v4, %v5622_v6  ;;  %v2517_v17 = vmul.f32 %v3421_v40, %v2516_v44  ;;  %v6562_v6 = vld [vmem:[#allocation34_spill] sm:$0xff]  ;;  %v6565_v44 = vld [vmem:[#allocation55_spill] sm:$0xff]  ;;  %v6581_v16 = vld [vmem:[#allocation33_spill] sm:$0xff] }
 0x86d   :  { %v6572_v1 = vld [vmem:[#allocation22_spill] sm:$0xff]  ;;  %v6576_v41 = vld [vmem:[#allocation27_spill] sm:$0xff] }
 0x86e   :  { %v5698_v49 = vadd.f32 %v2529_v23, %v2528_v20  ;;  %v2518_v36 = vadd.f32 %v3421_v40, %v2517_v17  ;;  %v6563_v20 = vld [vmem:[#allocation57_spill] sm:$0xff]  ;;  %v6564_v23 = vld [vmem:[#allocation56_spill] sm:$0xff]  ;;  %v6577_v4 = vld [vmem:[#allocation30_spill] sm:$0xff] }
 0x86f   :  { %v6578_v17 = vld [vmem:[#allocation41_spill] sm:$0xff] }
 0x870   :  { %3424 = vtanh.f32 %v5698_v49  ;;  %v2522_v10 = vsel %vm2521_vm15, %v3421_v40, %v2518_v36  ;;  %v6566_v40 = vld [vmem:[#allocation31_spill] sm:$0xff] }
 0x871   :  { %v2527_v24 = vsel %vm2524_vm0, %v2526_v22, %v2522_v10  ;;  %v6579_v36 = vld [vmem:[#allocation35_spill] sm:$0xff]  ;;  %v6582_v10 = vld [vmem:[#allocation45_spill] sm:$0xff]  ;;  %v6583_v22 = vld [vmem:[#allocation38_spill] sm:$0xff] }
 0x876   :  { %v3425_v7 = vpop.eup %3424 }
 0x877   :  { %v2532_v46 = vmul.f32 %v3425_v7, %v2527_v24  ;;  %v6584_v7 = vld [vmem:[#allocation32_spill] sm:$0xff] }
 0x878   :  { %v6585_v24 = vld [vmem:[#allocation36_spill] sm:$0xff] }
 0x879   :  { %2553 = vmatmul.f32.vlgmr.msra.gmra.mxu0 %v2532_v46  ;;  %2573 = vmatmul.f32.vlgmr.msrb.gmra.mxu1 %v2532_v46 }
 0x87a   :  { %2593 = vmatmul.f32.vlgmr.msrb.gmra.mxu2 %v2532_v46  ;;  %2613 = vmatmul.f32.vlgmr.msrb.gmra.mxu3 %v2532_v46  ;;  %v6586_v46 = vld [vmem:[#allocation46_spill] sm:$0xff] }
 0x87b   :  { %2833 = vmatpush.msra.mxu0 %v5421_v8  ;;  %2853 = vmatpush.msrb.mxu1 %v5424_v28 }
 0x87c   :  { %2873 = vmatpush.msrb.mxu2 %v5427_v27  ;;  %2893 = vmatpush.msrb.mxu3 %v5430_v43 }
 0x87d   :  { %2834 = vmatpush.msra.mxu0 %v5433_v31  ;;  %2854 = vmatpush.msrb.mxu1 %v5436_v56 }
 0x87e   :  { %2874 = vmatpush.msrb.mxu2 %v5439_v51  ;;  %2894 = vmatpush.msrb.mxu3 %v5442_v18 }
 0x87f   :  { %2835 = vmatpush.msra.mxu0 %v5445_v21  ;;  %2855 = vmatpush.msrb.mxu1 %v5448_v45 }
 0x880   :  { %2875 = vmatpush.msrb.mxu2 %v5451_v13  ;;  %2895 = vmatpush.msrb.mxu3 %v5454_v30 }
 0x881   :  { %2836 = vmatpush.msra.mxu0 %v5457_v15  ;;  %2856 = vmatpush.msrb.mxu1 %v5460_v9 }
 0x882   :  { %2876 = vmatpush.msrb.mxu2 %v5463_v47  ;;  %2896 = vmatpush.msrb.mxu3 %v5466_v34 }
 0x883   :  { %2837 = vmatpush.msra.mxu0 %v5469_v37  ;;  %2857 = vmatpush.msrb.mxu1 %v5472_v61 }
 0x884   :  { %2877 = vmatpush.msrb.mxu2 %v5475_v62  ;;  %2897 = vmatpush.msrb.mxu3 %v5478_v48 }
 0x885   :  { %2838 = vmatpush.msra.mxu0 %v5481_v32  ;;  %2858 = vmatpush.msrb.mxu1 %v5484_v11 }
 0x886   :  { %2878 = vmatpush.msrb.mxu2 %v5487_v5  ;;  %2898 = vmatpush.msrb.mxu3 %v5490_v3 }
 0x887   :  { %2839 = vmatpush.msra.mxu0 %v5493_v50  ;;  %2859 = vmatpush.msrb.mxu1 %v5496_v14 }
 0x888   :  { %2879 = vmatpush.msrb.mxu2 %v5499_v19  ;;  %2899 = vmatpush.msrb.mxu3 %v5502_v35 }
 0x889   :  { %2840 = vmatpush.msra.mxu0 %v5505_v57  ;;  %2860 = vmatpush.msrb.mxu1 %v5508_v42 }
 0x88a   :  { %2880 = vmatpush.msrb.mxu2 %v5511_v39  ;;  %2900 = vmatpush.msrb.mxu3 %v5514_v25 }
 0x88b   :  { %2841 = vmatpush.msra.mxu0 %v5517_v29  ;;  %2861 = vmatpush.msrb.mxu1 %v5520_v38 }
 0x88c   :  { %2881 = vmatpush.msrb.mxu2 %v5523_v53  ;;  %2901 = vmatpush.msrb.mxu3 %v5526_v2 }
 0x88d   :  { %2842 = vmatpush.msra.mxu0 %v5529_v55  ;;  %2862 = vmatpush.msrb.mxu1 %v5532_v63 }
 0x88e   :  { %2882 = vmatpush.msrb.mxu2 %v6562_v6  ;;  %2902 = vmatpush.msrb.mxu3 %v6563_v20 }
 0x88f   :  { %2843 = vmatpush.msra.mxu0 %v6564_v23  ;;  %2863 = vmatpush.msrb.mxu1 %v6565_v44 }
 0x890   :  { %2883 = vmatpush.msrb.mxu2 %v6566_v40  ;;  %2903 = vmatpush.msrb.mxu3 %v6567_v12 }
 0x891   :  { %2844 = vmatpush.msra.mxu0 %v6568_v60  ;;  %2864 = vmatpush.msrb.mxu1 %v6569_v54  ;;  %v6592_v54 = vld [vmem:[#allocation20_spill] sm:$0xff] }
 0x892   :  { %2884 = vmatpush.msrb.mxu2 %v6570_v59  ;;  %2904 = vmatpush.msrb.mxu3 %v6571_v52 }
 0x893   :  { %2845 = vmatpush.msra.mxu0 %v6572_v1  ;;  %2865 = vmatpush.msrb.mxu1 %v6573_v33 }
 0x894   :  { %2885 = vmatpush.msrb.mxu2 %v6574_v0  ;;  %2905 = vmatpush.msrb.mxu3 %v6575_v58  ;;  %v6591_v0 = vld [vmem:[#allocation73_spill] sm:$0xff] }
 0x895   :  { %2846 = vmatpush.msra.mxu0 %v6576_v41  ;;  %2866 = vmatpush.msrb.mxu1 %v6577_v4  ;;  %v6587_v41 = vld [vmem:[#allocation40_spill] sm:$0xff] }
 0x896   :  { %2886 = vmatpush.msrb.mxu2 %v6578_v17  ;;  %2906 = vmatpush.msrb.mxu3 %v6579_v36  ;;  %v6588_v4 = vld [vmem:[#allocation72_spill] sm:$0xff]  ;;  %v6589_v17 = vld [vmem:[#allocation63_spill] sm:$0xff]  ;;  %v6590_v36 = vld [vmem:[#allocation18_spill] sm:$0xff] }
 0x897   :  { %2847 = vmatpush.msra.mxu0 %v6580_v26  ;;  %2867 = vmatpush.msrb.mxu1 %v6581_v16  ;;  %v1711_v58 = vadd.f32 %v6589_v17, %v6588_v4  ;;  %v1752_v26 = vadd.f32 %v6591_v0, %v6590_v36 }
 0x898   :  { %2887 = vmatpush.msrb.mxu2 %v6582_v10  ;;  %2907 = vmatpush.msrb.mxu3 %v6583_v22 }
 0x899   :  { %2848 = vmatpush.msra.mxu0 %v6584_v7  ;;  %2868 = vmatpush.msrb.mxu1 %v6585_v24  ;;  %v6593_v24 = vld [vmem:[#allocation43_spill] sm:$0xff] }
 0x89a   :  { %2888 = vmatpush.msrb.mxu2 %v6586_v46  ;;  %2908 = vmatpush.msrb.mxu3 %v6587_v41  ;;  %v1834_v60 = vadd.f32 %v6593_v24, %v6592_v54 }
 0x8f6   :  { %v2554_v33 = vpop.f32.mrf.mxu0  ;;  %v2574_v16 = vpop.f32.mrf.mxu1 }
 0x8f7   :  { %v2617_v1 = vadd.f32 %v2554_v33, %v1711_v58  ;;  %v2618_v10 = vadd.f32 %v2574_v16, %v1752_v26  ;;  %v6595_v58 = vld [vmem:[#allocation69_spill] sm:$0xff] }
 0x8f9   :  { %v2621_v52 = vsub.f32 0.0, %v2617_v1  ;;  %v2639_v22 = vsub.f32 0.0, %v2618_v10 }
 0x8fb   :  { %v2622_v59 = vmul.f32 1.442695, %v2621_v52  ;;  %v2640_v7 = vmul.f32 1.442695, %v2639_v22  ;;  %v6594_v52 = vld [vmem:[#allocation51_spill] sm:$0xff] }
 0x8fc   :  { %v1793_v26 = vadd.f32 %v6595_v58, %v6594_v52 }
 0x8fd   :  { %3426 = vpow2.f32 %v2622_v59  ;;  %v2614_v46 = vpop.f32.mrf.mxu3  ;;  %v2594_v1 = vpop.f32.mrf.mxu2 }
 0x8fe   :  { %3428 = vpow2.f32 %v2640_v7  ;;  %v2620_v41 = vadd.f32 %v2614_v46, %v1834_v60  ;;  %v2619_v59 = vadd.f32 %v2594_v1, %v1793_v26 }
 0x900   :  { %v2658_v12 = vsub.f32 0.0, %v2620_v41 }
 0x902   :  { %v2659_v17 = vmul.f32 1.442695, %v2658_v12 }
 0x903   :  { %v3427_v4 = vpop.eup %3426 }
 0x904   :  { %v3429_v40 = vpop.eup %3428  ;;  %v2624_v0 = vadd.f32 1.0, %v3427_v4  ;;  %3430 = vpow2.f32 %v2659_v17 }
 0x905   :  { %v2642_v36 = vadd.f32 1.0, %v3429_v40 }
 0x906   :  { %3432 = vrcp.f32 %v2624_v0  ;;  %v2636_v24 = vand.u32 2147483648, %v2624_v0  ;;  %v2634_v46 = vand.u32 2147483647, %v2624_v0  ;;  %vm2630_vm3 = vweird.f32 %v2624_v0 }
 0x907   :  { %3434 = vrcp.f32 %v2642_v36  ;;  %v2654_v4 = vand.u32 2147483648, %v2642_v36  ;;  %v2652_v54 = vand.u32 2147483647, %v2642_v36  ;;  %vm2648_vm4 = vweird.f32 %v2642_v36 }
 0x908   :  { %v2637_v1 = vor.u32 1.1754944e-38, %v2636_v24  ;;  %vm2635_vm7 = vcmp.eq.f32.partialorder %v2634_v46, 8.507059e+37 }
 0x909   :  { %vm2653_vm8 = vcmp.eq.f32.partialorder %v2652_v54, 8.507059e+37 }
 0x90a   :  { %v3431_v33 = vpop.eup %3430 }
 0x90b   :  { %v2661_v16 = vadd.f32 1.0, %v3431_v33 }
 0x90c   :  { %v3433_v10 = vpop.eup %3432 }
 0x90d   :  { %v3435_v22 = vpop.eup %3434  ;;  %v2626_v7 = vmul.f32 %v3433_v10, %v2624_v0  ;;  %3436 = vrcp.f32 %v2661_v16  ;;  %vm2631_vm1 = vweird.f32 %v3433_v10  ;;  %v2673_v24 = vand.u32 2147483648, %v2661_v16 }
 0x90e   :  { %v2644_v60 = vmul.f32 %v3435_v22, %v2642_v36  ;;  %3438 = vtanh.f32 %v2619_v59  ;;  %vm2649_vm2 = vweird.f32 %v3435_v22  ;;  %vm2632_vm5 = vmor %vm2630_vm3, %vm2631_vm1  ;;  %vm2667_vm10 = vweird.f32 %v2661_v16 }
 0x90f   :  { %v2627_v12 = vsub.f32 1.0, %v2626_v7  ;;  %vm2650_vm6 = vmor %vm2648_vm4, %vm2649_vm2  ;;  %v2655_v7 = vor.u32 1.1754944e-38, %v2654_v4  ;;  %v2674_v46 = vor.u32 1.1754944e-38, %v2673_v24 }
 0x910   :  { %v2645_v41 = vsub.f32 1.0, %v2644_v60 }
 0x911   :  { %v2628_v40 = vmul.f32 %v3433_v10, %v2627_v12 }
 0x912   :  { %v2646_v17 = vmul.f32 %v3435_v22, %v2645_v41 }
 0x913   :  { %v3437_v44 = vpop.eup %3436  ;;  %v2629_v58 = vadd.f32 %v3433_v10, %v2628_v40 }
 0x914   :  { %v2647_v33 = vadd.f32 %v3435_v22, %v2646_v17  ;;  %v2663_v26 = vmul.f32 %v3437_v44, %v2661_v16  ;;  %v3439_v59 = vpop.eup %3438  ;;  %vm2668_vm9 = vweird.f32 %v3437_v44 }
 0x915   :  { %v2633_v60 = vsel %vm2632_vm5, %v3433_v10, %v2629_v58  ;;  %v2671_v10 = vand.u32 2147483647, %v2661_v16  ;;  %vm2669_vm11 = vmor %vm2667_vm10, %vm2668_vm9 }
 0x916   :  { %v2638_v52 = vsel %vm2635_vm7, %v2637_v1, %v2633_v60  ;;  %v2651_v12 = vsel %vm2650_vm6, %v3435_v22, %v2647_v33  ;;  %v2664_v23 = vsub.f32 1.0, %v2663_v26 }
 0x917   :  { %v2656_v41 = vsel %vm2653_vm8, %v2655_v7, %v2651_v12  ;;  %v2677_v20 = vmul.f32 %v3439_v59, %v2638_v52  ;;  %vm2672_vm12 = vcmp.eq.f32.partialorder %v2671_v10, 8.507059e+37 }
 0x918   :  { %v2676_v6 = vmul.f32 %v2656_v41, %v5698_v49  ;;  %v2665_v40 = vmul.f32 %v3437_v44, %v2664_v23  ;;  %v6627_v23 = vld [vmem:[#allocation74_spill] sm:$0xff]  ;;  %v6628_v41 = vld [vmem:[#allocation51_spill] sm:$0xff] }
 0x91a   :  { %v5774_v0 = vadd.f32 %v2677_v20, %v2676_v6  ;;  %v2666_v36 = vadd.f32 %v3437_v44, %v2665_v40  ;;  %v6626_v20 = vld [vmem:[#allocation20_spill] sm:$0xff]  ;;  %v6629_v40 = vld [vmem:[#allocation17_spill] sm:$0xff] }
 0x91c   :  { %3440 = vtanh.f32 %v5774_v0  ;;  %v2670_v4 = vsel %vm2669_vm11, %v3437_v44, %v2666_v36  ;;  %v1837_v44 = vadd.f32 %v6627_v23, %v6626_v20  ;;  %v1796_v36 = vadd.f32 %v6629_v40, %v6628_v41 }
 0x91d   :  { %v2675_v22 = vsel %vm2672_vm12, %v2674_v46, %v2670_v4 }
 0x922   :  { %v3441_v54 = vpop.eup %3440 }
 0x923   :  { %v2680_v17 = vmul.f32 %v3441_v54, %v2675_v22 }
 0x925   :  { %2701 = vmatmul.f32.vlgmr.msrb.gmra.mxu0 %v2680_v17  ;;  %2721 = vmatmul.f32.vlgmr.msra.gmra.mxu1 %v2680_v17 }
 0x926   :  { %2741 = vmatmul.f32.vlgmr.msra.gmra.mxu2 %v2680_v17  ;;  %2761 = vmatmul.f32.vlgmr.msra.gmra.mxu3 %v2680_v17 }
 0x927   :  { %2981 = vmatpush.msrb.mxu0 %v5421_v8  ;;  %3001 = vmatpush.msra.mxu1 %v5424_v28  ;;  %v6596_v8 = vld [vmem:[#allocation34_spill] sm:$0xff]  ;;  %v6597_v28 = vld [vmem:[#allocation57_spill] sm:$0xff] }
 0x928   :  { %3021 = vmatpush.msra.mxu2 %v5427_v27  ;;  %3041 = vmatpush.msra.mxu3 %v5430_v43  ;;  %v6598_v27 = vld [vmem:[#allocation56_spill] sm:$0xff]  ;;  %v6599_v43 = vld [vmem:[#allocation55_spill] sm:$0xff] }
 0x929   :  { %2982 = vmatpush.msrb.mxu0 %v5433_v31  ;;  %3002 = vmatpush.msra.mxu1 %v5436_v56  ;;  %v6600_v31 = vld [vmem:[#allocation31_spill] sm:$0xff]  ;;  %v6601_v56 = vld [vmem:[#allocation58_spill] sm:$0xff] }
 0x92a   :  { %3022 = vmatpush.msra.mxu2 %v5439_v51  ;;  %3042 = vmatpush.msra.mxu3 %v5442_v18  ;;  %v6602_v51 = vld [vmem:[#allocation61_spill] sm:$0xff]  ;;  %v6603_v18 = vld [vmem:[#allocation60_spill] sm:$0xff] }
 0x92b   :  { %2983 = vmatpush.msrb.mxu0 %v5445_v21  ;;  %3003 = vmatpush.msra.mxu1 %v5448_v45  ;;  %v6604_v21 = vld [vmem:[#allocation37_spill] sm:$0xff]  ;;  %v6605_v45 = vld [vmem:[#allocation26_spill] sm:$0xff] }
 0x92c   :  { %3023 = vmatpush.msra.mxu2 %v5451_v13  ;;  %3043 = vmatpush.msra.mxu3 %v5454_v30  ;;  %v6606_v13 = vld [vmem:[#allocation22_spill] sm:$0xff]  ;;  %v6607_v30 = vld [vmem:[#allocation29_spill] sm:$0xff] }
 0x92d   :  { %2984 = vmatpush.msrb.mxu0 %v5457_v15  ;;  %3004 = vmatpush.msra.mxu1 %v5460_v9  ;;  %v6608_v15 = vld [vmem:[#allocation39_spill] sm:$0xff]  ;;  %v6609_v9 = vld [vmem:[#allocation24_spill] sm:$0xff] }
 0x92e   :  { %3024 = vmatpush.msra.mxu2 %v5463_v47  ;;  %3044 = vmatpush.msra.mxu3 %v5466_v34  ;;  %v6610_v47 = vld [vmem:[#allocation27_spill] sm:$0xff]  ;;  %v6611_v34 = vld [vmem:[#allocation30_spill] sm:$0xff] }
 0x92f   :  { %2985 = vmatpush.msrb.mxu0 %v5469_v37  ;;  %3005 = vmatpush.msra.mxu1 %v5472_v61  ;;  %v6612_v37 = vld [vmem:[#allocation41_spill] sm:$0xff]  ;;  %v6613_v61 = vld [vmem:[#allocation35_spill] sm:$0xff] }
 0x930   :  { %3025 = vmatpush.msra.mxu2 %v5475_v62  ;;  %3045 = vmatpush.msra.mxu3 %v5478_v48  ;;  %v6614_v62 = vld [vmem:[#allocation28_spill] sm:$0xff]  ;;  %v6615_v48 = vld [vmem:[#allocation33_spill] sm:$0xff] }
 0x931   :  { %2986 = vmatpush.msrb.mxu0 %v5481_v32  ;;  %3006 = vmatpush.msra.mxu1 %v5484_v11  ;;  %v6616_v32 = vld [vmem:[#allocation45_spill] sm:$0xff]  ;;  %v6617_v11 = vld [vmem:[#allocation38_spill] sm:$0xff] }
 0x932   :  { %3026 = vmatpush.msra.mxu2 %v5487_v5  ;;  %3046 = vmatpush.msra.mxu3 %v5490_v3  ;;  %v6618_v5 = vld [vmem:[#allocation32_spill] sm:$0xff] }
 0x933   :  { %2987 = vmatpush.msrb.mxu0 %v5493_v50  ;;  %3007 = vmatpush.msra.mxu1 %v5496_v14  ;;  %v6619_v3 = vld [vmem:[#allocation36_spill] sm:$0xff]  ;;  %v6620_v50 = vld [vmem:[#allocation46_spill] sm:$0xff] }
 0x934   :  { %3027 = vmatpush.msra.mxu2 %v5499_v19  ;;  %3047 = vmatpush.msra.mxu3 %v5502_v35  ;;  %v6621_v14 = vld [vmem:[#allocation40_spill] sm:$0xff] }
 0x935   :  { %2988 = vmatpush.msrb.mxu0 %v5505_v57  ;;  %3008 = vmatpush.msra.mxu1 %v5508_v42  ;;  %v6622_v19 = vld [vmem:[#allocation72_spill] sm:$0xff]  ;;  %v6624_v42 = vld [vmem:[#allocation18_spill] sm:$0xff] }
 0x936   :  { %3028 = vmatpush.msra.mxu2 %v5511_v39  ;;  %3048 = vmatpush.msra.mxu3 %v5514_v25  ;;  %v6623_v35 = vld [vmem:[#allocation64_spill] sm:$0xff]  ;;  %v6625_v39 = vld [vmem:[#allocation66_spill] sm:$0xff] }
 0x937   :  { %2989 = vmatpush.msrb.mxu0 %v5517_v29  ;;  %3009 = vmatpush.msra.mxu1 %v5520_v38  ;;  %v1714_v57 = vadd.f32 %v6623_v35, %v6622_v19  ;;  %v1755_v25 = vadd.f32 %v6625_v39, %v6624_v42 }
 0x938   :  { %3029 = vmatpush.msra.mxu2 %v5523_v53  ;;  %3049 = vmatpush.msra.mxu3 %v5526_v2 }
 0x939   :  { %2990 = vmatpush.msrb.mxu0 %v5529_v55  ;;  %3010 = vmatpush.msra.mxu1 %v5532_v63 }
 0x93a   :  { %3030 = vmatpush.msra.mxu2 %v6596_v8  ;;  %3050 = vmatpush.msra.mxu3 %v6597_v28 }
 0x93b   :  { %2991 = vmatpush.msrb.mxu0 %v6598_v27  ;;  %3011 = vmatpush.msra.mxu1 %v6599_v43 }
 0x93c   :  { %3031 = vmatpush.msra.mxu2 %v6600_v31  ;;  %3051 = vmatpush.msra.mxu3 %v6601_v56 }
 0x93d   :  { %2992 = vmatpush.msrb.mxu0 %v6602_v51  ;;  %3012 = vmatpush.msra.mxu1 %v6603_v18 }
 0x93e   :  { %3032 = vmatpush.msra.mxu2 %v6604_v21  ;;  %3052 = vmatpush.msra.mxu3 %v6605_v45 }
 0x93f   :  { %2993 = vmatpush.msrb.mxu0 %v6606_v13  ;;  %3013 = vmatpush.msra.mxu1 %v6607_v30 }
 0x940   :  { %3033 = vmatpush.msra.mxu2 %v6608_v15  ;;  %3053 = vmatpush.msra.mxu3 %v6609_v9 }
 0x941   :  { %2994 = vmatpush.msrb.mxu0 %v6610_v47  ;;  %3014 = vmatpush.msra.mxu1 %v6611_v34 }
 0x942   :  { %3034 = vmatpush.msra.mxu2 %v6612_v37  ;;  %3054 = vmatpush.msra.mxu3 %v6613_v61 }
 0x943   :  { %2995 = vmatpush.msrb.mxu0 %v6614_v62  ;;  %3015 = vmatpush.msra.mxu1 %v6615_v48 }
 0x944   :  { %3035 = vmatpush.msra.mxu2 %v6616_v32  ;;  %3055 = vmatpush.msra.mxu3 %v6617_v11 }
 0x945   :  { %2996 = vmatpush.msrb.mxu0 %v6618_v5  ;;  %3016 = vmatpush.msra.mxu1 %v6619_v3 }
 0x946   :  { %3036 = vmatpush.msra.mxu2 %v6620_v50  ;;  %3056 = vmatpush.msra.mxu3 %v6621_v14 }
 0x9a2   :  { %v2702_v29 = vpop.f32.mrf.mxu0  ;;  %v2722_v38 = vpop.f32.mrf.mxu1 }
 0x9a3   :  { %v2765_v53 = vadd.f32 %v2702_v29, %v1714_v57  ;;  %v2766_v2 = vadd.f32 %v2722_v38, %v1755_v25 }
 0x9a5   :  { %v2769_v55 = vsub.f32 0.0, %v2765_v53  ;;  %v2787_v63 = vsub.f32 0.0, %v2766_v2  ;;  %v6631_v53 = vld [vmem:[#allocation21_spill] sm:$0xff] }
 0x9a6   :  { %v1758_v2 = vadd.f32 %v6631_v53, %v6624_v42 }
 0x9a7   :  { %v2770_v49 = vmul.f32 1.442695, %v2769_v55  ;;  %v2788_v6 = vmul.f32 1.442695, %v2787_v63 }
 0x9a9   :  { %3442 = vpow2.f32 %v2770_v49  ;;  %v2762_v52 = vpop.f32.mrf.mxu3  ;;  %v2742_v59 = vpop.f32.mrf.mxu2 }
 0x9aa   :  { %3444 = vpow2.f32 %v2788_v6  ;;  %v2768_v16 = vadd.f32 %v2762_v52, %v1837_v44  ;;  %v2767_v4 = vadd.f32 %v2742_v59, %v1796_v36 }
 0x9ac   :  { %v2806_v58 = vsub.f32 0.0, %v2768_v16 }
 0x9ae   :  { %v2807_v1 = vmul.f32 1.442695, %v2806_v58  ;;  %v6632_v58 = vld [vmem:[#allocation44_spill] sm:$0xff] }
 0x9af   :  { %v3443_v33 = vpop.eup %3442 }
 0x9b0   :  { %v3445_v26 = vpop.eup %3444  ;;  %v2772_v7 = vadd.f32 1.0, %v3443_v33  ;;  %3446 = vpow2.f32 %v2807_v1  ;;  %v1840_v1 = vadd.f32 %v6632_v58, %v6626_v20  ;;  %v6634_v58 = vld [vmem:[#allocation67_spill] sm:$0xff] }
 0x9b1   :  { %v2790_v60 = vadd.f32 1.0, %v3445_v26 }
 0x9b2   :  { %3448 = vrcp.f32 %v2772_v7  ;;  %v2784_v28 = vand.u32 2147483648, %v2772_v7  ;;  %v2782_v31 = vand.u32 2147483647, %v2772_v7  ;;  %vm2778_vm15 = vweird.f32 %v2772_v7 }
 0x9b3   :  { %3450 = vrcp.f32 %v2790_v60  ;;  %v2802_v27 = vand.u32 2147483648, %v2790_v60  ;;  %v2800_v51 = vand.u32 2147483647, %v2790_v60  ;;  %vm2796_vm0 = vweird.f32 %v2790_v60 }
 0x9b4   :  { %v2785_v45 = vor.u32 1.1754944e-38, %v2784_v28  ;;  %vm2783_vm3 = vcmp.eq.f32.partialorder %v2782_v31, 8.507059e+37 }
 0x9b5   :  { %v2803_v15 = vor.u32 1.1754944e-38, %v2802_v27  ;;  %vm2801_vm4 = vcmp.eq.f32.partialorder %v2800_v51, 8.507059e+37 }
 0x9b6   :  { %v3447_v12 = vpop.eup %3446 }
 0x9b7   :  { %v2809_v24 = vadd.f32 1.0, %v3447_v12 }
 0x9b8   :  { %v3449_v10 = vpop.eup %3448 }
 0x9b9   :  { %v3451_v46 = vpop.eup %3450  ;;  %v2774_v54 = vmul.f32 %v3449_v10, %v2772_v7  ;;  %3452 = vrcp.f32 %v2809_v24  ;;  %vm2779_vm13 = vweird.f32 %v3449_v10  ;;  %v2821_v50 = vand.u32 2147483648, %v2809_v24 }
 0x9ba   :  { %v2792_v22 = vmul.f32 %v3451_v46, %v2790_v60  ;;  %3454 = vtanh.f32 %v2767_v4  ;;  %vm2797_vm14 = vweird.f32 %v3451_v46  ;;  %vm2780_vm1 = vmor %vm2778_vm15, %vm2779_vm13  ;;  %vm2815_vm6 = vweird.f32 %v2809_v24  ;;  %v6633_v4 = vld [vmem:[#allocation23_spill] sm:$0xff] }
 0x9bb   :  { %v2775_v17 = vsub.f32 1.0, %v2774_v54  ;;  %vm2798_vm2 = vmor %vm2796_vm0, %vm2797_vm14  ;;  %v2819_v14 = vand.u32 2147483647, %v2809_v24  ;;  %v2822_v57 = vor.u32 1.1754944e-38, %v2821_v50 }
 0x9bc   :  { %v2793_v8 = vsub.f32 1.0, %v2792_v22 }
 0x9bd   :  { %v2776_v43 = vmul.f32 %v3449_v10, %v2775_v17  ;;  %vm2820_vm8 = vcmp.eq.f32.partialorder %v2819_v14, 8.507059e+37 }
 0x9be   :  { %v2794_v56 = vmul.f32 %v3451_v46, %v2793_v8 }
 0x9bf   :  { %v3453_v18 = vpop.eup %3452  ;;  %v2777_v21 = vadd.f32 %v3449_v10, %v2776_v43 }
 0x9c0   :  { %v2795_v13 = vadd.f32 %v3451_v46, %v2794_v56  ;;  %v2811_v30 = vmul.f32 %v3453_v18, %v2809_v24  ;;  %v3455_v47 = vpop.eup %3454  ;;  %vm2816_vm5 = vweird.f32 %v3453_v18 }
 0x9c1   :  { %v2781_v9 = vsel %vm2780_vm1, %v3449_v10, %v2777_v21  ;;  %vm2817_vm7 = vmor %vm2815_vm6, %vm2816_vm5 }
 0x9c2   :  { %v2786_v34 = vsel %vm2783_vm3, %v2785_v45, %v2781_v9  ;;  %v2799_v37 = vsel %vm2798_vm2, %v3451_v46, %v2795_v13  ;;  %v2812_v61 = vsub.f32 1.0, %v2811_v30  ;;  %v1799_v46 = vadd.f32 %v6633_v4, %v6628_v41  ;;  %v3130_v4 = vld [vmem:[#allocation10 + $0x28] sm:$0xff] }
 0x9c3   :  { %v2804_v62 = vsel %vm2801_vm4, %v2803_v15, %v2799_v37  ;;  %v2825_v48 = vmul.f32 %v3455_v47, %v2786_v34 }
 0x9c4   :  { %v2824_v32 = vmul.f32 %v2804_v62, %v5774_v0  ;;  %v2813_v11 = vmul.f32 %v3453_v18, %v2812_v61  ;;  %v6630_v0 = vld [vmem:[#allocation19_spill] sm:$0xff] }
 0x9c5   :  { %v1717_v38 = vadd.f32 %v6630_v0, %v6622_v19 }
 0x9c6   :  { %v5850_v5 = vadd.f32 %v2825_v48, %v2824_v32  ;;  %v2814_v3 = vadd.f32 %v3453_v18, %v2813_v11 }
 0x9c8   :  { %3456 = vtanh.f32 %v5850_v5  ;;  %v2818_v35 = vsel %vm2817_vm7, %v3453_v18, %v2814_v3 }
 0x9c9   :  { %v2823_v25 = vsel %vm2820_vm8, %v2822_v57, %v2818_v35 }
 0x9ce   :  { %v3457_v39 = vpop.eup %3456 }
 0x9cf   :  { %v2828_v29 = vmul.f32 %v3457_v39, %v2823_v25 }
 0x9d1   :  { %2849 = vmatmul.f32.vlgmr.msra.gmra.mxu0 %v2828_v29  ;;  %2869 = vmatmul.f32.vlgmr.msrb.gmra.mxu1 %v2828_v29 }
 0x9d2   :  { %2889 = vmatmul.f32.vlgmr.msrb.gmra.mxu2 %v2828_v29  ;;  %2909 = vmatmul.f32.vlgmr.msrb.gmra.mxu3 %v2828_v29 }
 0xa4e   :  { %v2850_v55 = vpop.f32.mrf.mxu0  ;;  %v2870_v63 = vpop.f32.mrf.mxu1 }
 0xa4f   :  { %v2913_v49 = vadd.f32 %v2850_v55, %v1717_v38  ;;  %v2914_v6 = vadd.f32 %v2870_v63, %v1758_v2  ;;  %v3139_v63 = vld [vmem:[#allocation10 + $0x70] sm:$0xff] }
 0xa51   :  { %v2917_v23 = vsub.f32 0.0, %v2913_v49  ;;  %v2935_v44 = vsub.f32 0.0, %v2914_v6  ;;  %v3138_v49 = vld [vmem:[#allocation10 + $0x68] sm:$0xff]  ;;  %v3137_v6 = vld [vmem:[#allocation10 + $0x60] sm:$0xff] }
 0xa53   :  { %v2918_v52 = vmul.f32 1.442695, %v2917_v23  ;;  %v2936_v16 = vmul.f32 1.442695, %v2935_v44  ;;  %v3136_v23 = vld [vmem:[#allocation10 + $0x58] sm:$0xff]  ;;  %v3135_v44 = vld [vmem:[#allocation10 + $0x50] sm:$0xff] }
 0xa55   :  { %3458 = vpow2.f32 %v2918_v52  ;;  %v2910_v33 = vpop.f32.mrf.mxu3  ;;  %v2890_v24 = vpop.f32.mrf.mxu2  ;;  %v3134_v52 = vld [vmem:[#allocation10 + $0x48] sm:$0xff] }
 0xa56   :  { %3460 = vpow2.f32 %v2936_v16  ;;  %v2916_v26 = vadd.f32 %v2910_v33, %v1840_v1  ;;  %v2915_v17 = vadd.f32 %v2890_v24, %v1799_v46  ;;  %v3133_v16 = vld [vmem:[#allocation10 + $0x40] sm:$0xff]  ;;  %v1720_v1 = vadd.f32 %v6634_v58, %v6622_v19  ;;  %v6635_v33 = vld [vmem:[#allocation70_spill] sm:$0xff]  ;;  %v6636_v19 = vld [vmem:[#allocation25_spill] sm:$0xff] }
 0xa58   :  { %v2954_v7 = vsub.f32 0.0, %v2916_v26  ;;  %v1761_v26 = vadd.f32 %v6635_v33, %v6624_v42  ;;  %v3128_v42 = vld [vmem:[#allocation10 + $0x18] sm:$0xff] }
 0xa5a   :  { %v2955_v60 = vmul.f32 1.442695, %v2954_v7 }
 0xa5b   :  { %v3459_v59 = vpop.eup %3458 }
 0xa5c   :  { %v3461_v12 = vpop.eup %3460  ;;  %v2920_v40 = vadd.f32 1.0, %v3459_v59  ;;  %3462 = vpow2.f32 %v2955_v60  ;;  %v3132_v59 = vld [vmem:[#allocation10 + $0x38] sm:$0xff] }
 0xa5d   :  { %v2938_v36 = vadd.f32 1.0, %v3461_v12 }
 0xa5e   :  { %3464 = vrcp.f32 %v2920_v40  ;;  %v2932_v56 = vand.u32 2147483648, %v2920_v40  ;;  %v2930_v21 = vand.u32 2147483647, %v2920_v40  ;;  %vm2926_vm11 = vweird.f32 %v2920_v40 }
 0xa5f   :  { %3466 = vrcp.f32 %v2938_v36  ;;  %v2950_v51 = vand.u32 2147483648, %v2938_v36  ;;  %v2948_v13 = vand.u32 2147483647, %v2938_v36  ;;  %vm2944_vm12 = vweird.f32 %v2938_v36 }
 0xa60   :  { %v2933_v9 = vor.u32 1.1754944e-38, %v2932_v56  ;;  %vm2931_vm15 = vcmp.eq.f32.partialorder %v2930_v21, 8.507059e+37 }
 0xa61   :  { %v2951_v37 = vor.u32 1.1754944e-38, %v2950_v51  ;;  %vm2949_vm0 = vcmp.eq.f32.partialorder %v2948_v13, 8.507059e+37  ;;  %v3125_v51 = vld [vmem:[#allocation10] sm:$0xff] }
 0xa62   :  { %v3463_v10 = vpop.eup %3462 }
 0xa63   :  { %v2957_v54 = vadd.f32 1.0, %v3463_v10 }
 0xa64   :  { %v3465_v22 = vpop.eup %3464 }
 0xa65   :  { %v3467_v8 = vpop.eup %3466  ;;  %v2922_v28 = vmul.f32 %v3465_v22, %v2920_v40  ;;  %3468 = vrcp.f32 %v2957_v54  ;;  %vm2927_vm9 = vweird.f32 %v3465_v22  ;;  %v2969_v25 = vand.u32 2147483648, %v2957_v54 }
 0xa66   :  { %v2940_v27 = vmul.f32 %v3467_v8, %v2938_v36  ;;  %3470 = vtanh.f32 %v2915_v17  ;;  %vm2945_vm10 = vweird.f32 %v3467_v8  ;;  %vm2928_vm13 = vmor %vm2926_vm11, %vm2927_vm9  ;;  %vm2963_vm2 = vweird.f32 %v2957_v54  ;;  %v3131_v36 = vld [vmem:[#allocation10 + $0x30] sm:$0xff]  ;;  %v3129_v17 = vld [vmem:[#allocation10 + $0x20] sm:$0xff] }
 0xa67   :  { %v2923_v43 = vsub.f32 1.0, %v2922_v28  ;;  %vm2946_vm14 = vmor %vm2944_vm12, %vm2945_vm10  ;;  %v2967_v29 = vand.u32 2147483647, %v2957_v54  ;;  %v2970_v38 = vor.u32 1.1754944e-38, %v2969_v25 }
 0xa68   :  { %v2941_v31 = vsub.f32 1.0, %v2940_v27  ;;  %v3127_v27 = vld [vmem:[#allocation10 + $0x10] sm:$0xff] }
 0xa69   :  { %v2924_v18 = vmul.f32 %v3465_v22, %v2923_v43  ;;  %vm2968_vm4 = vcmp.eq.f32.partialorder %v2967_v29, 8.507059e+37 }
 0xa6a   :  { %v2942_v45 = vmul.f32 %v3467_v8, %v2941_v31  ;;  %v3126_v31 = vld [vmem:[#allocation10 + $0x8] sm:$0xff] }
 0xa6b   :  { %v3469_v30 = vpop.eup %3468  ;;  %v2925_v15 = vadd.f32 %v3465_v22, %v2924_v18 }
 0xa6c   :  { %v2943_v47 = vadd.f32 %v3467_v8, %v2942_v45  ;;  %v2959_v34 = vmul.f32 %v3469_v30, %v2957_v54  ;;  %v3471_v62 = vpop.eup %3470  ;;  %vm2964_vm1 = vweird.f32 %v3469_v30 }
 0xa6d   :  { %v2929_v61 = vsel %vm2928_vm13, %v3465_v22, %v2925_v15  ;;  %vm2965_vm3 = vmor %vm2963_vm2, %vm2964_vm1  ;;  %v1843_v22 = vadd.f32 %v6636_v19, %v6626_v20  ;;  %v6637_v15 = vld [vmem:[#allocation54_spill] sm:$0xff] }
 0xa6e   :  { %v2934_v48 = vsel %vm2931_vm15, %v2933_v9, %v2929_v61  ;;  %v2947_v32 = vsel %vm2946_vm14, %v3467_v8, %v2943_v47  ;;  %v2960_v11 = vsub.f32 1.0, %v2959_v34  ;;  %v1802_v9 = vadd.f32 %v6637_v15, %v6628_v41 }
 0xa6f   :  { %v2952_v3 = vsel %vm2949_vm0, %v2951_v37, %v2947_v32  ;;  %v2973_v50 = vmul.f32 %v3471_v62, %v2934_v48 }
 0xa70   :  { %v2972_v14 = vmul.f32 %v2952_v3, %v5850_v5  ;;  %v2961_v35 = vmul.f32 %v3469_v30, %v2960_v11  ;;  %v3140_v5 = vld [vmem:[#allocation10 + $0x78] sm:$0xff] }
 0xa71   :  { %3145 = vmatpush.msra.mxu0 %v3140_v5 }
 0xa72   :  { %v5862_v57 = vadd.f32 %v2973_v50, %v2972_v14  ;;  %v2962_v39 = vadd.f32 %v3469_v30, %v2961_v35 }
 0xa73   :  { %3146 = vmatpush.msra.mxu0 %v3139_v63 }
 0xa74   :  { %3472 = vtanh.f32 %v5862_v57  ;;  %v2966_v0 = vsel %vm2965_vm3, %v3469_v30, %v2962_v39 }
 0xa75   :  { %v2971_v2 = vsel %vm2968_vm4, %v2970_v38, %v2966_v0  ;;  %3147 = vmatpush.msra.mxu0 %v3138_v49 }
 0xa77   :  { %3148 = vmatpush.msra.mxu0 %v3137_v6 }
 0xa79   :  { %3149 = vmatpush.msra.mxu0 %v3136_v23 }
 0xa7a   :  { %v3473_v53 = vpop.eup %3472 }
 0xa7b   :  { %v2976_v55 = vmul.f32 %v3473_v53, %v2971_v2  ;;  %3150 = vmatpush.msra.mxu0 %v3135_v44 }
 0xa7d   :  { %2997 = vmatmul.f32.vlgmr.msrb.gmra.mxu0 %v2976_v55  ;;  %3017 = vmatmul.f32.vlgmr.msra.gmra.mxu1 %v2976_v55 }
 0xa7e   :  { %3037 = vmatmul.f32.vlgmr.msra.gmra.mxu2 %v2976_v55  ;;  %3057 = vmatmul.f32.vlgmr.msra.gmra.mxu3 %v2976_v55 }
 0xa7f   :  { %3151 = vmatpush.msra.mxu0 %v3134_v52 }
 0xa81   :  { %3152 = vmatpush.msra.mxu0 %v3133_v16 }
 0xa83   :  { %3153 = vmatpush.msra.mxu0 %v3132_v59 }
 0xa85   :  { %3154 = vmatpush.msra.mxu0 %v3131_v36 }
 0xa87   :  { %3155 = vmatpush.msra.mxu0 %v3130_v4 }
 0xa89   :  { %3156 = vmatpush.msra.mxu0 %v3129_v17 }
 0xa8b   :  { %3157 = vmatpush.msra.mxu0 %v3128_v42 }
 0xa8d   :  { %3158 = vmatpush.msra.mxu0 %v3127_v27 }
 0xa8f   :  { %3159 = vmatpush.msra.mxu0 %v3126_v31 }
 0xa91   :  { %3160 = vmatpush.msra.mxu0 %v3125_v51 }
 0xafa   :  { %v2998_v7 = vpop.f32.mrf.mxu0  ;;  %v3018_v60 = vpop.f32.mrf.mxu1 }
 0xafb   :  { %v3061_v12 = vadd.f32 %v2998_v7, %v1720_v1  ;;  %v3062_v40 = vadd.f32 %v3018_v60, %v1761_v26 }
 0xafd   :  { %v3065_v24 = vsub.f32 0.0, %v3061_v12  ;;  %v3083_v10 = vsub.f32 0.0, %v3062_v40 }
 0xaff   :  { %v3066_v46 = vmul.f32 1.442695, %v3065_v24  ;;  %v3084_v54 = vmul.f32 1.442695, %v3083_v10 }
 0xb01   :  { %3474 = vpow2.f32 %v3066_v46  ;;  %v3058_v8 = vpop.f32.mrf.mxu3  ;;  %v3038_v13 = vpop.f32.mrf.mxu2 }
 0xb02   :  { %3476 = vpow2.f32 %v3084_v54  ;;  %v3064_v28 = vadd.f32 %v3058_v8, %v1843_v22  ;;  %v3063_v37 = vadd.f32 %v3038_v13, %v1802_v9 }
 0xb04   :  { %v3102_v43 = vsub.f32 0.0, %v3064_v28 }
 0xb06   :  { %v3103_v56 = vmul.f32 1.442695, %v3102_v43 }
 0xb07   :  { %v3475_v18 = vpop.eup %3474 }
 0xb08   :  { %v3477_v21 = vpop.eup %3476  ;;  %v3068_v45 = vadd.f32 1.0, %v3475_v18  ;;  %3478 = vpow2.f32 %v3103_v56 }
 0xb09   :  { %v3086_v20 = vadd.f32 1.0, %v3477_v21 }
 0xb0a   :  { %3480 = vrcp.f32 %v3068_v45  ;;  %v3080_v3 = vand.u32 2147483648, %v3068_v45  ;;  %v3078_v35 = vand.u32 2147483647, %v3068_v45  ;;  %vm3074_vm7 = vweird.f32 %v3068_v45 }
 0xb0b   :  { %3482 = vrcp.f32 %v3086_v20  ;;  %v3098_v50 = vand.u32 2147483648, %v3086_v20  ;;  %v3096_v25 = vand.u32 2147483647, %v3086_v20  ;;  %vm3092_vm8 = vweird.f32 %v3086_v20 }
 0xb0c   :  { %v3081_v0 = vor.u32 1.1754944e-38, %v3080_v3  ;;  %vm3079_vm11 = vcmp.eq.f32.partialorder %v3078_v35, 8.507059e+37 }
 0xb0d   :  { %v3099_v2 = vor.u32 1.1754944e-38, %v3098_v50  ;;  %vm3097_vm12 = vcmp.eq.f32.partialorder %v3096_v25, 8.507059e+37 }
 0xb0e   :  { %v3479_v30 = vpop.eup %3478 }
 0xb0f   :  { %v3105_v47 = vadd.f32 1.0, %v3479_v30 }
 0xb10   :  { %v3481_v34 = vpop.eup %3480 }
 0xb11   :  { %v3483_v61 = vpop.eup %3482  ;;  %v3070_v62 = vmul.f32 %v3481_v34, %v3068_v45  ;;  %3484 = vrcp.f32 %v3105_v47  ;;  %vm3075_vm5 = vweird.f32 %v3481_v34  ;;  %v3117_v33 = vand.u32 2147483648, %v3105_v47 }
 0xb12   :  { %v3088_v48 = vmul.f32 %v3483_v61, %v3086_v20  ;;  %3486 = vtanh.f32 %v3063_v37  ;;  %vm3093_vm6 = vweird.f32 %v3483_v61  ;;  %vm3076_vm9 = vmor %vm3074_vm7, %vm3075_vm5  ;;  %vm3111_vm14 = vweird.f32 %v3105_v47 }
 0xb13   :  { %v3071_v32 = vsub.f32 1.0, %v3070_v62  ;;  %vm3094_vm10 = vmor %vm3092_vm8, %vm3093_vm6  ;;  %v3115_v26 = vand.u32 2147483647, %v3105_v47  ;;  %v3118_v60 = vor.u32 1.1754944e-38, %v3117_v33 }
 0xb14   :  { %v3089_v11 = vsub.f32 1.0, %v3088_v48 }
 0xb15   :  { %v3072_v14 = vmul.f32 %v3481_v34, %v3071_v32  ;;  %vm3116_vm0 = vcmp.eq.f32.partialorder %v3115_v26, 8.507059e+37 }
 0xb16   :  { %v3090_v39 = vmul.f32 %v3483_v61, %v3089_v11 }
 0xb17   :  { %v3485_v29 = vpop.eup %3484  ;;  %v3073_v41 = vadd.f32 %v3481_v34, %v3072_v14 }
 0xb18   :  { %v3091_v38 = vadd.f32 %v3483_v61, %v3090_v39  ;;  %v3107_v53 = vmul.f32 %v3485_v29, %v3105_v47  ;;  %v3487_v5 = vpop.eup %3486  ;;  %vm3112_vm13 = vweird.f32 %v3485_v29 }
 0xb19   :  { %v3077_v55 = vsel %vm3076_vm9, %v3481_v34, %v3073_v41  ;;  %vm3113_vm15 = vmor %vm3111_vm14, %vm3112_vm13 }
 0xb1a   :  { %v3082_v63 = vsel %vm3079_vm11, %v3081_v0, %v3077_v55  ;;  %v3095_v49 = vsel %vm3094_vm10, %v3483_v61, %v3091_v38  ;;  %v3108_v6 = vsub.f32 1.0, %v3107_v53 }
 0xb1b   :  { %v3100_v23 = vsel %vm3097_vm12, %v3099_v2, %v3095_v49  ;;  %v3121_v44 = vmul.f32 %v3487_v5, %v3082_v63 }
 0xb1c   :  { %v3120_v52 = vmul.f32 %v3100_v23, %v5862_v57  ;;  %v3109_v16 = vmul.f32 %v3485_v29, %v3108_v6  ;;  %v3233_v57 = vld [vmem:[%s5888_s8] ss:$0 sm:$0xff] }
 0xb1e   :  { %v3122_v58 = vadd.f32 %v3121_v44, %v3120_v52  ;;  %v3110_v1 = vadd.f32 %v3485_v29, %v3109_v16 }
 0xb20   :  { %3488 = vtanh.f32 %v3122_v58  ;;  %v3114_v7 = vsel %vm3113_vm15, %v3485_v29, %v3110_v1 }
 0xb21   :  { %v3119_v12 = vsel %vm3116_vm0, %v3118_v60, %v3114_v7 }
 0xb26   :  { %v3489_v59 = vpop.eup %3488 }
 0xb27   :  { %v3124_v40 = vmul.f32 %v3489_v59, %v3119_v12 }
 0xb29   :  { %3161 = vmatmul.f32.vlgmr.msra.gmra.mxu0 %v3124_v40 }
 0xba6   :  { %v3162_v36 = vpop.f32.mrf.mxu0 }
 0xba7   :  { %v3163_v24 = vadd.f32 %v3233_v57, %v3162_v36 }
 0xba9   :  { %3165 = vst [vmem:[#allocation12] sm:$0xff] %v3163_v24 }
 0xbaa   :  { %3176 = dma.vmem_to_hbm [thread:$0]  %s3172_s18, 128, %s3174_s21, [#allocation6]  }
 0xbab   :  { %3744 = dma.done.wait [#allocation6], 128  }
 0xbac   :  { %3745 = vsyncadd [#allocation6], 4294967168 }
 0xbad   :  { %3181 = vsyncpa [#allocation5], 1 }
 0xbae   :  { %3182 = vsyncpa [#allocation8], 1 }
 0xbaf   :  { %3183 = vsyncpa [#allocation11], 1 }
 0xbb0   :  { %3184 = vsyncpa [#allocation6], 1 }

</bundles_post_ra>
